<compile_context>
chip_gen: v6e
topology: v6e:2x2x1
jax: 0.10.0
libtpu: 0.0.40
codegen_flags: <defaults>
</compile_context>

<pallas_src>
import functools

import jax
import jax.numpy as jnp
import numpy as np
from jax import lax
from jax.experimental import pallas as pl
from jax.experimental.pallas import tpu as pltpu


def _round_up(x, m):
    return ((x + m - 1) // m) * m


def _vmem():
    return pl.BlockSpec(memory_space=pltpu.MemorySpace.VMEM)


# ---------------------------------------------------------------------------
# Kernel 1: fused point+color residual-MLP encoder, with feature_norm fused in
# ---------------------------------------------------------------------------
def _encoder_kernel(pts_ref, col_ref,
                    pw1, pb1, pw2, pb2, pw3, pb3,
                    cw1, cb1, cw2, cb2, cw3, cb3,
                    o_ref):
    # TODO(synk): exact PointResNetEncoder internals (context norm, #res blocks)
    # unspecified; per-point residual MLP used.
    def branch(x, w1, b1, w2, b2, w3, b3):
        h = jnp.dot(x, w1[...], preferred_element_type=jnp.float32) + b1[...]
        h = jnp.maximum(h, 0.0)
        r = jnp.dot(h.astype(jnp.bfloat16), w2[...],
                    preferred_element_type=jnp.float32) + b2[...]
        h = h + jnp.maximum(r, 0.0)
        return jnp.dot(h.astype(jnp.bfloat16), w3[...],
                       preferred_element_type=jnp.float32) + b3[...]

    d = branch(pts_ref[...], pw1, pb1, pw2, pb2, pw3, pb3)
    d = d + branch(col_ref[...], cw1, cb1, cw2, cb2, cw3, cb3)
    # fused feature_norm (per-point L2 normalization), EUP rsqrt
    d = d * lax.rsqrt(jnp.maximum(jnp.sum(d * d, axis=-1, keepdims=True), 1e-12))
    o_ref[...] = d


def encode_points(pts, color, enc_p, enc_c):
    """PointResNetEncoder(pts) + PointResNetEncoder(color) + feature_norm, fused."""
    n = pts.shape[0]
    feat = enc_p["w1"].shape[1]
    npad = max(_round_up(n, 8), 8)
    pts_p = jnp.zeros((npad, pts.shape[1]), jnp.float32).at[:n].set(pts.astype(jnp.float32))
    col_p = jnp.zeros((npad, color.shape[1]), jnp.float32).at[:n].set(color.astype(jnp.float32))
    bf = lambda w: w.astype(jnp.bfloat16)
    row = lambda b: b.reshape(1, -1).astype(jnp.float32)
    out = pl.pallas_call(
        _encoder_kernel,
        out_shape=jax.ShapeDtypeStruct((npad, feat), jnp.float32),
        in_specs=[_vmem()] * 14,
        out_specs=_vmem(),
    )(pts_p, col_p,
      enc_p["w1"], row(enc_p["b1"]), bf(enc_p["w2"]), row(enc_p["b2"]),
      bf(enc_p["w3"]), row(enc_p["b3"]),
      enc_c["w1"], row(enc_c["b1"]), bf(enc_c["w2"]), row(enc_c["b2"]),
      bf(enc_c["w3"]), row(enc_c["b3"]))
    return out[:n]


# ---------------------------------------------------------------------------
# Kernel 2: fused per-sample attention + normalize + dustbin Sinkhorn OT
#           grid over samples (parallel -> v7x megacore sharding)
# ---------------------------------------------------------------------------
def _make_match_kernel(layer_types, P2, P3, DA, ot_iters, lam):
    scale = 1.0 / float(DA) ** 0.5
    NEG = -1e30  # log-mass of dead (padding) rows/cols

    def kernel(n2_ref, n3_ref, d2_ref, d3_ref, wqkv_ref, wo_ref, bin_ref,
               scores_ref, d2n_ref, d3n_ref):
        b = pl.program_id(0)
        n2 = n2_ref[b]
        n3 = n3_ref[b]

        d2 = d2_ref[...]          # (P2, DA) f32, valid prefix of length n2
        d3 = d3_ref[...]          # (P3, DA) f32, valid prefix of length n3

        kmask2 = lax.broadcasted_iota(jnp.int32, (1, P2), 1) < n2
        kmask3 = lax.broadcasted_iota(jnp.int32, (1, P3), 1) < n3

        def attend(x, y, kmask, wq, wkv, wo):
            # fused k|v projection (one matmul), bf16 -> MXU, f32 accumulate
            q = jnp.dot(x.astype(jnp.bfloat16), wq,
                        preferred_element_type=jnp.float32)
            kv = jnp.dot(y.astype(jnp.bfloat16), wkv,
                         preferred_element_type=jnp.float32)
            k = kv[:, :DA]
            v = kv[:, DA:]
            logits = jnp.dot(q.astype(jnp.bfloat16), k.astype(jnp.bfloat16).T,
                             preferred_element_type=jnp.float32) * scale
            logits = jnp.where(kmask, logits, -1e9)     # mask padded keys
            m = jnp.max(logits, axis=-1, keepdims=True)
            p = jnp.exp(logits - m)
            p = p * pl.reciprocal(jnp.sum(p, axis=-1, keepdims=True), approx=True)
            ctx = jnp.dot(p.astype(jnp.bfloat16), v.astype(jnp.bfloat16),
                          preferred_element_type=jnp.float32)
            return x + jnp.dot(ctx.astype(jnp.bfloat16), wo,
                               preferred_element_type=jnp.float32)

        for l, ltype in enumerate(layer_types):          # static unroll (3 layers)
            w_l = wqkv_ref[l]                            # (DA, 3*DA) bf16
            wq = w_l[:, :DA]
            wkv = w_l[:, DA:]
            wo = wo_ref[l]
            if ltype == "self":
                d2 = attend(d2, d2, kmask2, wq, wkv, wo)
                d3 = attend(d3, d3, kmask3, wq, wkv, wo)
            else:  # cross
                nd2 = attend(d2, d3, kmask3, wq, wkv, wo)
                nd3 = attend(d3, d2, kmask2, wq, wkv, wo)
                d2, d3 = nd2, nd3

        # TODO(synk): Hier_Matcher internals unspecified; treated as identity.
        # fused post-attention L2 normalize
        d2 = d2 * lax.rsqrt(jnp.maximum(jnp.sum(d2 * d2, -1, keepdims=True), 1e-12))
        d3 = d3 * lax.rsqrt(jnp.maximum(jnp.sum(d3 * d3, -1, keepdims=True), 1e-12))
        d2n_ref[...] = d2
        d3n_ref[...] = d3

        # pairwise L2 distance: rows = 3D points, cols = 2D points
        g = jnp.dot(d3.astype(jnp.bfloat16), d2.astype(jnp.bfloat16).T,
                    preferred_element_type=jnp.float32)
        sq3 = jnp.sum(d3 * d3, axis=-1, keepdims=True)
        sq2 = jnp.sum(d2 * d2, axis=-1, keepdims=True)
        dist = jnp.sqrt(jnp.maximum(sq3 + sq2.T - 2.0 * g, 0.0))

        # dustbin built in-kernel: it lives in the LAST padded slot of each axis.
        # TODO(synk): init_couplings_and_marginals / RegularisedOptimalTransport
        # sources not provided; bin_score is used as the dustbin *cost* and a
        # fixed-lambda log-domain Sinkhorn (30 iters) is used.
        rows = lax.broadcasted_iota(jnp.int32, (P3, P2), 0)
        cols = lax.broadcasted_iota(jnp.int32, (P3, P2), 1)
        bin_cost = bin_ref[0, 0]
        is_bin = jnp.logical_or(rows == P3 - 1, cols == P2 - 1)
        cost = jnp.where(is_bin, bin_cost, dist)
        log_k = cost * (-1.0 / lam)

        # marginals: uniform 1/(n2+n3) on valid points, dustbins absorb the rest,
        # zero mass (NEG) on padding slots so they drop out of the plan.
        n2f = n2.astype(jnp.float32)
        n3f = n3.astype(jnp.float32)
        log_tot = jnp.log(n2f + n3f)
        ridx = lax.broadcasted_iota(jnp.int32, (P3, 1), 0)
        cidx = lax.broadcasted_iota(jnp.int32, (1, P2), 1)
        log_mu = jnp.where(ridx == P3 - 1, jnp.log(n2f) - log_tot,
                           jnp.where(ridx < n3, -log_tot, NEG))
        log_nu = jnp.where(cidx == P2 - 1, jnp.log(n3f) - log_tot,
                           jnp.where(cidx < n2, -log_tot, NEG))

        def lse_rows(m):
            mx = jnp.max(m, axis=-1, keepdims=True)
            return mx + jnp.log(jnp.sum(jnp.exp(m - mx), axis=-1, keepdims=True))

        def lse_cols(m):
            mx = jnp.max(m, axis=0, keepdims=True)
            return mx + jnp.log(jnp.sum(jnp.exp(m - mx), axis=0, keepdims=True))

        def body(_, uv):
            # manually unrolled x2: two full (u, v) updates per loop step
            u, v = uv
            u = log_mu - lse_rows(log_k + v)
            v = log_nu - lse_cols(log_k + u)
            u = log_mu - lse_rows(log_k + v)
            v = log_nu - lse_cols(log_k + u)
            return u, v

        u0 = jnp.zeros((P3, 1), jnp.float32)
        v0 = jnp.where(jnp.logical_or(cidx < n2, cidx == P2 - 1),
                       0.0, NEG).astype(jnp.float32)
        u, v = lax.fori_loop(0, ot_iters // 2, body, (u0, v0))
        scores_ref[...] = jnp.exp(log_k + u + v)

    return kernel


def match_samples(params, d2a, d3a, counts2, counts3, *, att_layers, ot_iters, ot_lam):
    nb, pa2, da = d2a.shape
    _, pa3, _ = d3a.shape
    L = len(att_layers)
    wqkv = params["att_wqkv"].astype(jnp.bfloat16)      # (L, da, 3*da)
    wo = params["att_wo"].astype(jnp.bfloat16)          # (L, da, da)
    bin_score = params["bin_score"].reshape(1, 1).astype(jnp.float32)

    grid_spec = pltpu.PrefetchScalarGridSpec(
        num_scalar_prefetch=2,                          # per-sample valid counts
        grid=(nb,),
        in_specs=[
            pl.BlockSpec((None, pa2, da), lambda b, c2, c3: (b, 0, 0)),
            pl.BlockSpec((None, pa3, da), lambda b, c2, c3: (b, 0, 0)),
            pl.BlockSpec((L, da, 3 * da), lambda b, c2, c3: (0, 0, 0)),
            pl.BlockSpec((L, da, da), lambda b, c2, c3: (0, 0, 0)),
            pl.BlockSpec((1, 1), lambda b, c2, c3: (0, 0),
                         memory_space=pltpu.MemorySpace.SMEM),
        ],
        out_specs=[
            pl.BlockSpec((None, pa3, pa2), lambda b, c2, c3: (b, 0, 0)),
            pl.BlockSpec((None, pa2, da), lambda b, c2, c3: (b, 0, 0)),
            pl.BlockSpec((None, pa3, da), lambda b, c2, c3: (b, 0, 0)),
        ],
    )

    attn_flops = L * (2 * (pa2 + pa3) * da * 4 * da + 4 * pa2 * pa3 * da)
    ot_flops = 2 * pa3 * pa2 * da + ot_iters * 8 * pa3 * pa2
    cost_est = pl.CostEstimate(
        flops=int(nb * (attn_flops + ot_flops)),
        transcendentals=int(nb * (L * 2 * pa2 * pa3 + ot_iters * 2 * pa3 * pa2)),
        bytes_accessed=int(4 * nb * (2 * (pa2 + pa3) * da + pa3 * pa2)
                           + 2 * (wqkv.size + wo.size)),
    )

    return pl.pallas_call(
        _make_match_kernel(att_layers, pa2, pa3, da, ot_iters, ot_lam),
        grid_spec=grid_spec,
        out_shape=(
            jax.ShapeDtypeStruct((nb, pa3, pa2), jnp.float32),
            jax.ShapeDtypeStruct((nb, pa2, da), jnp.float32),
            jax.ShapeDtypeStruct((nb, pa3, da), jnp.float32),
        ),
        compiler_params=pltpu.CompilerParams(dimension_semantics=("parallel",)),
        cost_estimate=cost_est,
    )(counts2, counts3, d2a.astype(jnp.float32), d3a.astype(jnp.float32),
      wqkv, wo, bin_score)


# ---------------------------------------------------------------------------
# Kernel 3: fused 2-layer match classifier (whole batch in one call)
# ---------------------------------------------------------------------------
def _cls_kernel(x_ref, w1_ref, b1_ref, w2_ref, b2_ref, o_ref):
    # TODO(synk): MatchCls2D3D internals unspecified; per-match MLP head used.
    h = jnp.dot(x_ref[...].astype(jnp.bfloat16), w1_ref[...],
                preferred_element_type=jnp.float32) + b1_ref[...]
    h = jnp.maximum(h, 0.0)
    y = jnp.dot(h, w2_ref[...], preferred_element_type=jnp.float32) + b2_ref[...]
    o_ref[...] = jax.nn.sigmoid(y)


def classifier(x, cls_params):
    n = x.shape[0]
    return pl.pallas_call(
        _cls_kernel,
        out_shape=jax.ShapeDtypeStruct((n, 1), jnp.float32),
        in_specs=[_vmem()] * 5,
        out_specs=_vmem(),
    )(x.astype(jnp.float32),
      cls_params["w1"].astype(jnp.bfloat16),
      cls_params["b1"].reshape(1, -1).astype(jnp.float32),
      cls_params["w2"].astype(jnp.float32),
      cls_params["b2"].reshape(1, -1).astype(jnp.float32))


# ---------------------------------------------------------------------------
# Plain-JAX glue (data-dependent indexing, tiny tensors)
# ---------------------------------------------------------------------------
def _segment_positions(idx, nb):
    onehot = (idx[:, None] == jnp.arange(nb)[None, :]).astype(jnp.int32)
    cum = jnp.cumsum(onehot, axis=0) - 1
    return jnp.take_along_axis(cum, idx[:, None].astype(jnp.int32), axis=1)[:, 0]


def _segment_pad(x, idx, pos, nb, npad):
    out = jnp.zeros((nb, npad) + x.shape[1:], jnp.float32)
    return out.at[idx, pos].set(x.astype(jnp.float32))


def kmeans_masked(pts, mask, K, iters):
    # TODO(synk): exact KMeans init unspecified; first-K-valid-points init used.
    maskf = mask.astype(jnp.float32)
    centers0 = pts[:K]

    def step(_, centers):
        d = jnp.sum((pts[:, None, :] - centers[None, :, :]) ** 2, axis=-1)
        labels = jax.nn.one_hot(jnp.argmin(d, axis=-1), K, dtype=jnp.float32)
        labels = labels * maskf[:, None]
        counts = labels.sum(0)
        sums = labels.T @ pts
        return jnp.where(counts[:, None] > 0.0,
                         sums / jnp.maximum(counts, 1.0)[:, None], centers)

    centers = lax.fori_loop(0, iters, step, centers0)
    d = jnp.sum((pts[:, None, :] - centers[None, :, :]) ** 2, axis=-1)
    return jnp.argmin(d, axis=-1), centers


def cluster_encoding_masked(labels, desc, mask, K):
    onehot = jax.nn.one_hot(labels, K, dtype=jnp.float32) * mask[:, None].astype(jnp.float32)
    counts = jnp.maximum(onehot.sum(0), 1.0)
    return (onehot.T @ desc) / counts[:, None]


def knn_adjacency(centers, k):
    K = centers.shape[0]
    d = jnp.sum((centers[:, None, :] - centers[None, :, :]) ** 2, axis=-1)
    idx = jnp.argsort(d, axis=-1)[:, :k]
    adj = jnp.zeros((K, K), jnp.float32).at[jnp.arange(K)[:, None], idx].set(1.0)
    return adj / adj.sum(-1, keepdims=True)


# ---------------------------------------------------------------------------
# Jittable padded forward (static per-sample shapes, no host batch loop)
# ---------------------------------------------------------------------------
def forward_padded(params, pts2d, idx2d, pts3d, idx3d, color2d, color3d, *,
                   att_layers, nb, pa2, pa3, cluster_k, knn_k,
                   ot_iters, ot_lam, kmeans_iters):
    feat = params["kp2d_enc"]["w1"].shape[1]

    # fused per-point encoders (+ feature_norm) on the flat point lists
    desc2d = encode_points(pts2d, color2d, params["kp2d_enc"], params["color_enc"])
    desc3d = encode_points(pts3d, color3d, params["kp3d_enc"], params["color_enc"])

    counts2 = jnp.bincount(idx2d, length=nb).astype(jnp.int32)
    counts3 = jnp.bincount(idx3d, length=nb).astype(jnp.int32)
    pos2 = _segment_positions(idx2d, nb)
    pos3 = _segment_positions(idx3d, nb)

    d2p = _segment_pad(desc2d, idx2d, pos2, nb, pa2)    # (nb, pa2, feat)
    d3p = _segment_pad(desc3d, idx3d, pos3, nb, pa3)
    p2p = _segment_pad(pts2d, idx2d, pos2, nb, pa2)
    p3p = _segment_pad(pts3d, idx3d, pos3, nb, pa3)

    mask2 = jnp.arange(pa2)[None, :] < counts2[:, None]
    mask3 = jnp.arange(pa3)[None, :] < counts3[:, None]

    # TODO(synk): Coarse_gcn_encoding internals unspecified; masked KMeans +
    # kNN-GCN over cluster nodes (tiny 10x10 tensors -> plain JAX, per review).
    gw, gb = params["gcn"]["w"], params["gcn"]["b"]

    def cluster_ctx(pts, desc, mask):
        labels, centers = kmeans_masked(pts, mask, cluster_k, kmeans_iters)
        enc = cluster_encoding_masked(labels, desc, mask, cluster_k)
        adj = knn_adjacency(centers, knn_k)
        g = jnp.maximum(adj @ enc @ gw + gb, 0.0)
        return g[labels]

    g2 = jax.vmap(cluster_ctx)(p2p, d2p, mask2)
    g3 = jax.vmap(cluster_ctx)(p3p, d3p, mask3)

    d2a = jnp.concatenate([d2p, g2], axis=-1)            # (nb, pa2, 2*feat)
    d3a = jnp.concatenate([d3p, g3], axis=-1)            # (nb, pa3, 2*feat)

    # fused attention + normalize + dustbin Sinkhorn, one grid step per sample
    scores, d2n, d3n = match_samples(params, d2a, d3a, counts2, counts3,
                                     att_layers=att_layers,
                                     ot_iters=ot_iters, ot_lam=ot_lam)

    # mutual-NN assignment on the OT plan (padding slots have exactly 0 mass)
    # TODO(synk): mutual_assignment source not provided; row/col argmax agreement used.
    def gather_fn(sc, d2n_b, d3n_b, n2, n3):
        row_arg = jnp.argmax(sc, axis=1)
        col_arg = jnp.argmax(sc, axis=0)
        j = jnp.clip(row_arg, 0, pa2 - 1)
        i_idx = jnp.arange(pa3)
        mutual = (row_arg < n2) & (col_arg[j] == i_idx) & (i_idx < n3)
        x = jnp.concatenate([d2n_b[j], d3n_b], axis=-1)
        return x, j, mutual

    xcls, jidx, mutual = jax.vmap(gather_fn)(scores, d2n, d3n, counts2, counts3)

    probs = classifier(xcls.reshape(nb * pa3, -1), params["cls"])[:, 0]
    probs = probs.reshape(nb, pa3)

    def scatter_fn(j, mut, pr):
        vals = jnp.where(mut, pr, -1.0)
        return jnp.full((pa3, pa2), -1.0, jnp.float32).at[jnp.arange(pa3), j].set(vals)

    match_probs = jax.vmap(scatter_fn)(jidx, mutual, probs)
    return scores, match_probs


_forward_padded = jax.jit(
    forward_padded,
    static_argnames=("att_layers", "nb", "pa2", "pa3", "cluster_k", "knn_k",
                     "ot_iters", "ot_lam", "kmeans_iters"))


# ---------------------------------------------------------------------------
# Parameters
# ---------------------------------------------------------------------------
def _glorot(key, shape):
    s = jnp.sqrt(2.0 / (shape[0] + shape[1]))
    return (jax.random.normal(key, shape, jnp.float32) * s).astype(jnp.float32)


def init_encoder(key, cin, feat):
    k1, k2, k3 = jax.random.split(key, 3)
    return dict(w1=_glorot(k1, (cin, feat)), b1=jnp.zeros((feat,), jnp.float32),
                w2=_glorot(k2, (feat, feat)), b2=jnp.zeros((feat,), jnp.float32),
                w3=_glorot(k3, (feat, feat)), b3=jnp.zeros((feat,), jnp.float32))


def init_params(key, feat, att_layers, hidden_cls=128):
    da = 2 * feat
    n_att = len(att_layers)
    ks = jax.random.split(key, 6 + n_att)
    wqkv, wo = [], []
    for i in range(n_att):
        kq, kk, kv, ko = jax.random.split(ks[6 + i], 4)
        wqkv.append(jnp.concatenate([_glorot(kq, (da, da)),
                                     _glorot(kk, (da, da)),
                                     _glorot(kv, (da, da))], axis=1))
        wo.append(_glorot(ko, (da, da)))
    return dict(
        kp2d_enc=init_encoder(ks[0], 2, feat),
        kp3d_enc=init_encoder(ks[1], 3, feat),   # p3d_type='coords' -> own encoder
        color_enc=init_encoder(ks[2], 3, feat),
        bin_score=jnp.asarray(1.0, jnp.float32),
        gcn=dict(w=_glorot(ks[3], (feat, feat)), b=jnp.zeros((feat,), jnp.float32)),
        cls=dict(w1=_glorot(ks[4], (2 * da, hidden_cls)),
                 b1=jnp.zeros((hidden_cls,), jnp.float32),
                 w2=_glorot(ks[5], (hidden_cls, 1)),
                 b2=jnp.zeros((1,), jnp.float32)),
        att_wqkv=jnp.stack(wqkv),                # (L, da, 3*da)  [q | k | v]
        att_wo=jnp.stack(wo),                    # (L, da, da)
    )


# ---------------------------------------------------------------------------
# Host wrapper: static shape config + unpadding to per-sample matrices
# ---------------------------------------------------------------------------
def _extract_valid(mat, n3, n2):
    top = jnp.concatenate([mat[:n3, :n2], mat[:n3, -1:]], axis=1)
    bot = jnp.concatenate([mat[-1:, :n2], mat[-1:, -1:]], axis=1)
    return jnp.concatenate([top, bot], axis=0)


def ot_matcher_cls_forward(params, att_layers, cluster_k,
                           pts2d, idx2d, pts3d, idx3d, color2d, color3d):
    # static batching config derived once on the host (compile-time shapes)
    idx2d_h = np.asarray(jax.device_get(idx2d))
    idx3d_h = np.asarray(jax.device_get(idx3d))
    nb = int(idx2d_h.max()) + 1
    c2 = np.bincount(idx2d_h, minlength=nb)
    c3 = np.bincount(idx3d_h, minlength=nb)
    pa2 = _round_up(int(c2.max()) + 1, 8)   # +1 slot = dustbin, 8-aligned sublanes
    pa3 = _round_up(int(c3.max()) + 1, 8)

    scores, match_probs = _forward_padded(
        params, pts2d, idx2d, pts3d, idx3d, color2d, color3d,
        att_layers=tuple(att_layers), nb=nb, pa2=pa2, pa3=pa3,
        cluster_k=cluster_k, knn_k=4, ot_iters=30, ot_lam=0.1, kmeans_iters=8)

    scores_b, match_probs_b = [], []
    for b in range(nb):
        n2i, n3i = int(c2[b]), int(c3[b])
        scores_b.append(_extract_valid(scores[b], n3i, n2i))
        match_probs_b.append(_extract_valid(match_probs[b], n3i, n2i))
    return scores_b, match_probs_b


# ---------------------------------------------------------------------------
# Main
# ---------------------------------------------------------------------------
if __name__ == "__main__":
    FEAT = 64                  # kp_feat_dim (module default 128; small for test)
    ATT_LAYERS = ("self", "cross", "self")
    CLUSTER_K = 10

    key = jax.random.PRNGKey(0)
    k1, k2, k3, k4 = jax.random.split(key, 4)

    N2, N3 = 40, 32
    pts2d = jax.random.uniform(k1, (N2, 2), jnp.float32)
    pts3d = jax.random.uniform(k2, (N3, 3), jnp.float32)
    color2d = jax.random.uniform(k3, (N2, 3), jnp.float32)
    color3d = jax.random.uniform(k4, (N3, 3), jnp.float32)
    idx2d = jnp.concatenate([jnp.zeros((24,), jnp.int32), jnp.ones((16,), jnp.int32)])
    idx3d = jnp.concatenate([jnp.zeros((20,), jnp.int32), jnp.ones((12,), jnp.int32)])

    params = init_params(jax.random.PRNGKey(1), FEAT, ATT_LAYERS)

    scores_b, match_probs_b = ot_matcher_cls_forward(
        params, ATT_LAYERS, CLUSTER_K, pts2d, idx2d, pts3d, idx3d, color2d, color3d)

    for s, m in zip(scores_b, match_probs_b):
        jax.block_until_ready(s)
        jax.block_until_ready(m)

    print("KERNEL_OK")
</pallas_src>

<mosaic_0001>
module attributes {stable_mosaic.version = 11 : i64} {
  func.func private @main(%arg0: i32) attributes {dimension_semantics = [#tpu.dimension_semantics<core_parallel>], iteration_bounds = array<i64: 2>, tpu.core_type = #tpu.core_type<sc_scalar_subcore>, window_params = []} {
    return
  }
}

module attributes {stable_mosaic.version = 11 : i64} {
  func.func private @main(%arg0: i32) attributes {dimension_semantics = [#tpu.dimension_semantics<core_parallel>], iteration_bounds = array<i64: 2>, tpu.core_type = #tpu.core_type<sc_scalar_subcore>, window_params = []} {
    return
  }
}

module attributes {stable_mosaic.version = 11 : i64} {
  func.func @_encoder_kernel(%arg0: memref<32x3xf32, #tpu.memory_space<vmem>>, %arg1: memref<32x3xf32, #tpu.memory_space<vmem>>, %arg2: memref<3x64xf32, #tpu.memory_space<vmem>>, %arg3: memref<1x64xf32, #tpu.memory_space<vmem>>, %arg4: memref<64x64xbf16, #tpu.memory_space<vmem>>, %arg5: memref<1x64xf32, #tpu.memory_space<vmem>>, %arg6: memref<64x64xbf16, #tpu.memory_space<vmem>>, %arg7: memref<1x64xf32, #tpu.memory_space<vmem>>, %arg8: memref<3x64xf32, #tpu.memory_space<vmem>>, %arg9: memref<1x64xf32, #tpu.memory_space<vmem>>, %arg10: memref<64x64xbf16, #tpu.memory_space<vmem>>, %arg11: memref<1x64xf32, #tpu.memory_space<vmem>>, %arg12: memref<64x64xbf16, #tpu.memory_space<vmem>>, %arg13: memref<1x64xf32, #tpu.memory_space<vmem>>, %arg14: memref<32x64xf32, #tpu.memory_space<vmem>>) attributes {dimension_semantics = [], scalar_prefetch = 0 : i64, scratch_operands = 0 : i64, tpu.core_type = #tpu.core_type<tc>} {
    %c0 = arith.constant 0 : index
    %c0_0 = arith.constant 0 : index
    %0 = vector.load %arg0[%c0, %c0_0] : memref<32x3xf32, #tpu.memory_space<vmem>>, vector<32x3xf32>
    %c0_1 = arith.constant 0 : index
    %c0_2 = arith.constant 0 : index
    %1 = vector.load %arg2[%c0_1, %c0_2] : memref<3x64xf32, #tpu.memory_space<vmem>>, vector<3x64xf32>
    %cst = arith.constant dense<0.000000e+00> : vector<32x64xf32>
    %2 = tpu.matmul %0, %1, %cst {dimension_numbers = #tpu.dot_dimension_numbers<[1], [0], [0], [1], [0, 0, 1, 1], [], []>} : vector<32x3xf32>, vector<3x64xf32>, vector<32x64xf32> -> vector<32x64xf32>
    %c0_3 = arith.constant 0 : index
    %c0_4 = arith.constant 0 : index
    %3 = vector.load %arg3[%c0_3, %c0_4] : memref<1x64xf32, #tpu.memory_space<vmem>>, vector<1x64xf32>
    %4 = vector.broadcast %3 : vector<1x64xf32> to vector<32x64xf32>
    %5 = arith.addf %2, %4 : vector<32x64xf32>
    %cst_5 = arith.constant 0.000000e+00 : f32
    %6 = vector.broadcast %cst_5 : f32 to vector<32x64xf32>
    %7 = arith.maximumf %5, %6 : vector<32x64xf32>
    %8 = arith.truncf %7 : vector<32x64xf32> to vector<32x64xbf16>
    %c0_6 = arith.constant 0 : index
    %c0_7 = arith.constant 0 : index
    %9 = vector.load %arg4[%c0_6, %c0_7] : memref<64x64xbf16, #tpu.memory_space<vmem>>, vector<64x64xbf16>
    %cst_8 = arith.constant dense<0.000000e+00> : vector<32x64xf32>
    %10 = tpu.matmul %8, %9, %cst_8 {dimension_numbers = #tpu.dot_dimension_numbers<[1], [0], [0], [1], [0, 0, 1, 1], [], []>} : vector<32x64xbf16>, vector<64x64xbf16>, vector<32x64xf32> -> vector<32x64xf32>
    %c0_9 = arith.constant 0 : index
    %c0_10 = arith.constant 0 : index
    %11 = vector.load %arg5[%c0_9, %c0_10] : memref<1x64xf32, #tpu.memory_space<vmem>>, vector<1x64xf32>
    %12 = vector.broadcast %11 : vector<1x64xf32> to vector<32x64xf32>
    %13 = arith.addf %10, %12 : vector<32x64xf32>
    %cst_11 = arith.constant 0.000000e+00 : f32
    %14 = vector.broadcast %cst_11 : f32 to vector<32x64xf32>
    %15 = arith.maximumf %13, %14 : vector<32x64xf32>
    %16 = arith.addf %7, %15 : vector<32x64xf32>
    %17 = arith.truncf %16 : vector<32x64xf32> to vector<32x64xbf16>
    %c0_12 = arith.constant 0 : index
    %c0_13 = arith.constant 0 : index
    %18 = vector.load %arg6[%c0_12, %c0_13] : memref<64x64xbf16, #tpu.memory_space<vmem>>, vector<64x64xbf16>
    %cst_14 = arith.constant dense<0.000000e+00> : vector<32x64xf32>
    %19 = tpu.matmul %17, %18, %cst_14 {dimension_numbers = #tpu.dot_dimension_numbers<[1], [0], [0], [1], [0, 0, 1, 1], [], []>} : vector<32x64xbf16>, vector<64x64xbf16>, vector<32x64xf32> -> vector<32x64xf32>
    %c0_15 = arith.constant 0 : index
    %c0_16 = arith.constant 0 : index
    %20 = vector.load %arg7[%c0_15, %c0_16] : memref<1x64xf32, #tpu.memory_space<vmem>>, vector<1x64xf32>
    %21 = vector.broadcast %20 : vector<1x64xf32> to vector<32x64xf32>
    %22 = arith.addf %19, %21 : vector<32x64xf32>
    %c0_17 = arith.constant 0 : index
    %c0_18 = arith.constant 0 : index
    %23 = vector.load %arg1[%c0_17, %c0_18] : memref<32x3xf32, #tpu.memory_space<vmem>>, vector<32x3xf32>
    %c0_19 = arith.constant 0 : index
    %c0_20 = arith.constant 0 : index
    %24 = vector.load %arg8[%c0_19, %c0_20] : memref<3x64xf32, #tpu.memory_space<vmem>>, vector<3x64xf32>
    %cst_21 = arith.constant dense<0.000000e+00> : vector<32x64xf32>
    %25 = tpu.matmul %23, %24, %cst_21 {dimension_numbers = #tpu.dot_dimension_numbers<[1], [0], [0], [1], [0, 0, 1, 1], [], []>} : vector<32x3xf32>, vector<3x64xf32>, vector<32x64xf32> -> vector<32x64xf32>
    %c0_22 = arith.constant 0 : index
    %c0_23 = arith.constant 0 : index
    %26 = vector.load %arg9[%c0_22, %c0_23] : memref<1x64xf32, #tpu.memory_space<vmem>>, vector<1x64xf32>
    %27 = vector.broadcast %26 : vector<1x64xf32> to vector<32x64xf32>
    %28 = arith.addf %25, %27 : vector<32x64xf32>
    %cst_24 = arith.constant 0.000000e+00 : f32
    %29 = vector.broadcast %cst_24 : f32 to vector<32x64xf32>
    %30 = arith.maximumf %28, %29 : vector<32x64xf32>
    %31 = arith.truncf %30 : vector<32x64xf32> to vector<32x64xbf16>
    %c0_25 = arith.constant 0 : index
    %c0_26 = arith.constant 0 : index
    %32 = vector.load %arg10[%c0_25, %c0_26] : memref<64x64xbf16, #tpu.memory_space<vmem>>, vector<64x64xbf16>
    %cst_27 = arith.constant dense<0.000000e+00> : vector<32x64xf32>
    %33 = tpu.matmul %31, %32, %cst_27 {dimension_numbers = #tpu.dot_dimension_numbers<[1], [0], [0], [1], [0, 0, 1, 1], [], []>} : vector<32x64xbf16>, vector<64x64xbf16>, vector<32x64xf32> -> vector<32x64xf32>
    %c0_28 = arith.constant 0 : index
    %c0_29 = arith.constant 0 : index
    %34 = vector.load %arg11[%c0_28, %c0_29] : memref<1x64xf32, #tpu.memory_space<vmem>>, vector<1x64xf32>
    %35 = vector.broadcast %34 : vector<1x64xf32> to vector<32x64xf32>
    %36 = arith.addf %33, %35 : vector<32x64xf32>
    %cst_30 = arith.constant 0.000000e+00 : f32
    %37 = vector.broadcast %cst_30 : f32 to vector<32x64xf32>
    %38 = arith.maximumf %36, %37 : vector<32x64xf32>
    %39 = arith.addf %30, %38 : vector<32x64xf32>
    %40 = arith.truncf %39 : vector<32x64xf32> to vector<32x64xbf16>
    %c0_31 = arith.constant 0 : index
    %c0_32 = arith.constant 0 : index
    %41 = vector.load %arg12[%c0_31, %c0_32] : memref<64x64xbf16, #tpu.memory_space<vmem>>, vector<64x64xbf16>
    %cst_33 = arith.constant dense<0.000000e+00> : vector<32x64xf32>
    %42 = tpu.matmul %40, %41, %cst_33 {dimension_numbers = #tpu.dot_dimension_numbers<[1], [0], [0], [1], [0, 0, 1, 1], [], []>} : vector<32x64xbf16>, vector<64x64xbf16>, vector<32x64xf32> -> vector<32x64xf32>
    %c0_34 = arith.constant 0 : index
    %c0_35 = arith.constant 0 : index
    %43 = vector.load %arg13[%c0_34, %c0_35] : memref<1x64xf32, #tpu.memory_space<vmem>>, vector<1x64xf32>
    %44 = vector.broadcast %43 : vector<1x64xf32> to vector<32x64xf32>
    %45 = arith.addf %42, %44 : vector<32x64xf32>
    %46 = arith.addf %22, %45 : vector<32x64xf32>
    %47 = arith.mulf %46, %46 : vector<32x64xf32>
    %cst_36 = arith.constant dense<0.000000e+00> : vector<32xf32>
    %48 = vector.multi_reduction <add>, %47, %cst_36 [1] : vector<32x64xf32> to vector<32xf32>
    %49 = vector.shape_cast %48 : vector<32xf32> to vector<32x1xf32>
    %cst_37 = arith.constant 9.99999996E-13 : f32
    %50 = vector.broadcast %cst_37 : f32 to vector<32x1xf32>
    %51 = arith.maximumf %49, %50 : vector<32x1xf32>
    %52 = math.rsqrt %51 : vector<32x1xf32>
    %53 = vector.broadcast %52 : vector<32x1xf32> to vector<32x64xf32>
    %54 = arith.mulf %46, %53 : vector<32x64xf32>
    %c0_38 = arith.constant 0 : index
    %c0_39 = arith.constant 0 : index
    %55 = vector.load %arg14[%c0_38, %c0_39] : memref<32x64xf32, #tpu.memory_space<vmem>>, vector<32x64xf32>
    tpu.vector_store %arg14[%c0_38, %c0_39], %54 {strides = array<i32>} : memref<32x64xf32, #tpu.memory_space<vmem>>, vector<32x64xf32>,
    return
  }
}

module attributes {stable_mosaic.version = 11 : i64} {
  func.func @_encoder_kernel(%arg0: memref<40x2xf32, #tpu.memory_space<vmem>>, %arg1: memref<40x3xf32, #tpu.memory_space<vmem>>, %arg2: memref<2x64xf32, #tpu.memory_space<vmem>>, %arg3: memref<1x64xf32, #tpu.memory_space<vmem>>, %arg4: memref<64x64xbf16, #tpu.memory_space<vmem>>, %arg5: memref<1x64xf32, #tpu.memory_space<vmem>>, %arg6: memref<64x64xbf16, #tpu.memory_space<vmem>>, %arg7: memref<1x64xf32, #tpu.memory_space<vmem>>, %arg8: memref<3x64xf32, #tpu.memory_space<vmem>>, %arg9: memref<1x64xf32, #tpu.memory_space<vmem>>, %arg10: memref<64x64xbf16, #tpu.memory_space<vmem>>, %arg11: memref<1x64xf32, #tpu.memory_space<vmem>>, %arg12: memref<64x64xbf16, #tpu.memory_space<vmem>>, %arg13: memref<1x64xf32, #tpu.memory_space<vmem>>, %arg14: memref<40x64xf32, #tpu.memory_space<vmem>>) attributes {dimension_semantics = [], scalar_prefetch = 0 : i64, scratch_operands = 0 : i64, tpu.core_type = #tpu.core_type<tc>} {
    %c0 = arith.constant 0 : index
    %c0_0 = arith.constant 0 : index
    %0 = vector.load %arg0[%c0, %c0_0] : memref<40x2xf32, #tpu.memory_space<vmem>>, vector<40x2xf32>
    %c0_1 = arith.constant 0 : index
    %c0_2 = arith.constant 0 : index
    %1 = vector.load %arg2[%c0_1, %c0_2] : memref<2x64xf32, #tpu.memory_space<vmem>>, vector<2x64xf32>
    %cst = arith.constant dense<0.000000e+00> : vector<40x64xf32>
    %2 = tpu.matmul %0, %1, %cst {dimension_numbers = #tpu.dot_dimension_numbers<[1], [0], [0], [1], [0, 0, 1, 1], [], []>} : vector<40x2xf32>, vector<2x64xf32>, vector<40x64xf32> -> vector<40x64xf32>
    %c0_3 = arith.constant 0 : index
    %c0_4 = arith.constant 0 : index
    %3 = vector.load %arg3[%c0_3, %c0_4] : memref<1x64xf32, #tpu.memory_space<vmem>>, vector<1x64xf32>
    %4 = vector.broadcast %3 : vector<1x64xf32> to vector<40x64xf32>
    %5 = arith.addf %2, %4 : vector<40x64xf32>
    %cst_5 = arith.constant 0.000000e+00 : f32
    %6 = vector.broadcast %cst_5 : f32 to vector<40x64xf32>
    %7 = arith.maximumf %5, %6 : vector<40x64xf32>
    %8 = arith.truncf %7 : vector<40x64xf32> to vector<40x64xbf16>
    %c0_6 = arith.constant 0 : index
    %c0_7 = arith.constant 0 : index
    %9 = vector.load %arg4[%c0_6, %c0_7] : memref<64x64xbf16, #tpu.memory_space<vmem>>, vector<64x64xbf16>
    %cst_8 = arith.constant dense<0.000000e+00> : vector<40x64xf32>
    %10 = tpu.matmul %8, %9, %cst_8 {dimension_numbers = #tpu.dot_dimension_numbers<[1], [0], [0], [1], [0, 0, 1, 1], [], []>} : vector<40x64xbf16>, vector<64x64xbf16>, vector<40x64xf32> -> vector<40x64xf32>
    %c0_9 = arith.constant 0 : index
    %c0_10 = arith.constant 0 : index
    %11 = vector.load %arg5[%c0_9, %c0_10] : memref<1x64xf32, #tpu.memory_space<vmem>>, vector<1x64xf32>
    %12 = vector.broadcast %11 : vector<1x64xf32> to vector<40x64xf32>
    %13 = arith.addf %10, %12 : vector<40x64xf32>
    %cst_11 = arith.constant 0.000000e+00 : f32
    %14 = vector.broadcast %cst_11 : f32 to vector<40x64xf32>
    %15 = arith.maximumf %13, %14 : vector<40x64xf32>
    %16 = arith.addf %7, %15 : vector<40x64xf32>
    %17 = arith.truncf %16 : vector<40x64xf32> to vector<40x64xbf16>
    %c0_12 = arith.constant 0 : index
    %c0_13 = arith.constant 0 : index
    %18 = vector.load %arg6[%c0_12, %c0_13] : memref<64x64xbf16, #tpu.memory_space<vmem>>, vector<64x64xbf16>
    %cst_14 = arith.constant dense<0.000000e+00> : vector<40x64xf32>
    %19 = tpu.matmul %17, %18, %cst_14 {dimension_numbers = #tpu.dot_dimension_numbers<[1], [0], [0], [1], [0, 0, 1, 1], [], []>} : vector<40x64xbf16>, vector<64x64xbf16>, vector<40x64xf32> -> vector<40x64xf32>
    %c0_15 = arith.constant 0 : index
    %c0_16 = arith.constant 0 : index
    %20 = vector.load %arg7[%c0_15, %c0_16] : memref<1x64xf32, #tpu.memory_space<vmem>>, vector<1x64xf32>
    %21 = vector.broadcast %20 : vector<1x64xf32> to vector<40x64xf32>
    %22 = arith.addf %19, %21 : vector<40x64xf32>
    %c0_17 = arith.constant 0 : index
    %c0_18 = arith.constant 0 : index
    %23 = vector.load %arg1[%c0_17, %c0_18] : memref<40x3xf32, #tpu.memory_space<vmem>>, vector<40x3xf32>
    %c0_19 = arith.constant 0 : index
    %c0_20 = arith.constant 0 : index
    %24 = vector.load %arg8[%c0_19, %c0_20] : memref<3x64xf32, #tpu.memory_space<vmem>>, vector<3x64xf32>
    %cst_21 = arith.constant dense<0.000000e+00> : vector<40x64xf32>
    %25 = tpu.matmul %23, %24, %cst_21 {dimension_numbers = #tpu.dot_dimension_numbers<[1], [0], [0], [1], [0, 0, 1, 1], [], []>} : vector<40x3xf32>, vector<3x64xf32>, vector<40x64xf32> -> vector<40x64xf32>
    %c0_22 = arith.constant 0 : index
    %c0_23 = arith.constant 0 : index
    %26 = vector.load %arg9[%c0_22, %c0_23] : memref<1x64xf32, #tpu.memory_space<vmem>>, vector<1x64xf32>
    %27 = vector.broadcast %26 : vector<1x64xf32> to vector<40x64xf32>
    %28 = arith.addf %25, %27 : vector<40x64xf32>
    %cst_24 = arith.constant 0.000000e+00 : f32
    %29 = vector.broadcast %cst_24 : f32 to vector<40x64xf32>
    %30 = arith.maximumf %28, %29 : vector<40x64xf32>
    %31 = arith.truncf %30 : vector<40x64xf32> to vector<40x64xbf16>
    %c0_25 = arith.constant 0 : index
    %c0_26 = arith.constant 0 : index
    %32 = vector.load %arg10[%c0_25, %c0_26] : memref<64x64xbf16, #tpu.memory_space<vmem>>, vector<64x64xbf16>
    %cst_27 = arith.constant dense<0.000000e+00> : vector<40x64xf32>
    %33 = tpu.matmul %31, %32, %cst_27 {dimension_numbers = #tpu.dot_dimension_numbers<[1], [0], [0], [1], [0, 0, 1, 1], [], []>} : vector<40x64xbf16>, vector<64x64xbf16>, vector<40x64xf32> -> vector<40x64xf32>
    %c0_28 = arith.constant 0 : index
    %c0_29 = arith.constant 0 : index
    %34 = vector.load %arg11[%c0_28, %c0_29] : memref<1x64xf32, #tpu.memory_space<vmem>>, vector<1x64xf32>
    %35 = vector.broadcast %34 : vector<1x64xf32> to vector<40x64xf32>
    %36 = arith.addf %33, %35 : vector<40x64xf32>
    %cst_30 = arith.constant 0.000000e+00 : f32
    %37 = vector.broadcast %cst_30 : f32 to vector<40x64xf32>
    %38 = arith.maximumf %36, %37 : vector<40x64xf32>
    %39 = arith.addf %30, %38 : vector<40x64xf32>
    %40 = arith.truncf %39 : vector<40x64xf32> to vector<40x64xbf16>
    %c0_31 = arith.constant 0 : index
    %c0_32 = arith.constant 0 : index
    %41 = vector.load %arg12[%c0_31, %c0_32] : memref<64x64xbf16, #tpu.memory_space<vmem>>, vector<64x64xbf16>
    %cst_33 = arith.constant dense<0.000000e+00> : vector<40x64xf32>
    %42 = tpu.matmul %40, %41, %cst_33 {dimension_numbers = #tpu.dot_dimension_numbers<[1], [0], [0], [1], [0, 0, 1, 1], [], []>} : vector<40x64xbf16>, vector<64x64xbf16>, vector<40x64xf32> -> vector<40x64xf32>
    %c0_34 = arith.constant 0 : index
    %c0_35 = arith.constant 0 : index
    %43 = vector.load %arg13[%c0_34, %c0_35] : memref<1x64xf32, #tpu.memory_space<vmem>>, vector<1x64xf32>
    %44 = vector.broadcast %43 : vector<1x64xf32> to vector<40x64xf32>
    %45 = arith.addf %42, %44 : vector<40x64xf32>
    %46 = arith.addf %22, %45 : vector<40x64xf32>
    %47 = arith.mulf %46, %46 : vector<40x64xf32>
    %cst_36 = arith.constant dense<0.000000e+00> : vector<40xf32>
    %48 = vector.multi_reduction <add>, %47, %cst_36 [1] : vector<40x64xf32> to vector<40xf32>
    %49 = vector.shape_cast %48 : vector<40xf32> to vector<40x1xf32>
    %cst_37 = arith.constant 9.99999996E-13 : f32
    %50 = vector.broadcast %cst_37 : f32 to vector<40x1xf32>
    %51 = arith.maximumf %49, %50 : vector<40x1xf32>
    %52 = math.rsqrt %51 : vector<40x1xf32>
    %53 = vector.broadcast %52 : vector<40x1xf32> to vector<40x64xf32>
    %54 = arith.mulf %46, %53 : vector<40x64xf32>
    %c0_38 = arith.constant 0 : index
    %c0_39 = arith.constant 0 : index
    %55 = vector.load %arg14[%c0_38, %c0_39] : memref<40x64xf32, #tpu.memory_space<vmem>>, vector<40x64xf32>
    tpu.vector_store %arg14[%c0_38, %c0_39], %54 {strides = array<i32>} : memref<40x64xf32, #tpu.memory_space<vmem>>, vector<40x64xf32>,
    return
  }
}

module attributes {stable_mosaic.version = 11 : i64} {
  func.func @kernel(%arg0: i32, %arg1: memref<2xi32, #tpu.memory_space<smem>>, %arg2: memref<2xi32, #tpu.memory_space<smem>>, %arg3: memref<1x32x128xf32, #tpu.memory_space<vmem>>, %arg4: memref<1x24x128xf32, #tpu.memory_space<vmem>>, %arg5: memref<3x128x384xbf16, #tpu.memory_space<vmem>>, %arg6: memref<3x128x128xbf16, #tpu.memory_space<vmem>>, %arg7: memref<1x1xf32, #tpu.memory_space<smem>>, %arg8: memref<1x24x32xf32, #tpu.memory_space<vmem>>, %arg9: memref<1x32x128xf32, #tpu.memory_space<vmem>>, %arg10: memref<1x24x128xf32, #tpu.memory_space<vmem>>) attributes {dimension_semantics = [#tpu.dimension_semantics<parallel>], iteration_bounds = array<i64: 2>, scalar_prefetch = 2 : i64, scratch_operands = 0 : i64, tpu.core_type = #tpu.core_type<tc>, window_params = [{transform_indices = @transform_0, window_bounds = array<i64: 1, 32, 128>}, {transform_indices = @transform_1, window_bounds = array<i64: 1, 24, 128>}, {pipeline_mode = #tpu.pipeline_mode<synchronous>, transform_indices = @transform_2, window_bounds = array<i64: 3, 128, 384>}, {pipeline_mode = #tpu.pipeline_mode<synchronous>, transform_indices = @transform_3, window_bounds = array<i64: 3, 128, 128>}, {transform_indices = @transform_4, window_bounds = array<i64: 1, 1>}, {transform_indices = @transform_5, window_bounds = array<i64: 1, 24, 32>}, {transform_indices = @transform_6, window_bounds = array<i64: 1, 32, 128>}, {transform_indices = @transform_7, window_bounds = array<i64: 1, 24, 128>}]} {
    %0 = arith.index_cast %arg0 : i32 to index
    %1 = memref.load %arg1[%0] : memref<2xi32, #tpu.memory_space<smem>>
    %2 = arith.index_cast %arg0 : i32 to index
    %3 = memref.load %arg2[%2] : memref<2xi32, #tpu.memory_space<smem>>
    %c0 = arith.constant 0 : index
    %c0_0 = arith.constant 0 : index
    %c0_1 = arith.constant 0 : index
    %4 = vector.load %arg3[%c0, %c0_0, %c0_1] : memref<1x32x128xf32, #tpu.memory_space<vmem>>, vector<1x32x128xf32>
    %5 = vector.shape_cast %4 : vector<1x32x128xf32> to vector<32x128xf32>
    %c0_2 = arith.constant 0 : index
    %c0_3 = arith.constant 0 : index
    %c0_4 = arith.constant 0 : index
    %6 = vector.load %arg4[%c0_2, %c0_3, %c0_4] : memref<1x24x128xf32, #tpu.memory_space<vmem>>, vector<1x24x128xf32>
    %7 = vector.shape_cast %6 : vector<1x24x128xf32> to vector<24x128xf32>
    %8 = tpu.iota {dimensions = array<i32: 1>} : vector<1x32xi32>
    %9 = vector.broadcast %1 : i32 to vector<1x32xi32>
    %10 = arith.cmpi slt, %8, %9 : vector<1x32xi32>
    %11 = tpu.iota {dimensions = array<i32: 1>} : vector<1x24xi32>
    %12 = vector.broadcast %3 : i32 to vector<1x24xi32>
    %13 = arith.cmpi slt, %11, %12 : vector<1x24xi32>
    %c0_5 = arith.constant 0 : index
    %c0_6 = arith.constant 0 : index
    %c0_7 = arith.constant 0 : index
    %14 = vector.load %arg5[%c0_5, %c0_6, %c0_7] : memref<3x128x384xbf16, #tpu.memory_space<vmem>>, vector<1x128x384xbf16>
    %15 = vector.shape_cast %14 : vector<1x128x384xbf16> to vector<128x384xbf16>
    %16 = vector.extract_strided_slice %15 {offsets = [0, 0], sizes = [128, 128], strides = [1, 1]} : vector<128x384xbf16> to vector<128x128xbf16>
    %17 = vector.extract_strided_slice %15 {offsets = [0, 128], sizes = [128, 256], strides = [1, 1]} : vector<128x384xbf16> to vector<128x256xbf16>
    %c0_8 = arith.constant 0 : index
    %c0_9 = arith.constant 0 : index
    %c0_10 = arith.constant 0 : index
    %18 = vector.load %arg6[%c0_8, %c0_9, %c0_10] : memref<3x128x128xbf16, #tpu.memory_space<vmem>>, vector<1x128x128xbf16>
    %19 = vector.shape_cast %18 : vector<1x128x128xbf16> to vector<128x128xbf16>
    %20 = arith.truncf %5 : vector<32x128xf32> to vector<32x128xbf16>
    %cst = arith.constant dense<0.000000e+00> : vector<32x128xf32>
    %21 = tpu.matmul %20, %16, %cst {dimension_numbers = #tpu.dot_dimension_numbers<[1], [0], [0], [1], [0, 0, 1, 1], [], []>} : vector<32x128xbf16>, vector<128x128xbf16>, vector<32x128xf32> -> vector<32x128xf32>
    %22 = arith.truncf %5 : vector<32x128xf32> to vector<32x128xbf16>
    %cst_11 = arith.constant dense<0.000000e+00> : vector<32x256xf32>
    %23 = tpu.matmul %22, %17, %cst_11 {dimension_numbers = #tpu.dot_dimension_numbers<[1], [0], [0], [1], [0, 0, 1, 1], [], []>} : vector<32x128xbf16>, vector<128x256xbf16>, vector<32x256xf32> -> vector<32x256xf32>
    %24 = vector.extract_strided_slice %23 {offsets = [0, 0], sizes = [32, 128], strides = [1, 1]} : vector<32x256xf32> to vector<32x128xf32>
    %25 = vector.extract_strided_slice %23 {offsets = [0, 128], sizes = [32, 128], strides = [1, 1]} : vector<32x256xf32> to vector<32x128xf32>
    %26 = arith.truncf %21 : vector<32x128xf32> to vector<32x128xbf16>
    %27 = arith.truncf %24 : vector<32x128xf32> to vector<32x128xbf16>
    %28 = tpu.transpose %27, [1, 0] : vector<32x128xbf16> -> vector<128x32xbf16>
    %cst_12 = arith.constant dense<0.000000e+00> : vector<32x32xf32>
    %29 = tpu.matmul %26, %28, %cst_12 {dimension_numbers = #tpu.dot_dimension_numbers<[1], [0], [0], [1], [0, 0, 1, 1], [], []>} : vector<32x128xbf16>, vector<128x32xbf16>, vector<32x32xf32> -> vector<32x32xf32>
    %cst_13 = arith.constant 0.0883883461 : f32
    %30 = vector.broadcast %cst_13 : f32 to vector<32x32xf32>
    %31 = arith.mulf %29, %30 : vector<32x32xf32>
    %cst_14 = arith.constant -1.000000e+09 : f32
    %32 = vector.shape_cast %10 : vector<1x32xi1> to vector<1x32xi1>
    %33 = vector.broadcast %32 : vector<1x32xi1> to vector<32x32xi1>
    %34 = vector.broadcast %cst_14 : f32 to vector<32x32xf32>
    %35 = arith.select %33, %31, %34 : vector<32x32xi1>, vector<32x32xf32>
    %cst_15 = arith.constant dense<0xFF800000> : vector<32xf32>
    %36 = vector.multi_reduction <maximumf>, %35, %cst_15 [1] : vector<32x32xf32> to vector<32xf32>
    %37 = vector.shape_cast %36 : vector<32xf32> to vector<32x1xf32>
    %38 = vector.broadcast %37 : vector<32x1xf32> to vector<32x32xf32>
    %39 = arith.subf %35, %38 : vector<32x32xf32>
    %40 = math.exp %39 : vector<32x32xf32>
    %cst_16 = arith.constant dense<0.000000e+00> : vector<32xf32>
    %41 = vector.multi_reduction <add>, %40, %cst_16 [1] : vector<32x32xf32> to vector<32xf32>
    %42 = vector.shape_cast %41 : vector<32xf32> to vector<32x1xf32>
    %43 = tpu.reciprocal %42 {approx = true} : vector<32x1xf32> -> vector<32x1xf32>
    %44 = vector.broadcast %43 : vector<32x1xf32> to vector<32x32xf32>
    %45 = arith.mulf %40, %44 : vector<32x32xf32>
    %46 = arith.truncf %45 : vector<32x32xf32> to vector<32x32xbf16>
    %47 = arith.truncf %25 : vector<32x128xf32> to vector<32x128xbf16>
    %cst_17 = arith.constant dense<0.000000e+00> : vector<32x128xf32>
    %48 = tpu.matmul %46, %47, %cst_17 {dimension_numbers = #tpu.dot_dimension_numbers<[1], [0], [0], [1], [0, 0, 1, 1], [], []>} : vector<32x32xbf16>, vector<32x128xbf16>, vector<32x128xf32> -> vector<32x128xf32>
    %49 = arith.truncf %48 : vector<32x128xf32> to vector<32x128xbf16>
    %cst_18 = arith.constant dense<0.000000e+00> : vector<32x128xf32>
    %50 = tpu.matmul %49, %19, %cst_18 {dimension_numbers = #tpu.dot_dimension_numbers<[1], [0], [0], [1], [0, 0, 1, 1], [], []>} : vector<32x128xbf16>, vector<128x128xbf16>, vector<32x128xf32> -> vector<32x128xf32>
    %51 = arith.addf %5, %50 : vector<32x128xf32>
    %52 = arith.truncf %7 : vector<24x128xf32> to vector<24x128xbf16>
    %cst_19 = arith.constant dense<0.000000e+00> : vector<24x128xf32>
    %53 = tpu.matmul %52, %16, %cst_19 {dimension_numbers = #tpu.dot_dimension_numbers<[1], [0], [0], [1], [0, 0, 1, 1], [], []>} : vector<24x128xbf16>, vector<128x128xbf16>, vector<24x128xf32> -> vector<24x128xf32>
    %54 = arith.truncf %7 : vector<24x128xf32> to vector<24x128xbf16>
    %cst_20 = arith.constant dense<0.000000e+00> : vector<24x256xf32>
    %55 = tpu.matmul %54, %17, %cst_20 {dimension_numbers = #tpu.dot_dimension_numbers<[1], [0], [0], [1], [0, 0, 1, 1], [], []>} : vector<24x128xbf16>, vector<128x256xbf16>, vector<24x256xf32> -> vector<24x256xf32>
    %56 = vector.extract_strided_slice %55 {offsets = [0, 0], sizes = [24, 128], strides = [1, 1]} : vector<24x256xf32> to vector<24x128xf32>
    %57 = vector.extract_strided_slice %55 {offsets = [0, 128], sizes = [24, 128], strides = [1, 1]} : vector<24x256xf32> to vector<24x128xf32>
    %58 = arith.truncf %53 : vector<24x128xf32> to vector<24x128xbf16>
    %59 = arith.truncf %56 : vector<24x128xf32> to vector<24x128xbf16>
    %60 = tpu.transpose %59, [1, 0] : vector<24x128xbf16> -> vector<128x24xbf16>
    %cst_21 = arith.constant dense<0.000000e+00> : vector<24x24xf32>
    %61 = tpu.matmul %58, %60, %cst_21 {dimension_numbers = #tpu.dot_dimension_numbers<[1], [0], [0], [1], [0, 0, 1, 1], [], []>} : vector<24x128xbf16>, vector<128x24xbf16>, vector<24x24xf32> -> vector<24x24xf32>
    %cst_22 = arith.constant 0.0883883461 : f32
    %62 = vector.broadcast %cst_22 : f32 to vector<24x24xf32>
    %63 = arith.mulf %61, %62 : vector<24x24xf32>
    %cst_23 = arith.constant -1.000000e+09 : f32
    %64 = vector.shape_cast %13 : vector<1x24xi1> to vector<1x24xi1>
    %65 = vector.broadcast %64 : vector<1x24xi1> to vector<24x24xi1>
    %66 = vector.broadcast %cst_23 : f32 to vector<24x24xf32>
    %67 = arith.select %65, %63, %66 : vector<24x24xi1>, vector<24x24xf32>
    %cst_24 = arith.constant dense<0xFF800000> : vector<24xf32>
    %68 = vector.multi_reduction <maximumf>, %67, %cst_24 [1] : vector<24x24xf32> to vector<24xf32>
    %69 = vector.shape_cast %68 : vector<24xf32> to vector<24x1xf32>
    %70 = vector.broadcast %69 : vector<24x1xf32> to vector<24x24xf32>
    %71 = arith.subf %67, %70 : vector<24x24xf32>
    %72 = math.exp %71 : vector<24x24xf32>
    %cst_25 = arith.constant dense<0.000000e+00> : vector<24xf32>
    %73 = vector.multi_reduction <add>, %72, %cst_25 [1] : vector<24x24xf32> to vector<24xf32>
    %74 = vector.shape_cast %73 : vector<24xf32> to vector<24x1xf32>
    %75 = tpu.reciprocal %74 {approx = true} : vector<24x1xf32> -> vector<24x1xf32>
    %76 = vector.broadcast %75 : vector<24x1xf32> to vector<24x24xf32>
    %77 = arith.mulf %72, %76 : vector<24x24xf32>
    %78 = arith.truncf %77 : vector<24x24xf32> to vector<24x24xbf16>
    %79 = arith.truncf %57 : vector<24x128xf32> to vector<24x128xbf16>
    %cst_26 = arith.constant dense<0.000000e+00> : vector<24x128xf32>
    %80 = tpu.matmul %78, %79, %cst_26 {dimension_numbers = #tpu.dot_dimension_numbers<[1], [0], [0], [1], [0, 0, 1, 1], [], []>} : vector<24x24xbf16>, vector<24x128xbf16>, vector<24x128xf32> -> vector<24x128xf32>
    %81 = arith.truncf %80 : vector<24x128xf32> to vector<24x128xbf16>
    %cst_27 = arith.constant dense<0.000000e+00> : vector<24x128xf32>
    %82 = tpu.matmul %81, %19, %cst_27 {dimension_numbers = #tpu.dot_dimension_numbers<[1], [0], [0], [1], [0, 0, 1, 1], [], []>} : vector<24x128xbf16>, vector<128x128xbf16>, vector<24x128xf32> -> vector<24x128xf32>
    %83 = arith.addf %7, %82 : vector<24x128xf32>
    %c1 = arith.constant 1 : index
    %c0_28 = arith.constant 0 : index
    %c0_29 = arith.constant 0 : index
    %84 = vector.load %arg5[%c1, %c0_28, %c0_29] : memref<3x128x384xbf16, #tpu.memory_space<vmem>>, vector<1x128x384xbf16>
    %85 = vector.shape_cast %84 : vector<1x128x384xbf16> to vector<128x384xbf16>
    %86 = vector.extract_strided_slice %85 {offsets = [0, 0], sizes = [128, 128], strides = [1, 1]} : vector<128x384xbf16> to vector<128x128xbf16>
    %87 = vector.extract_strided_slice %85 {offsets = [0, 128], sizes = [128, 256], strides = [1, 1]} : vector<128x384xbf16> to vector<128x256xbf16>
    %c1_30 = arith.constant 1 : index
    %c0_31 = arith.constant 0 : index
    %c0_32 = arith.constant 0 : index
    %88 = vector.load %arg6[%c1_30, %c0_31, %c0_32] : memref<3x128x128xbf16, #tpu.memory_space<vmem>>, vector<1x128x128xbf16>
    %89 = vector.shape_cast %88 : vector<1x128x128xbf16> to vector<128x128xbf16>
    %90 = arith.truncf %51 : vector<32x128xf32> to vector<32x128xbf16>
    %cst_33 = arith.constant dense<0.000000e+00> : vector<32x128xf32>
    %91 = tpu.matmul %90, %86, %cst_33 {dimension_numbers = #tpu.dot_dimension_numbers<[1], [0], [0], [1], [0, 0, 1, 1], [], []>} : vector<32x128xbf16>, vector<128x128xbf16>, vector<32x128xf32> -> vector<32x128xf32>
    %92 = arith.truncf %83 : vector<24x128xf32> to vector<24x128xbf16>
    %cst_34 = arith.constant dense<0.000000e+00> : vector<24x256xf32>
    %93 = tpu.matmul %92, %87, %cst_34 {dimension_numbers = #tpu.dot_dimension_numbers<[1], [0], [0], [1], [0, 0, 1, 1], [], []>} : vector<24x128xbf16>, vector<128x256xbf16>, vector<24x256xf32> -> vector<24x256xf32>
    %94 = vector.extract_strided_slice %93 {offsets = [0, 0], sizes = [24, 128], strides = [1, 1]} : vector<24x256xf32> to vector<24x128xf32>
    %95 = vector.extract_strided_slice %93 {offsets = [0, 128], sizes = [24, 128], strides = [1, 1]} : vector<24x256xf32> to vector<24x128xf32>
    %96 = arith.truncf %91 : vector<32x128xf32> to vector<32x128xbf16>
    %97 = arith.truncf %94 : vector<24x128xf32> to vector<24x128xbf16>
    %98 = tpu.transpose %97, [1, 0] : vector<24x128xbf16> -> vector<128x24xbf16>
    %cst_35 = arith.constant dense<0.000000e+00> : vector<32x24xf32>
    %99 = tpu.matmul %96, %98, %cst_35 {dimension_numbers = #tpu.dot_dimension_numbers<[1], [0], [0], [1], [0, 0, 1, 1], [], []>} : vector<32x128xbf16>, vector<128x24xbf16>, vector<32x24xf32> -> vector<32x24xf32>
    %cst_36 = arith.constant 0.0883883461 : f32
    %100 = vector.broadcast %cst_36 : f32 to vector<32x24xf32>
    %101 = arith.mulf %99, %100 : vector<32x24xf32>
    %cst_37 = arith.constant -1.000000e+09 : f32
    %102 = vector.shape_cast %13 : vector<1x24xi1> to vector<1x24xi1>
    %103 = vector.broadcast %102 : vector<1x24xi1> to vector<32x24xi1>
    %104 = vector.broadcast %cst_37 : f32 to vector<32x24xf32>
    %105 = arith.select %103, %101, %104 : vector<32x24xi1>, vector<32x24xf32>
    %cst_38 = arith.constant dense<0xFF800000> : vector<32xf32>
    %106 = vector.multi_reduction <maximumf>, %105, %cst_38 [1] : vector<32x24xf32> to vector<32xf32>
    %107 = vector.shape_cast %106 : vector<32xf32> to vector<32x1xf32>
    %108 = vector.broadcast %107 : vector<32x1xf32> to vector<32x24xf32>
    %109 = arith.subf %105, %108 : vector<32x24xf32>
    %110 = math.exp %109 : vector<32x24xf32>
    %cst_39 = arith.constant dense<0.000000e+00> : vector<32xf32>
    %111 = vector.multi_reduction <add>, %110, %cst_39 [1] : vector<32x24xf32> to vector<32xf32>
    %112 = vector.shape_cast %111 : vector<32xf32> to vector<32x1xf32>
    %113 = tpu.reciprocal %112 {approx = true} : vector<32x1xf32> -> vector<32x1xf32>
    %114 = vector.broadcast %113 : vector<32x1xf32> to vector<32x24xf32>
    %115 = arith.mulf %110, %114 : vector<32x24xf32>
    %116 = arith.truncf %115 : vector<32x24xf32> to vector<32x24xbf16>
    %117 = arith.truncf %95 : vector<24x128xf32> to vector<24x128xbf16>
    %cst_40 = arith.constant dense<0.000000e+00> : vector<32x128xf32>
    %118 = tpu.matmul %116, %117, %cst_40 {dimension_numbers = #tpu.dot_dimension_numbers<[1], [0], [0], [1], [0, 0, 1, 1], [], []>} : vector<32x24xbf16>, vector<24x128xbf16>, vector<32x128xf32> -> vector<32x128xf32>
    %119 = arith.truncf %118 : vector<32x128xf32> to vector<32x128xbf16>
    %cst_41 = arith.constant dense<0.000000e+00> : vector<32x128xf32>
    %120 = tpu.matmul %119, %89, %cst_41 {dimension_numbers = #tpu.dot_dimension_numbers<[1], [0], [0], [1], [0, 0, 1, 1], [], []>} : vector<32x128xbf16>, vector<128x128xbf16>, vector<32x128xf32> -> vector<32x128xf32>
    %121 = arith.addf %51, %120 : vector<32x128xf32>
    %122 = arith.truncf %83 : vector<24x128xf32> to vector<24x128xbf16>
    %cst_42 = arith.constant dense<0.000000e+00> : vector<24x128xf32>
    %123 = tpu.matmul %122, %86, %cst_42 {dimension_numbers = #tpu.dot_dimension_numbers<[1], [0], [0], [1], [0, 0, 1, 1], [], []>} : vector<24x128xbf16>, vector<128x128xbf16>, vector<24x128xf32> -> vector<24x128xf32>
    %124 = arith.truncf %51 : vector<32x128xf32> to vector<32x128xbf16>
    %cst_43 = arith.constant dense<0.000000e+00> : vector<32x256xf32>
    %125 = tpu.matmul %124, %87, %cst_43 {dimension_numbers = #tpu.dot_dimension_numbers<[1], [0], [0], [1], [0, 0, 1, 1], [], []>} : vector<32x128xbf16>, vector<128x256xbf16>, vector<32x256xf32> -> vector<32x256xf32>
    %126 = vector.extract_strided_slice %125 {offsets = [0, 0], sizes = [32, 128], strides = [1, 1]} : vector<32x256xf32> to vector<32x128xf32>
    %127 = vector.extract_strided_slice %125 {offsets = [0, 128], sizes = [32, 128], strides = [1, 1]} : vector<32x256xf32> to vector<32x128xf32>
    %128 = arith.truncf %123 : vector<24x128xf32> to vector<24x128xbf16>
    %129 = arith.truncf %126 : vector<32x128xf32> to vector<32x128xbf16>
    %130 = tpu.transpose %129, [1, 0] : vector<32x128xbf16> -> vector<128x32xbf16>
    %cst_44 = arith.constant dense<0.000000e+00> : vector<24x32xf32>
    %131 = tpu.matmul %128, %130, %cst_44 {dimension_numbers = #tpu.dot_dimension_numbers<[1], [0], [0], [1], [0, 0, 1, 1], [], []>} : vector<24x128xbf16>, vector<128x32xbf16>, vector<24x32xf32> -> vector<24x32xf32>
    %cst_45 = arith.constant 0.0883883461 : f32
    %132 = vector.broadcast %cst_45 : f32 to vector<24x32xf32>
    %133 = arith.mulf %131, %132 : vector<24x32xf32>
    %cst_46 = arith.constant -1.000000e+09 : f32
    %134 = vector.shape_cast %10 : vector<1x32xi1> to vector<1x32xi1>
    %135 = vector.broadcast %134 : vector<1x32xi1> to vector<24x32xi1>
    %136 = vector.broadcast %cst_46 : f32 to vector<24x32xf32>
    %137 = arith.select %135, %133, %136 : vector<24x32xi1>, vector<24x32xf32>
    %cst_47 = arith.constant dense<0xFF800000> : vector<24xf32>
    %138 = vector.multi_reduction <maximumf>, %137, %cst_47 [1] : vector<24x32xf32> to vector<24xf32>
    %139 = vector.shape_cast %138 : vector<24xf32> to vector<24x1xf32>
    %140 = vector.broadcast %139 : vector<24x1xf32> to vector<24x32xf32>
    %141 = arith.subf %137, %140 : vector<24x32xf32>
    %142 = math.exp %141 : vector<24x32xf32>
    %cst_48 = arith.constant dense<0.000000e+00> : vector<24xf32>
    %143 = vector.multi_reduction <add>, %142, %cst_48 [1] : vector<24x32xf32> to vector<24xf32>
    %144 = vector.shape_cast %143 : vector<24xf32> to vector<24x1xf32>
    %145 = tpu.reciprocal %144 {approx = true} : vector<24x1xf32> -> vector<24x1xf32>
    %146 = vector.broadcast %145 : vector<24x1xf32> to vector<24x32xf32>
    %147 = arith.mulf %142, %146 : vector<24x32xf32>
    %148 = arith.truncf %147 : vector<24x32xf32> to vector<24x32xbf16>
    %149 = arith.truncf %127 : vector<32x128xf32> to vector<32x128xbf16>
    %cst_49 = arith.constant dense<0.000000e+00> : vector<24x128xf32>
    %150 = tpu.matmul %148, %149, %cst_49 {dimension_numbers = #tpu.dot_dimension_numbers<[1], [0], [0], [1], [0, 0, 1, 1], [], []>} : vector<24x32xbf16>, vector<32x128xbf16>, vector<24x128xf32> -> vector<24x128xf32>
    %151 = arith.truncf %150 : vector<24x128xf32> to vector<24x128xbf16>
    %cst_50 = arith.constant dense<0.000000e+00> : vector<24x128xf32>
    %152 = tpu.matmul %151, %89, %cst_50 {dimension_numbers = #tpu.dot_dimension_numbers<[1], [0], [0], [1], [0, 0, 1, 1], [], []>} : vector<24x128xbf16>, vector<128x128xbf16>, vector<24x128xf32> -> vector<24x128xf32>
    %153 = arith.addf %83, %152 : vector<24x128xf32>
    %c2 = arith.constant 2 : index
    %c0_51 = arith.constant 0 : index
    %c0_52 = arith.constant 0 : index
    %154 = vector.load %arg5[%c2, %c0_51, %c0_52] : memref<3x128x384xbf16, #tpu.memory_space<vmem>>, vector<1x128x384xbf16>
    %155 = vector.shape_cast %154 : vector<1x128x384xbf16> to vector<128x384xbf16>
    %156 = vector.extract_strided_slice %155 {offsets = [0, 0], sizes = [128, 128], strides = [1, 1]} : vector<128x384xbf16> to vector<128x128xbf16>
    %157 = vector.extract_strided_slice %155 {offsets = [0, 128], sizes = [128, 256], strides = [1, 1]} : vector<128x384xbf16> to vector<128x256xbf16>
    %c2_53 = arith.constant 2 : index
    %c0_54 = arith.constant 0 : index
    %c0_55 = arith.constant 0 : index
    %158 = vector.load %arg6[%c2_53, %c0_54, %c0_55] : memref<3x128x128xbf16, #tpu.memory_space<vmem>>, vector<1x128x128xbf16>
    %159 = vector.shape_cast %158 : vector<1x128x128xbf16> to vector<128x128xbf16>
    %160 = arith.truncf %121 : vector<32x128xf32> to vector<32x128xbf16>
    %cst_56 = arith.constant dense<0.000000e+00> : vector<32x128xf32>
    %161 = tpu.matmul %160, %156, %cst_56 {dimension_numbers = #tpu.dot_dimension_numbers<[1], [0], [0], [1], [0, 0, 1, 1], [], []>} : vector<32x128xbf16>, vector<128x128xbf16>, vector<32x128xf32> -> vector<32x128xf32>
    %162 = arith.truncf %121 : vector<32x128xf32> to vector<32x128xbf16>
    %cst_57 = arith.constant dense<0.000000e+00> : vector<32x256xf32>
    %163 = tpu.matmul %162, %157, %cst_57 {dimension_numbers = #tpu.dot_dimension_numbers<[1], [0], [0], [1], [0, 0, 1, 1], [], []>} : vector<32x128xbf16>, vector<128x256xbf16>, vector<32x256xf32> -> vector<32x256xf32>
    %164 = vector.extract_strided_slice %163 {offsets = [0, 0], sizes = [32, 128], strides = [1, 1]} : vector<32x256xf32> to vector<32x128xf32>
    %165 = vector.extract_strided_slice %163 {offsets = [0, 128], sizes = [32, 128], strides = [1, 1]} : vector<32x256xf32> to vector<32x128xf32>
    %166 = arith.truncf %161 : vector<32x128xf32> to vector<32x128xbf16>
    %167 = arith.truncf %164 : vector<32x128xf32> to vector<32x128xbf16>
    %168 = tpu.transpose %167, [1, 0] : vector<32x128xbf16> -> vector<128x32xbf16>
    %cst_58 = arith.constant dense<0.000000e+00> : vector<32x32xf32>
    %169 = tpu.matmul %166, %168, %cst_58 {dimension_numbers = #tpu.dot_dimension_numbers<[1], [0], [0], [1], [0, 0, 1, 1], [], []>} : vector<32x128xbf16>, vector<128x32xbf16>, vector<32x32xf32> -> vector<32x32xf32>
    %cst_59 = arith.constant 0.0883883461 : f32
    %170 = vector.broadcast %cst_59 : f32 to vector<32x32xf32>
    %171 = arith.mulf %169, %170 : vector<32x32xf32>
    %cst_60 = arith.constant -1.000000e+09 : f32
    %172 = vector.shape_cast %10 : vector<1x32xi1> to vector<1x32xi1>
    %173 = vector.broadcast %172 : vector<1x32xi1> to vector<32x32xi1>
    %174 = vector.broadcast %cst_60 : f32 to vector<32x32xf32>
    %175 = arith.select %173, %171, %174 : vector<32x32xi1>, vector<32x32xf32>
    %cst_61 = arith.constant dense<0xFF800000> : vector<32xf32>
    %176 = vector.multi_reduction <maximumf>, %175, %cst_61 [1] : vector<32x32xf32> to vector<32xf32>
    %177 = vector.shape_cast %176 : vector<32xf32> to vector<32x1xf32>
    %178 = vector.broadcast %177 : vector<32x1xf32> to vector<32x32xf32>
    %179 = arith.subf %175, %178 : vector<32x32xf32>
    %180 = math.exp %179 : vector<32x32xf32>
    %cst_62 = arith.constant dense<0.000000e+00> : vector<32xf32>
    %181 = vector.multi_reduction <add>, %180, %cst_62 [1] : vector<32x32xf32> to vector<32xf32>
    %182 = vector.shape_cast %181 : vector<32xf32> to vector<32x1xf32>
    %183 = tpu.reciprocal %182 {approx = true} : vector<32x1xf32> -> vector<32x1xf32>
    %184 = vector.broadcast %183 : vector<32x1xf32> to vector<32x32xf32>
    %185 = arith.mulf %180, %184 : vector<32x32xf32>
    %186 = arith.truncf %185 : vector<32x32xf32> to vector<32x32xbf16>
    %187 = arith.truncf %165 : vector<32x128xf32> to vector<32x128xbf16>
    %cst_63 = arith.constant dense<0.000000e+00> : vector<32x128xf32>
    %188 = tpu.matmul %186, %187, %cst_63 {dimension_numbers = #tpu.dot_dimension_numbers<[1], [0], [0], [1], [0, 0, 1, 1], [], []>} : vector<32x32xbf16>, vector<32x128xbf16>, vector<32x128xf32> -> vector<32x128xf32>
    %189 = arith.truncf %188 : vector<32x128xf32> to vector<32x128xbf16>
    %cst_64 = arith.constant dense<0.000000e+00> : vector<32x128xf32>
    %190 = tpu.matmul %189, %159, %cst_64 {dimension_numbers = #tpu.dot_dimension_numbers<[1], [0], [0], [1], [0, 0, 1, 1], [], []>} : vector<32x128xbf16>, vector<128x128xbf16>, vector<32x128xf32> -> vector<32x128xf32>
    %191 = arith.addf %121, %190 : vector<32x128xf32>
    %192 = arith.truncf %153 : vector<24x128xf32> to vector<24x128xbf16>
    %cst_65 = arith.constant dense<0.000000e+00> : vector<24x128xf32>
    %193 = tpu.matmul %192, %156, %cst_65 {dimension_numbers = #tpu.dot_dimension_numbers<[1], [0], [0], [1], [0, 0, 1, 1], [], []>} : vector<24x128xbf16>, vector<128x128xbf16>, vector<24x128xf32> -> vector<24x128xf32>
    %194 = arith.truncf %153 : vector<24x128xf32> to vector<24x128xbf16>
    %cst_66 = arith.constant dense<0.000000e+00> : vector<24x256xf32>
    %195 = tpu.matmul %194, %157, %cst_66 {dimension_numbers = #tpu.dot_dimension_numbers<[1], [0], [0], [1], [0, 0, 1, 1], [], []>} : vector<24x128xbf16>, vector<128x256xbf16>, vector<24x256xf32> -> vector<24x256xf32>
    %196 = vector.extract_strided_slice %195 {offsets = [0, 0], sizes = [24, 128], strides = [1, 1]} : vector<24x256xf32> to vector<24x128xf32>
    %197 = vector.extract_strided_slice %195 {offsets = [0, 128], sizes = [24, 128], strides = [1, 1]} : vector<24x256xf32> to vector<24x128xf32>
    %198 = arith.truncf %193 : vector<24x128xf32> to vector<24x128xbf16>
    %199 = arith.truncf %196 : vector<24x128xf32> to vector<24x128xbf16>
    %200 = tpu.transpose %199, [1, 0] : vector<24x128xbf16> -> vector<128x24xbf16>
    %cst_67 = arith.constant dense<0.000000e+00> : vector<24x24xf32>
    %201 = tpu.matmul %198, %200, %cst_67 {dimension_numbers = #tpu.dot_dimension_numbers<[1], [0], [0], [1], [0, 0, 1, 1], [], []>} : vector<24x128xbf16>, vector<128x24xbf16>, vector<24x24xf32> -> vector<24x24xf32>
    %cst_68 = arith.constant 0.0883883461 : f32
    %202 = vector.broadcast %cst_68 : f32 to vector<24x24xf32>
    %203 = arith.mulf %201, %202 : vector<24x24xf32>
    %cst_69 = arith.constant -1.000000e+09 : f32
    %204 = vector.shape_cast %13 : vector<1x24xi1> to vector<1x24xi1>
    %205 = vector.broadcast %204 : vector<1x24xi1> to vector<24x24xi1>
    %206 = vector.broadcast %cst_69 : f32 to vector<24x24xf32>
    %207 = arith.select %205, %203, %206 : vector<24x24xi1>, vector<24x24xf32>
    %cst_70 = arith.constant dense<0xFF800000> : vector<24xf32>
    %208 = vector.multi_reduction <maximumf>, %207, %cst_70 [1] : vector<24x24xf32> to vector<24xf32>
    %209 = vector.shape_cast %208 : vector<24xf32> to vector<24x1xf32>
    %210 = vector.broadcast %209 : vector<24x1xf32> to vector<24x24xf32>
    %211 = arith.subf %207, %210 : vector<24x24xf32>
    %212 = math.exp %211 : vector<24x24xf32>
    %cst_71 = arith.constant dense<0.000000e+00> : vector<24xf32>
    %213 = vector.multi_reduction <add>, %212, %cst_71 [1] : vector<24x24xf32> to vector<24xf32>
    %214 = vector.shape_cast %213 : vector<24xf32> to vector<24x1xf32>
    %215 = tpu.reciprocal %214 {approx = true} : vector<24x1xf32> -> vector<24x1xf32>
    %216 = vector.broadcast %215 : vector<24x1xf32> to vector<24x24xf32>
    %217 = arith.mulf %212, %216 : vector<24x24xf32>
    %218 = arith.truncf %217 : vector<24x24xf32> to vector<24x24xbf16>
    %219 = arith.truncf %197 : vector<24x128xf32> to vector<24x128xbf16>
    %cst_72 = arith.constant dense<0.000000e+00> : vector<24x128xf32>
    %220 = tpu.matmul %218, %219, %cst_72 {dimension_numbers = #tpu.dot_dimension_numbers<[1], [0], [0], [1], [0, 0, 1, 1], [], []>} : vector<24x24xbf16>, vector<24x128xbf16>, vector<24x128xf32> -> vector<24x128xf32>
    %221 = arith.truncf %220 : vector<24x128xf32> to vector<24x128xbf16>
    %cst_73 = arith.constant dense<0.000000e+00> : vector<24x128xf32>
    %222 = tpu.matmul %221, %159, %cst_73 {dimension_numbers = #tpu.dot_dimension_numbers<[1], [0], [0], [1], [0, 0, 1, 1], [], []>} : vector<24x128xbf16>, vector<128x128xbf16>, vector<24x128xf32> -> vector<24x128xf32>
    %223 = arith.addf %153, %222 : vector<24x128xf32>
    %224 = arith.mulf %191, %191 : vector<32x128xf32>
    %cst_74 = arith.constant dense<0.000000e+00> : vector<32xf32>
    %225 = vector.multi_reduction <add>, %224, %cst_74 [1] : vector<32x128xf32> to vector<32xf32>
    %226 = vector.shape_cast %225 : vector<32xf32> to vector<32x1xf32>
    %cst_75 = arith.constant 9.99999996E-13 : f32
    %227 = vector.broadcast %cst_75 : f32 to vector<32x1xf32>
    %228 = arith.maximumf %226, %227 : vector<32x1xf32>
    %229 = math.rsqrt %228 : vector<32x1xf32>
    %230 = vector.broadcast %229 : vector<32x1xf32> to vector<32x128xf32>
    %231 = arith.mulf %191, %230 : vector<32x128xf32>
    %232 = arith.mulf %223, %223 : vector<24x128xf32>
    %cst_76 = arith.constant dense<0.000000e+00> : vector<24xf32>
    %233 = vector.multi_reduction <add>, %232, %cst_76 [1] : vector<24x128xf32> to vector<24xf32>
    %234 = vector.shape_cast %233 : vector<24xf32> to vector<24x1xf32>
    %cst_77 = arith.constant 9.99999996E-13 : f32
    %235 = vector.broadcast %cst_77 : f32 to vector<24x1xf32>
    %236 = arith.maximumf %234, %235 : vector<24x1xf32>
    %237 = math.rsqrt %236 : vector<24x1xf32>
    %238 = vector.broadcast %237 : vector<24x1xf32> to vector<24x128xf32>
    %239 = arith.mulf %223, %238 : vector<24x128xf32>
    %c0_78 = arith.constant 0 : index
    %c0_79 = arith.constant 0 : index
    %c0_80 = arith.constant 0 : index
    %240 = vector.load %arg9[%c0_78, %c0_79, %c0_80] : memref<1x32x128xf32, #tpu.memory_space<vmem>>, vector<1x32x128xf32>
    %241 = vector.shape_cast %240 : vector<1x32x128xf32> to vector<32x128xf32>
    %242 = vector.shape_cast %231 : vector<32x128xf32> to vector<1x32x128xf32>
    tpu.vector_store %arg9[%c0_78, %c0_79, %c0_80], %242 {strides = array<i32>} : memref<1x32x128xf32, #tpu.memory_space<vmem>>, vector<1x32x128xf32>,
    %c0_81 = arith.constant 0 : index
    %c0_82 = arith.constant 0 : index
    %c0_83 = arith.constant 0 : index
    %243 = vector.load %arg10[%c0_81, %c0_82, %c0_83] : memref<1x24x128xf32, #tpu.memory_space<vmem>>, vector<1x24x128xf32>
    %244 = vector.shape_cast %243 : vector<1x24x128xf32> to vector<24x128xf32>
    %245 = vector.shape_cast %239 : vector<24x128xf32> to vector<1x24x128xf32>
    tpu.vector_store %arg10[%c0_81, %c0_82, %c0_83], %245 {strides = array<i32>} : memref<1x24x128xf32, #tpu.memory_space<vmem>>, vector<1x24x128xf32>,
    %246 = arith.truncf %239 : vector<24x128xf32> to vector<24x128xbf16>
    %247 = arith.truncf %231 : vector<32x128xf32> to vector<32x128xbf16>
    %248 = tpu.transpose %247, [1, 0] : vector<32x128xbf16> -> vector<128x32xbf16>
    %cst_84 = arith.constant dense<0.000000e+00> : vector<24x32xf32>
    %249 = tpu.matmul %246, %248, %cst_84 {dimension_numbers = #tpu.dot_dimension_numbers<[1], [0], [0], [1], [0, 0, 1, 1], [], []>} : vector<24x128xbf16>, vector<128x32xbf16>, vector<24x32xf32> -> vector<24x32xf32>
    %250 = arith.mulf %239, %239 : vector<24x128xf32>
    %cst_85 = arith.constant dense<0.000000e+00> : vector<24xf32>
    %251 = vector.multi_reduction <add>, %250, %cst_85 [1] : vector<24x128xf32> to vector<24xf32>
    %252 = vector.shape_cast %251 : vector<24xf32> to vector<24x1xf32>
    %253 = arith.mulf %231, %231 : vector<32x128xf32>
    %cst_86 = arith.constant dense<0.000000e+00> : vector<32xf32>
    %254 = vector.multi_reduction <add>, %253, %cst_86 [1] : vector<32x128xf32> to vector<32xf32>
    %255 = vector.shape_cast %254 : vector<32xf32> to vector<32x1xf32>
    %256 = tpu.transpose %255, [1, 0] : vector<32x1xf32> -> vector<1x32xf32>
    %257 = vector.broadcast %252 : vector<24x1xf32> to vector<24x32xf32>
    %258 = vector.broadcast %256 : vector<1x32xf32> to vector<24x32xf32>
    %259 = arith.addf %257, %258 : vector<24x32xf32>
    %cst_87 = arith.constant 2.000000e+00 : f32
    %260 = vector.broadcast %cst_87 : f32 to vector<24x32xf32>
    %261 = arith.mulf %260, %249 : vector<24x32xf32>
    %262 = arith.subf %259, %261 : vector<24x32xf32>
    %cst_88 = arith.constant 0.000000e+00 : f32
    %263 = vector.broadcast %cst_88 : f32 to vector<24x32xf32>
    %264 = arith.maximumf %262, %263 : vector<24x32xf32>
    %265 = math.sqrt %264 : vector<24x32xf32>
    %266 = tpu.iota {dimensions = array<i32: 0>} : vector<24x32xi32>
    %267 = tpu.iota {dimensions = array<i32: 1>} : vector<24x32xi32>
    %c0_89 = arith.constant 0 : index
    %c0_90 = arith.constant 0 : index
    %268 = memref.load %arg7[%c0_89, %c0_90] : memref<1x1xf32, #tpu.memory_space<smem>>
    %c23_i32 = arith.constant 23 : i32
    %269 = vector.broadcast %c23_i32 : i32 to vector<24x32xi32>
    %270 = arith.cmpi eq, %266, %269 : vector<24x32xi32>
    %c31_i32 = arith.constant 31 : i32
    %271 = vector.broadcast %c31_i32 : i32 to vector<24x32xi32>
    %272 = arith.cmpi eq, %267, %271 : vector<24x32xi32>
    %273 = arith.ori %270, %272 : vector<24x32xi1>
    %274 = vector.broadcast %268 : f32 to vector<24x32xf32>
    %275 = arith.select %273, %274, %265 : vector<24x32xi1>, vector<24x32xf32>
    %cst_91 = arith.constant -1.000000e+01 : f32
    %276 = vector.broadcast %cst_91 : f32 to vector<24x32xf32>
    %277 = arith.mulf %275, %276 : vector<24x32xf32>
    %278 = arith.sitofp %1 : i32 to f32
    %279 = arith.sitofp %3 : i32 to f32
    %280 = arith.addf %278, %279 : f32
    %281 = math.log %280 : f32
    %282 = tpu.iota {dimensions = array<i32: 0>} : vector<24x1xi32>
    %283 = tpu.iota {dimensions = array<i32: 1>} : vector<1x32xi32>
    %c23_i32_92 = arith.constant 23 : i32
    %284 = vector.broadcast %c23_i32_92 : i32 to vector<24x1xi32>
    %285 = arith.cmpi eq, %282, %284 : vector<24x1xi32>
    %286 = math.log %278 : f32
    %287 = arith.subf %286, %281 : f32
    %288 = vector.broadcast %3 : i32 to vector<24x1xi32>
    %289 = arith.cmpi slt, %282, %288 : vector<24x1xi32>
    %cst_93 = arith.constant 0.000000e+00 : f32
    %290 = arith.subf %cst_93, %281 : f32
    %cst_94 = arith.constant -1.000000e+30 : f32
    %291 = vector.broadcast %290 : f32 to vector<24x1xf32>
    %292 = vector.broadcast %cst_94 : f32 to vector<24x1xf32>
    %293 = arith.select %289, %291, %292 : vector<24x1xi1>, vector<24x1xf32>
    %294 = vector.broadcast %287 : f32 to vector<24x1xf32>
    %295 = arith.select %285, %294, %293 : vector<24x1xi1>, vector<24x1xf32>
    %c31_i32_95 = arith.constant 31 : i32
    %296 = vector.broadcast %c31_i32_95 : i32 to vector<1x32xi32>
    %297 = arith.cmpi eq, %283, %296 : vector<1x32xi32>
    %298 = math.log %279 : f32
    %299 = arith.subf %298, %281 : f32
    %300 = vector.broadcast %1 : i32 to vector<1x32xi32>
    %301 = arith.cmpi slt, %283, %300 : vector<1x32xi32>
    %cst_96 = arith.constant 0.000000e+00 : f32
    %302 = arith.subf %cst_96, %281 : f32
    %cst_97 = arith.constant -1.000000e+30 : f32
    %303 = vector.broadcast %302 : f32 to vector<1x32xf32>
    %304 = vector.broadcast %cst_97 : f32 to vector<1x32xf32>
    %305 = arith.select %301, %303, %304 : vector<1x32xi1>, vector<1x32xf32>
    %306 = vector.broadcast %299 : f32 to vector<1x32xf32>
    %307 = arith.select %297, %306, %305 : vector<1x32xi1>, vector<1x32xf32>
    %cst_98 = arith.constant 0.000000e+00 : f32
    %308 = vector.broadcast %cst_98 : f32 to vector<24x1xf32>
    %309 = vector.broadcast %1 : i32 to vector<1x32xi32>
    %310 = arith.cmpi slt, %283, %309 : vector<1x32xi32>
    %c31_i32_99 = arith.constant 31 : i32
    %311 = vector.broadcast %c31_i32_99 : i32 to vector<1x32xi32>
    %312 = arith.cmpi eq, %283, %311 : vector<1x32xi32>
    %313 = arith.ori %310, %312 : vector<1x32xi1>
    %cst_100 = arith.constant 0.000000e+00 : f32
    %cst_101 = arith.constant -1.000000e+30 : f32
    %314 = vector.broadcast %cst_100 : f32 to vector<1x32xf32>
    %315 = vector.broadcast %cst_101 : f32 to vector<1x32xf32>
    %316 = arith.select %313, %314, %315 : vector<1x32xi1>, vector<1x32xf32>
    %c0_i32 = arith.constant 0 : i32
    %c15_i32 = arith.constant 15 : i32
    %317 = arith.addi %c0_i32, %c15_i32 : i32
    %c1_i32 = arith.constant 1 : i32
    %318:2 = scf.for %arg11 = %c0_i32 to %317 step %c1_i32 iter_args(%arg12 = %308, %arg13 = %316) -> (vector<24x1xf32>, vector<1x32xf32>)  : i32 {
      %327 = vector.broadcast %arg13 : vector<1x32xf32> to vector<24x32xf32>
      %328 = arith.addf %277, %327 : vector<24x32xf32>
      %cst_105 = arith.constant dense<0xFF800000> : vector<24xf32>
      %329 = vector.multi_reduction <maximumf>, %328, %cst_105 [1] : vector<24x32xf32> to vector<24xf32>
      %330 = vector.shape_cast %329 : vector<24xf32> to vector<24x1xf32>
      %331 = vector.broadcast %330 : vector<24x1xf32> to vector<24x32xf32>
      %332 = arith.subf %328, %331 : vector<24x32xf32>
      %333 = math.exp %332 : vector<24x32xf32>
      %cst_106 = arith.constant dense<0.000000e+00> : vector<24xf32>
      %334 = vector.multi_reduction <add>, %333, %cst_106 [1] : vector<24x32xf32> to vector<24xf32>
      %335 = vector.shape_cast %334 : vector<24xf32> to vector<24x1xf32>
      %336 = math.log %335 : vector<24x1xf32>
      %337 = arith.addf %330, %336 : vector<24x1xf32>
      %338 = arith.subf %295, %337 : vector<24x1xf32>
      %339 = vector.broadcast %338 : vector<24x1xf32> to vector<24x32xf32>
      %340 = arith.addf %277, %339 : vector<24x32xf32>
      %cst_107 = arith.constant dense<0xFF800000> : vector<32xf32>
      %341 = vector.multi_reduction <maximumf>, %340, %cst_107 [0] : vector<24x32xf32> to vector<32xf32>
      %342 = vector.shape_cast %341 : vector<32xf32> to vector<1x32xf32>
      %343 = vector.broadcast %342 : vector<1x32xf32> to vector<24x32xf32>
      %344 = arith.subf %340, %343 : vector<24x32xf32>
      %345 = math.exp %344 : vector<24x32xf32>
      %cst_108 = arith.constant dense<0.000000e+00> : vector<32xf32>
      %346 = vector.multi_reduction <add>, %345, %cst_108 [0] : vector<24x32xf32> to vector<32xf32>
      %347 = vector.shape_cast %346 : vector<32xf32> to vector<1x32xf32>
      %348 = math.log %347 : vector<1x32xf32>
      %349 = arith.addf %342, %348 : vector<1x32xf32>
      %350 = arith.subf %307, %349 : vector<1x32xf32>
      %351 = vector.broadcast %350 : vector<1x32xf32> to vector<24x32xf32>
      %352 = arith.addf %277, %351 : vector<24x32xf32>
      %cst_109 = arith.constant dense<0xFF800000> : vector<24xf32>
      %353 = vector.multi_reduction <maximumf>, %352, %cst_109 [1] : vector<24x32xf32> to vector<24xf32>
      %354 = vector.shape_cast %353 : vector<24xf32> to vector<24x1xf32>
      %355 = vector.broadcast %354 : vector<24x1xf32> to vector<24x32xf32>
      %356 = arith.subf %352, %355 : vector<24x32xf32>
      %357 = math.exp %356 : vector<24x32xf32>
      %cst_110 = arith.constant dense<0.000000e+00> : vector<24xf32>
      %358 = vector.multi_reduction <add>, %357, %cst_110 [1] : vector<24x32xf32> to vector<24xf32>
      %359 = vector.shape_cast %358 : vector<24xf32> to vector<24x1xf32>
      %360 = math.log %359 : vector<24x1xf32>
      %361 = arith.addf %354, %360 : vector<24x1xf32>
      %362 = arith.subf %295, %361 : vector<24x1xf32>
      %363 = vector.broadcast %362 : vector<24x1xf32> to vector<24x32xf32>
      %364 = arith.addf %277, %363 : vector<24x32xf32>
      %cst_111 = arith.constant dense<0xFF800000> : vector<32xf32>
      %365 = vector.multi_reduction <maximumf>, %364, %cst_111 [0] : vector<24x32xf32> to vector<32xf32>
      %366 = vector.shape_cast %365 : vector<32xf32> to vector<1x32xf32>
      %367 = vector.broadcast %366 : vector<1x32xf32> to vector<24x32xf32>
      %368 = arith.subf %364, %367 : vector<24x32xf32>
      %369 = math.exp %368 : vector<24x32xf32>
      %cst_112 = arith.constant dense<0.000000e+00> : vector<32xf32>
      %370 = vector.multi_reduction <add>, %369, %cst_112 [0] : vector<24x32xf32> to vector<32xf32>
      %371 = vector.shape_cast %370 : vector<32xf32> to vector<1x32xf32>
      %372 = math.log %371 : vector<1x32xf32>
      %373 = arith.addf %366, %372 : vector<1x32xf32>
      %374 = arith.subf %307, %373 : vector<1x32xf32>
      scf.yield %362, %374 : vector<24x1xf32>, vector<1x32xf32>
    }
    %319 = vector.broadcast %318#0 : vector<24x1xf32> to vector<24x32xf32>
    %320 = arith.addf %277, %319 : vector<24x32xf32>
    %321 = vector.broadcast %318#1 : vector<1x32xf32> to vector<24x32xf32>
    %322 = arith.addf %320, %321 : vector<24x32xf32>
    %323 = math.exp %322 : vector<24x32xf32>
    %c0_102 = arith.constant 0 : index
    %c0_103 = arith.constant 0 : index
    %c0_104 = arith.constant 0 : index
    %324 = vector.load %arg8[%c0_102, %c0_103, %c0_104] : memref<1x24x32xf32, #tpu.memory_space<vmem>>, vector<1x24x32xf32>
    %325 = vector.shape_cast %324 : vector<1x24x32xf32> to vector<24x32xf32>
    %326 = vector.shape_cast %323 : vector<24x32xf32> to vector<1x24x32xf32>
    tpu.vector_store %arg8[%c0_102, %c0_103, %c0_104], %326 {strides = array<i32>} : memref<1x24x32xf32, #tpu.memory_space<vmem>>, vector<1x24x32xf32>,
    return
  }
  func.func @transform_0(%arg0: i32, %arg1: memref<2xi32, #tpu.memory_space<smem>>, %arg2: memref<2xi32, #tpu.memory_space<smem>>) -> (i32, i32, i32) {
    %c0_i32 = arith.constant 0 : i32
    %c0_i32_0 = arith.constant 0 : i32
    %c0_i32_1 = arith.constant 0 : i32
    return %arg0, %c0_i32, %c0_i32_0 : i32, i32, i32
  }
  func.func @transform_1(%arg0: i32, %arg1: memref<2xi32, #tpu.memory_space<smem>>, %arg2: memref<2xi32, #tpu.memory_space<smem>>) -> (i32, i32, i32) {
    %c0_i32 = arith.constant 0 : i32
    %c0_i32_0 = arith.constant 0 : i32
    %c0_i32_1 = arith.constant 0 : i32
    return %arg0, %c0_i32, %c0_i32_0 : i32, i32, i32
  }
  func.func @transform_2(%arg0: i32, %arg1: memref<2xi32, #tpu.memory_space<smem>>, %arg2: memref<2xi32, #tpu.memory_space<smem>>) -> (i32, i32, i32) {
    %c0_i32 = arith.constant 0 : i32
    %c0_i32_0 = arith.constant 0 : i32
    %c0_i32_1 = arith.constant 0 : i32
    %c0_i32_2 = arith.constant 0 : i32
    return %c0_i32, %c0_i32_0, %c0_i32_1 : i32, i32, i32
  }
  func.func @transform_3(%arg0: i32, %arg1: memref<2xi32, #tpu.memory_space<smem>>, %arg2: memref<2xi32, #tpu.memory_space<smem>>) -> (i32, i32, i32) {
    %c0_i32 = arith.constant 0 : i32
    %c0_i32_0 = arith.constant 0 : i32
    %c0_i32_1 = arith.constant 0 : i32
    %c0_i32_2 = arith.constant 0 : i32
    return %c0_i32, %c0_i32_0, %c0_i32_1 : i32, i32, i32
  }
  func.func @transform_4(%arg0: i32, %arg1: memref<2xi32, #tpu.memory_space<smem>>, %arg2: memref<2xi32, #tpu.memory_space<smem>>) -> (i32, i32) {
    %c0_i32 = arith.constant 0 : i32
    %c0_i32_0 = arith.constant 0 : i32
    %c0_i32_1 = arith.constant 0 : i32
    return %c0_i32, %c0_i32_0 : i32, i32
  }
  func.func @transform_5(%arg0: i32, %arg1: memref<2xi32, #tpu.memory_space<smem>>, %arg2: memref<2xi32, #tpu.memory_space<smem>>) -> (i32, i32, i32) {
    %c0_i32 = arith.constant 0 : i32
    %c0_i32_0 = arith.constant 0 : i32
    %c0_i32_1 = arith.constant 0 : i32
    return %arg0, %c0_i32, %c0_i32_0 : i32, i32, i32
  }
  func.func @transform_6(%arg0: i32, %arg1: memref<2xi32, #tpu.memory_space<smem>>, %arg2: memref<2xi32, #tpu.memory_space<smem>>) -> (i32, i32, i32) {
    %c0_i32 = arith.constant 0 : i32
    %c0_i32_0 = arith.constant 0 : i32
    %c0_i32_1 = arith.constant 0 : i32
    return %arg0, %c0_i32, %c0_i32_0 : i32, i32, i32
  }
  func.func @transform_7(%arg0: i32, %arg1: memref<2xi32, #tpu.memory_space<smem>>, %arg2: memref<2xi32, #tpu.memory_space<smem>>) -> (i32, i32, i32) {
    %c0_i32 = arith.constant 0 : i32
    %c0_i32_0 = arith.constant 0 : i32
    %c0_i32_1 = arith.constant 0 : i32
    return %arg0, %c0_i32, %c0_i32_0 : i32, i32, i32
  }
}

module attributes {stable_mosaic.version = 11 : i64} {
  func.func @_cls_kernel(%arg0: memref<48x256xf32, #tpu.memory_space<vmem>>, %arg1: memref<256x128xbf16, #tpu.memory_space<vmem>>, %arg2: memref<1x128xf32, #tpu.memory_space<vmem>>, %arg3: memref<128x1xf32, #tpu.memory_space<vmem>>, %arg4: memref<1x1xf32, #tpu.memory_space<vmem>>, %arg5: memref<48x1xf32, #tpu.memory_space<vmem>>) attributes {dimension_semantics = [], scalar_prefetch = 0 : i64, scratch_operands = 0 : i64, tpu.core_type = #tpu.core_type<tc>} {
    %c0 = arith.constant 0 : index
    %c0_0 = arith.constant 0 : index
    %0 = vector.load %arg0[%c0, %c0_0] : memref<48x256xf32, #tpu.memory_space<vmem>>, vector<48x256xf32>
    %1 = arith.truncf %0 : vector<48x256xf32> to vector<48x256xbf16>
    %c0_1 = arith.constant 0 : index
    %c0_2 = arith.constant 0 : index
    %2 = vector.load %arg1[%c0_1, %c0_2] : memref<256x128xbf16, #tpu.memory_space<vmem>>, vector<256x128xbf16>
    %cst = arith.constant dense<0.000000e+00> : vector<48x128xf32>
    %3 = tpu.matmul %1, %2, %cst {dimension_numbers = #tpu.dot_dimension_numbers<[1], [0], [0], [1], [0, 0, 1, 1], [], []>} : vector<48x256xbf16>, vector<256x128xbf16>, vector<48x128xf32> -> vector<48x128xf32>
    %c0_3 = arith.constant 0 : index
    %c0_4 = arith.constant 0 : index
    %4 = vector.load %arg2[%c0_3, %c0_4] : memref<1x128xf32, #tpu.memory_space<vmem>>, vector<1x128xf32>
    %5 = vector.broadcast %4 : vector<1x128xf32> to vector<48x128xf32>
    %6 = arith.addf %3, %5 : vector<48x128xf32>
    %cst_5 = arith.constant 0.000000e+00 : f32
    %7 = vector.broadcast %cst_5 : f32 to vector<48x128xf32>
    %8 = arith.maximumf %6, %7 : vector<48x128xf32>
    %c0_6 = arith.constant 0 : index
    %c0_7 = arith.constant 0 : index
    %9 = vector.load %arg3[%c0_6, %c0_7] : memref<128x1xf32, #tpu.memory_space<vmem>>, vector<128x1xf32>
    %cst_8 = arith.constant dense<0.000000e+00> : vector<48x1xf32>
    %10 = tpu.matmul %8, %9, %cst_8 {dimension_numbers = #tpu.dot_dimension_numbers<[1], [0], [0], [1], [0, 0, 1, 1], [], []>} : vector<48x128xf32>, vector<128x1xf32>, vector<48x1xf32> -> vector<48x1xf32>
    %c0_9 = arith.constant 0 : index
    %c0_10 = arith.constant 0 : index
    %11 = vector.load %arg4[%c0_9, %c0_10] : memref<1x1xf32, #tpu.memory_space<vmem>>, vector<1x1xf32>
    %12 = vector.broadcast %11 : vector<1x1xf32> to vector<48x1xf32>
    %13 = arith.addf %10, %12 : vector<48x1xf32>
    %14 = arith.negf %13 : vector<48x1xf32>
    %15 = math.exp %14 : vector<48x1xf32>
    %cst_11 = arith.constant 1.000000e+00 : f32
    %16 = vector.broadcast %cst_11 : f32 to vector<48x1xf32>
    %17 = arith.addf %16, %15 : vector<48x1xf32>
    %18 = arith.divf %16, %17 : vector<48x1xf32>
    %c0_12 = arith.constant 0 : index
    %c0_13 = arith.constant 0 : index
    %19 = vector.load %arg5[%c0_12, %c0_13] : memref<48x1xf32, #tpu.memory_space<vmem>>, vector<48x1xf32>
    tpu.vector_store %arg5[%c0_12, %c0_13], %18 {strides = array<i32>} : memref<48x1xf32, #tpu.memory_space<vmem>>, vector<48x1xf32>,
    return
  }
}

</mosaic_0001>

<bundles_post_ra>
// kernel: forward_padded.5
= control target key start
LH: loop header
LB: loop body
LE: loop exit
PB: predicated region body
PF: predicated region fallthrough
CT: control target
= control target key end

     0   :  { %vm73_vm0 = vcmask 1042432   ;;  %vm60_vm1 = vcmask 23552   ;;  %vm207_vm2 = vcmask 523264   ;;  %s1099_s2 = inlined_call_operand.vmem [shape: f32[3,64], index: 2, kind: input, shape index: {}]   ;;  %s1100_s0 = inlined_call_operand.vmem [shape: f32[32,3], index: 0, kind: input, shape index: {}]   ;;  %s1101_s4 = inlined_call_operand.vmem [shape: bf16[64,64], index: 4, kind: input, shape index: {}]   ;;  %s1102_s8 = inlined_call_operand.vmem [shape: f32[3,64], index: 8, kind: input, shape index: {}]   ;;  %s1103_s6 = inlined_call_operand.vmem [shape: bf16[64,64], index: 6, kind: input, shape index: {}]   ;;  %s1104_s3 = inlined_call_operand.vmem [shape: f32[1,64], index: 3, kind: input, shape index: {}]   ;;  %s1105_s1 = inlined_call_operand.vmem [shape: f32[32,3], index: 1, kind: input, shape index: {}]   ;;  %s1106_s10 = inlined_call_operand.vmem [shape: bf16[64,64], index: 10, kind: input, shape index: {}]   ;;  %s1107_s5 = inlined_call_operand.vmem [shape: f32[1,64], index: 5, kind: input, shape index: {}]   ;;  %s1108_s9 = inlined_call_operand.vmem [shape: f32[1,64], index: 9, kind: input, shape index: {}]   ;;  %s1109_s12 = inlined_call_operand.vmem [shape: bf16[64,64], index: 12, kind: input, shape index: {}]   ;;  %s1110_s11 = inlined_call_operand.vmem [shape: f32[1,64], index: 11, kind: input, shape index: {}]   ;;  %s1111_s7 = inlined_call_operand.vmem [shape: f32[1,64], index: 7, kind: input, shape index: {}]   ;;  %s1112_s13 = inlined_call_operand.vmem [shape: f32[1,64], index: 13, kind: input, shape index: {}]   ;;  %s1113_s14 = inlined_call_operand.vmem [shape: f32[32,64], index: 14, kind: output, shape index: {}]  }
   0x1   :  { %v52_v0 = vld [vmem:[%s1099_s2] sm:$0x7]  ;;  %v49_v2 = vld [vmem:[%s1100_s0 + $0x8] sm:$0xff]  ;;  %v50_v3 = vld [vmem:[%s1100_s0 + $0x10] sm:$0xff] }
   0x2   :  { %v48_v1 = vld [vmem:[%s1100_s0] sm:$0xff]  ;;  %797 = vmatprep.subr.msk.mxu0 %vm73_vm0, %v52_v0  ;;  %v861_v4 = vld [vmem:[%s1101_s4 + $0x18] sm:$0xff]   ;;  %v862_v6 = vld [vmem:[%s1101_s4 + $0x10] sm:$0xff]  }
   0x3   :  { %799 = vmatprep.mubr.msk.f32.mxu0 %vm60_vm1, %v48_v1  ;;  %798 = vmatpush3.msk.msra.mxu0 %vm73_vm0, %v52_v0  ;;  %v51_v5 = vld [vmem:[%s1100_s0 + $0x18] sm:$0xff]  ;;  %v863_v7 = vld [vmem:[%s1101_s4 + $0x8] sm:$0xff]   ;;  %v864_v8 = vld [vmem:[%s1101_s4] sm:$0xff]  }
   0x4   :  { %800 = vmatmul.mubr.msk.f32.vlgmr.msra.gmra.mxu0 %vm60_vm1, %v49_v2  ;;  %805 = vmatprep.subr.bf16.mxu1 %v861_v4  ;;  %v371_v9 = vld [vmem:[%s1102_s8] sm:$0x7]  ;;  %v865_v10 = vld [vmem:[%s1103_s6 + $0x18] sm:$0xff]   ;;  %v368_v27 = vld [vmem:[%s1105_s1 + $0x8] sm:$0xff] }
   0x5   :  { %802 = vmatprep.mubr.msk.f32.mxu0 %vm60_vm1, %v50_v3  ;;  %806 = vmatpush3.bf16.msra.mxu1 %v861_v4  ;;  %v723_v11 = vld [vmem:[%s1104_s3] ss:$0 sm:$0xff]  ;;  %v369_v28 = vld [vmem:[%s1105_s1 + $0x10] sm:$0xff]  ;;  %v370_v29 = vld [vmem:[%s1105_s1 + $0x18] sm:$0xff] }
   0x6   :  { %807 = vmatprep.subr.bf16.mxu1 %v862_v6  ;;  %817 = vmatprep.subr.bf16.mxu0 %v865_v10  ;;  %v367_v26 = vld [vmem:[%s1105_s1] sm:$0xff]  ;;  %v866_v30 = vld [vmem:[%s1103_s6 + $0x10] sm:$0xff]   ;;  %v867_v31 = vld [vmem:[%s1103_s6 + $0x8] sm:$0xff]  }
   0x7   :  { %818 = vmatpush3.bf16.msra.mxu0 %v865_v10  ;;  %v868_v32 = vld [vmem:[%s1103_s6] sm:$0xff]   ;;  %v869_v33 = vld [vmem:[%s1106_s10 + $0x18] sm:$0xff]   ;;  %v870_v60 = vld [vmem:[%s1106_s10 + $0x10] sm:$0xff]  }
   0x8   :  { %803 = vmatmul.mubr.msk.f32.gmra.mxu0 %vm60_vm1, %v51_v5  ;;  %819 = vmatprep.subr.bf16.mxu0 %v866_v30  ;;  %v729_v35 = vld [vmem:[%s1107_s5] ss:$0 sm:$0xff]  ;;  %v871_v63 = vld [vmem:[%s1106_s10 + $0x8] sm:$0xff]  }
   0x9   :  { %808 = vmatpush3.bf16.msra.mxu1 %v862_v6  ;;  %v743_v42 = vld [vmem:[%s1108_s9] ss:$0 sm:$0xff] }
   0xa   :  { %809 = vmatprep.subr.bf16.mxu1 %v863_v7  ;;  %v872_v3 = vld [vmem:[%s1106_s10] sm:$0xff]  }
   0xb   :  { %820 = vmatpush3.bf16.msra.mxu0 %v866_v30  ;;  %v876_v10 = vld [vmem:[%s1109_s12] sm:$0xff]  }
   0xc   :  { %821 = vmatprep.subr.bf16.mxu0 %v867_v31 }
   0xd   :  { %810 = vmatpush3.bf16.msra.mxu1 %v863_v7  ;;  %v873_v7 = vld [vmem:[%s1109_s12 + $0x18] sm:$0xff]  }
   0xe   :  { %811 = vmatprep.subr.bf16.mxu1 %v864_v8 }
   0xf   :  { %822 = vmatpush3.bf16.msra.mxu0 %v867_v31 }
  0x10   :  { %823 = vmatprep.subr.bf16.mxu0 %v868_v32 }
  0x11   :  { %812 = vmatpush3.bf16.msra.mxu1 %v864_v8  ;;  %v874_v8 = vld [vmem:[%s1109_s12 + $0x10] sm:$0xff]  }
  0x12   :  { %829 = vmatprep.subr.msk.mxu1 %vm73_vm0, %v371_v9 }
  0x13   :  { %824 = vmatpush3.bf16.msra.mxu0 %v868_v32 }
  0x14   :  { %837 = vmatprep.subr.bf16.mxu0 %v869_v33 }
  0xc4   :  { %v801_v12 = vpop.f32.mrf.mxu0 }
  0xc5   :  { %v149_v13 = vadd.f32 %v801_v12, %v723_v11 }
  0xc6   :  { %v143_v14 = vpop.f32.mrf.mxu0 }
  0xc7   :  { %v144_v15 = vadd.f32 %v723_v11, %v143_v14  ;;  %v163_v17 = vmax.f32 %v149_v13, 0.0 }
  0xc8   :  { %v804_v16 = vpop.f32.mrf.mxu0 }
  0xc9   :  { %v162_v18 = vmax.f32 %v144_v15, 0.0  ;;  %v159_v19 = vadd.f32 %v804_v16, %v723_v11  ;;  %v749_v16 = vld [vmem:[%s1110_s11] ss:$0 sm:$0xff] }
  0xca   :  { %v153_v20 = vpop.f32.mrf.mxu0 }
  0xcb   :  { %v154_v21 = vadd.f32 %v723_v11, %v153_v20  ;;  %v166_v22 = vpack.c.bf16 %v163_v17, %v162_v18  ;;  %v165_v23 = vmax.f32 %v159_v19, 0.0 }
  0xcd   :  { %v164_v24 = vmax.f32 %v154_v21, 0.0  ;;  %813 = vmatprep.mubr.msk.bf16.mxu1 %vm207_vm2, %v166_v22 }
  0xcf   :  { %v167_v25 = vpack.c.bf16 %v165_v23, %v164_v24 }
  0xd1   :  { %814 = vmatmul.mubr.msk.bf16.vlgmr.msra.gmra.mxu1 %vm207_vm2, %v167_v25 }
  0xd2   :  { %830 = vmatpush3.msk.msra.mxu1 %vm73_vm0, %v371_v9  ;;  %831 = vmatprep.mubr.msk.f32.mxu1 %vm60_vm1, %v367_v26  ;;  %v875_v9 = vld [vmem:[%s1109_s12 + $0x8] sm:$0xff]  }
  0xd3   :  { %849 = vmatprep.subr.bf16.mxu1 %v873_v7 }
  0xd9   :  { %832 = vmatmul.mubr.msk.f32.vlgmr.msra.gmra.mxu1 %vm60_vm1, %v368_v27 }
  0xda   :  { %834 = vmatprep.mubr.msk.f32.mxu1 %vm60_vm1, %v369_v28  ;;  %850 = vmatpush3.bf16.msra.mxu1 %v873_v7 }
  0xdb   :  { %851 = vmatprep.subr.bf16.mxu1 %v874_v8 }
  0xdd   :  { %835 = vmatmul.mubr.msk.f32.gmra.mxu1 %vm60_vm1, %v370_v29 }
  0xde   :  { %852 = vmatpush3.bf16.msra.mxu1 %v874_v8 }
  0xdf   :  { %853 = vmatprep.subr.bf16.mxu1 %v875_v9 }
  0xe2   :  { %854 = vmatpush3.bf16.msra.mxu1 %v875_v9 }
  0xe3   :  { %855 = vmatprep.subr.bf16.mxu1 %v876_v10 }
  0xe6   :  { %856 = vmatpush3.bf16.msra.mxu1 %v876_v10 }
 0x191   :  { %v815_v34 = vpop.f32.mrf.mxu1 }
 0x192   :  { %v257_v38 = vadd.f32 %v815_v34, %v729_v35  ;;  %v736_v34 = vld [vmem:[%s1111_s7] ss:$0 sm:$0xff] }
 0x193   :  { %v248_v36 = vpop.f32.mrf.mxu1 }
 0x194   :  { %v249_v37 = vadd.f32 %v729_v35, %v248_v36  ;;  %v265_v46 = vmax.f32 %v257_v38, 0.0 }
 0x195   :  { %v816_v39 = vpop.f32.mrf.mxu1 }
 0x196   :  { %v260_v40 = vadd.f32 %v816_v39, %v729_v35  ;;  %v263_v43 = vmax.f32 %v249_v37, 0.0  ;;  %v269_v56 = vadd.f32 %v265_v46, %v164_v24 }
 0x197   :  { %v251_v41 = vpop.f32.mrf.mxu1 }
 0x198   :  { %v266_v44 = vmax.f32 %v260_v40, 0.0  ;;  %v252_v45 = vadd.f32 %v729_v35, %v251_v41  ;;  %v267_v52 = vadd.f32 %v263_v43, %v162_v18  ;;  %v756_v35 = vld [vmem:[%s1112_s13] ss:$0 sm:$0xff] }
 0x199   :  { %v833_v47 = vpop.f32.mrf.mxu1 }
 0x19a   :  { %v264_v48 = vmax.f32 %v252_v45, 0.0  ;;  %v1040_v49 = vadd.f32 %v833_v47, %v743_v42  ;;  %v270_v50 = vadd.f32 %v266_v44, %v165_v23 }
 0x19b   :  { %v460_v51 = vpop.f32.mrf.mxu1 }
 0x19c   :  { %v268_v53 = vadd.f32 %v264_v48, %v163_v17  ;;  %v480_v54 = vmax.f32 %v1040_v49, 0.0  ;;  %v461_v55 = vadd.f32 %v743_v42, %v460_v51  ;;  %v272_v59 = vpack.c.bf16 %v270_v50, %v269_v56 }
 0x19d   :  { %v836_v62 = vpop.f32.mrf.mxu1 }
 0x19e   :  { %v271_v57 = vpack.c.bf16 %v268_v53, %v267_v52  ;;  %v479_v58 = vmax.f32 %v461_v55, 0.0  ;;  %v476_v1 = vadd.f32 %v836_v62, %v743_v42 }
 0x19f   :  { %v470_v0 = vpop.f32.mrf.mxu1 }
 0x1a0   :  { %825 = vmatprep.mubr.msk.bf16.mxu0 %vm207_vm2, %v271_v57  ;;  %v483_v61 = vpack.c.bf16 %v480_v54, %v479_v58  ;;  %v471_v2 = vadd.f32 %v743_v42, %v470_v0  ;;  %v482_v4 = vmax.f32 %v476_v1, 0.0 }
 0x1a1   :  { %826 = vmatmul.mubr.msk.bf16.vlgmr.msra.gmra.mxu0 %vm207_vm2, %v272_v59 }
 0x1a2   :  { %838 = vmatpush3.bf16.msra.mxu0 %v869_v33  ;;  %845 = vmatprep.mubr.msk.bf16.mxu0 %vm207_vm2, %v483_v61  ;;  %v481_v5 = vmax.f32 %v471_v2, 0.0 }
 0x1a3   :  { %839 = vmatprep.subr.bf16.mxu0 %v870_v60 }
 0x1a4   :  { %v484_v6 = vpack.c.bf16 %v482_v4, %v481_v5 }
 0x1a6   :  { %840 = vmatpush3.bf16.msra.mxu0 %v870_v60 }
 0x1a7   :  { %841 = vmatprep.subr.bf16.mxu0 %v871_v63 }
 0x1aa   :  { %842 = vmatpush3.bf16.msra.mxu0 %v871_v63 }
 0x1ab   :  { %843 = vmatprep.subr.bf16.mxu0 %v872_v3 }
 0x1ae   :  { %844 = vmatpush3.bf16.msra.mxu0 %v872_v3 }
 0x1b1   :  { %846 = vmatmul.mubr.msk.bf16.vlgmr.msra.gmra.mxu0 %vm207_vm2, %v484_v6 }
 0x261   :  { %v827_v11 = vpop.f32.mrf.mxu0 }
 0x262   :  { %v361_v37 = vadd.f32 %v827_v11, %v736_v34 }
 0x263   :  { %v352_v12 = vpop.f32.mrf.mxu0 }
 0x264   :  { %v353_v40 = vadd.f32 %v736_v34, %v352_v12 }
 0x265   :  { %v828_v13 = vpop.f32.mrf.mxu0 }
 0x266   :  { %v364_v44 = vadd.f32 %v828_v13, %v736_v34 }
 0x267   :  { %v355_v14 = vpop.f32.mrf.mxu0 }
 0x268   :  { %v356_v48 = vadd.f32 %v736_v34, %v355_v14 }
 0x271   :  { %v847_v15 = vpop.f32.mrf.mxu0 }
 0x272   :  { %v573_v19 = vadd.f32 %v847_v15, %v749_v16 }
 0x273   :  { %v564_v17 = vpop.f32.mrf.mxu0 }
 0x274   :  { %v565_v18 = vadd.f32 %v749_v16, %v564_v17  ;;  %v581_v26 = vmax.f32 %v573_v19, 0.0 }
 0x275   :  { %v848_v20 = vpop.f32.mrf.mxu0 }
 0x276   :  { %v576_v21 = vadd.f32 %v848_v20, %v749_v16  ;;  %v579_v23 = vmax.f32 %v565_v18, 0.0  ;;  %v585_v31 = vadd.f32 %v581_v26, %v481_v5 }
 0x277   :  { %v567_v22 = vpop.f32.mrf.mxu0 }
 0x278   :  { %v582_v24 = vmax.f32 %v576_v21, 0.0  ;;  %v568_v25 = vadd.f32 %v749_v16, %v567_v22  ;;  %v583_v29 = vadd.f32 %v579_v23, %v479_v58 }
 0x27a   :  { %v580_v27 = vmax.f32 %v568_v25, 0.0  ;;  %v586_v28 = vadd.f32 %v582_v24, %v482_v4 }
 0x27c   :  { %v584_v30 = vadd.f32 %v580_v27, %v480_v54  ;;  %v588_v33 = vpack.c.bf16 %v586_v28, %v585_v31 }
 0x27e   :  { %v587_v32 = vpack.c.bf16 %v584_v30, %v583_v29 }
 0x280   :  { %857 = vmatprep.mubr.msk.bf16.mxu1 %vm207_vm2, %v587_v32 }
 0x281   :  { %858 = vmatmul.mubr.msk.bf16.vlgmr.msra.gmra.mxu1 %vm207_vm2, %v588_v33 }
 0x341   :  { %v859_v36 = vpop.f32.mrf.mxu1 }
 0x342   :  { %v677_v38 = vadd.f32 %v859_v36, %v756_v35 }
 0x343   :  { %v668_v39 = vpop.f32.mrf.mxu1 }
 0x344   :  { %v685_v41 = vadd.f32 %v677_v38, %v361_v37  ;;  %v669_v42 = vadd.f32 %v756_v35, %v668_v39 }
 0x345   :  { %v860_v43 = vpop.f32.mrf.mxu1 }
 0x346   :  { %v683_v45 = vadd.f32 %v669_v42, %v353_v40  ;;  %v680_v46 = vadd.f32 %v860_v43, %v756_v35  ;;  %v689_v47 = vmul.f32 %v685_v41, %v685_v41 }
 0x347   :  { %v671_v49 = vpop.f32.mrf.mxu1 }
 0x348   :  { %v686_v50 = vadd.f32 %v680_v46, %v364_v44  ;;  %v672_v51 = vadd.f32 %v756_v35, %v671_v49  ;;  %v697_v52 = vsel %vm207_vm2, %v689_v47, 0.0  ;;  %v687_v53 = vmul.f32 %v683_v45, %v683_v45 }
 0x349   :  { %698 = vadd.xlane.f32.xlu1 %v697_v52 }
 0x34a   :  { %v684_v54 = vadd.f32 %v672_v51, %v356_v48  ;;  %v691_v55 = vsel %vm207_vm2, %v687_v53, 0.0  ;;  %v690_v56 = vmul.f32 %v686_v50, %v686_v50 }
 0x34b   :  { %692 = vadd.xlane.f32.xlu0 %v691_v55 }
 0x34c   :  { %v700_v57 = vsel %vm207_vm2, %v690_v56, 0.0  ;;  %v688_v58 = vmul.f32 %v684_v54, %v684_v54 }
 0x34d   :  { %701 = vadd.xlane.f32.xlu1 %v700_v57 }
 0x34e   :  { %v694_v59 = vsel %vm207_vm2, %v688_v58, 0.0 }
 0x34f   :  { %695 = vadd.xlane.f32.xlu0 %v694_v59 }
 0x3d2   :  { %v699_v60 = vpop.xlane.xlu1 %698 }
 0x3d3   :  { %v705_v61 = vmax.f32 %v699_v60, 1e-12 }
 0x3d4   :  { %v693_v62 = vpop.xlane.xlu0 %692 }
 0x3d5   :  { %877 = vrsqrt.f32 %v705_v61  ;;  %v703_v63 = vmax.f32 %v693_v62, 1e-12 }
 0x3d6   :  { %v702_v0 = vpop.xlane.xlu1 %701 }
 0x3d7   :  { %879 = vrsqrt.f32 %v703_v63  ;;  %v706_v1 = vmax.f32 %v702_v0, 1e-12 }
 0x3d8   :  { %v696_v2 = vpop.xlane.xlu0 %695 }
 0x3d9   :  { %881 = vrsqrt.f32 %v706_v1  ;;  %v704_v3 = vmax.f32 %v696_v2, 1e-12 }
 0x3db   :  { %883 = vrsqrt.f32 %v704_v3 }
 0x3e2   :  { %v878_v4 = vpop.eup %877 }
 0x3e3   :  { %v713_v5 = vmul.f32 %v878_v4, %v685_v41 }
 0x3e4   :  { %v880_v6 = vpop.eup %879 }
 0x3e5   :  { %717 = vst.msk [vmem:[%s1113_s14 + $0x10] sm:$0xff] %vm207_vm2, %v713_v5  ;;  %v711_v7 = vmul.f32 %v880_v6, %v683_v45 }
 0x3e6   :  { %v882_v8 = vpop.eup %881 }
 0x3e7   :  { %715 = vst.msk [vmem:[%s1113_s14] sm:$0xff] %vm207_vm2, %v711_v7  ;;  %v714_v9 = vmul.f32 %v882_v8, %v686_v50 }
 0x3e8   :  { %v884_v10 = vpop.eup %883 }
 0x3e9   :  { %718 = vst.msk [vmem:[%s1113_s14 + $0x18] sm:$0xff] %vm207_vm2, %v714_v9  ;;  %v712_v11 = vmul.f32 %v884_v10, %v684_v54 }
 0x3eb   :  { %716 = vst.msk [vmem:[%s1113_s14 + $0x8] sm:$0xff] %vm207_vm2, %v712_v11 }

// kernel: forward_padded.4
= control target key start
LH: loop header
LB: loop body
LE: loop exit
PB: predicated region body
PF: predicated region fallthrough
CT: control target
= control target key end

     0   :  { %vm77_vm0 = vcmask 1041408   ;;  %vm61_vm1 = vcmask 15360   ;;  %v1030_v0 = vmov 0.0   ;;  %vm1031_vm2 = vmmov 0   ;;  %s1367_s2 = inlined_call_operand.vmem [shape: f32[2,64], index: 2, kind: input, shape index: {}]   ;;  %s1368_s0 = inlined_call_operand.vmem [shape: f32[40,2], index: 0, kind: input, shape index: {}]   ;;  %s1369_s4 = inlined_call_operand.vmem [shape: bf16[64,64], index: 4, kind: input, shape index: {}]   ;;  %s1370_s6 = inlined_call_operand.vmem [shape: bf16[64,64], index: 6, kind: input, shape index: {}]   ;;  %s1371_s3 = inlined_call_operand.vmem [shape: f32[1,64], index: 3, kind: input, shape index: {}]   ;;  %s1372_s8 = inlined_call_operand.vmem [shape: f32[3,64], index: 8, kind: input, shape index: {}]   ;;  %s1373_s1 = inlined_call_operand.vmem [shape: f32[40,3], index: 1, kind: input, shape index: {}]   ;;  %s1374_s10 = inlined_call_operand.vmem [shape: bf16[64,64], index: 10, kind: input, shape index: {}]   ;;  %s1375_s5 = inlined_call_operand.vmem [shape: f32[1,64], index: 5, kind: input, shape index: {}]   ;;  %s1376_s9 = inlined_call_operand.vmem [shape: f32[1,64], index: 9, kind: input, shape index: {}]   ;;  %s1377_s12 = inlined_call_operand.vmem [shape: bf16[64,64], index: 12, kind: input, shape index: {}]   ;;  %s1378_s11 = inlined_call_operand.vmem [shape: f32[1,64], index: 11, kind: input, shape index: {}]   ;;  %s1379_s7 = inlined_call_operand.vmem [shape: f32[1,64], index: 7, kind: input, shape index: {}]   ;;  %s1380_s13 = inlined_call_operand.vmem [shape: f32[1,64], index: 13, kind: input, shape index: {}]   ;;  %s1381_s14 = inlined_call_operand.vmem [shape: f32[40,64], index: 14, kind: output, shape index: {}]  }
   0x1   :  { %888 = vmatprep.subr.mxu0 %v1030_v0  ;;  %v53_v1 = vld [vmem:[%s1367_s2] sm:$0x3]  ;;  %890 = vmatprep.mubr.msk.f32.mxu0 %vm1031_vm2, %v1030_v0  ;;  %v1004_v3 = vld [vmem:[%s1369_s4 + $0x18] sm:$0xff]   ;;  %v49_v4 = vld [vmem:[%s1368_s0 + $0x8] sm:$0xff]  ;;  %vm218_vm3 = vcmask 523264   ;;  %vm430_vm4 = vcmask 1042432  }
   0x2   :  { %v48_v2 = vld [vmem:[%s1368_s0] sm:$0xff]  ;;  %889 = vmatpush3.msk.msra.mxu0 %vm77_vm0, %v53_v1  ;;  %905 = vmatprep.subr.bf16.mxu1 %v1030_v0  ;;  %v50_v5 = vld [vmem:[%s1368_s0 + $0x10] sm:$0xff]  ;;  %v51_v6 = vld [vmem:[%s1368_s0 + $0x18] sm:$0xff]  ;;  %vm414_vm5 = vcmask 23552  }
   0x3   :  { %891 = vmatmul.mubr.msk.f32.vlgmr.msra.gmra.mxu0 %vm61_vm1, %v48_v2  ;;  %913 = vmatprep.mubr.msk.bf16.mxu1 %vm1031_vm2, %v1030_v0  ;;  %v52_v7 = vld [vmem:[%s1368_s0 + $0x20] sm:$0xff]  ;;  %v1005_v8 = vld [vmem:[%s1369_s4 + $0x10] sm:$0xff]   ;;  %v1006_v9 = vld [vmem:[%s1369_s4 + $0x8] sm:$0xff]  }
   0x4   :  { %893 = vmatprep.mubr.msk.f32.mxu0 %vm1031_vm2, %v1030_v0  ;;  %925 = vmatprep.subr.bf16.mxu0 %v1030_v0  ;;  %v1007_v10 = vld [vmem:[%s1369_s4] sm:$0xff]   ;;  %v1008_v11 = vld [vmem:[%s1370_s6 + $0x18] sm:$0xff]   ;;  %v1009_v12 = vld [vmem:[%s1370_s6 + $0x10] sm:$0xff]  }
   0x5   :  { %906 = vmatpush3.bf16.msra.mxu1 %v1004_v3  ;;  %926 = vmatpush3.bf16.msra.mxu0 %v1008_v11  ;;  %v802_v13 = vld [vmem:[%s1371_s3] ss:$0 sm:$0xff]  ;;  %v402_v39 = vld [vmem:[%s1373_s1 + $0x8] sm:$0xff]  ;;  %v403_v40 = vld [vmem:[%s1373_s1 + $0x10] sm:$0xff] }
   0x6   :  { %907 = vmatprep.subr.bf16.mxu1 %v1030_v0  ;;  %927 = vmatprep.subr.bf16.mxu0 %v1030_v0  ;;  %v406_v24 = vld [vmem:[%s1372_s8] sm:$0x7]  ;;  %v404_v41 = vld [vmem:[%s1373_s1 + $0x18] sm:$0xff]  ;;  %v1010_v43 = vld [vmem:[%s1370_s6 + $0x8] sm:$0xff]  }
   0x7   :  { %894 = vmatmul.mubr.msk.f32.gmra.mxu0 %vm61_vm1, %v49_v4  ;;  %v401_v38 = vld [vmem:[%s1373_s1] sm:$0xff]  ;;  %v1012_v59 = vld [vmem:[%s1374_s10 + $0x18] sm:$0xff]   ;;  %v1013_v2 = vld [vmem:[%s1374_s10 + $0x10] sm:$0xff]  }
   0x8   :  { %896 = vmatprep.mubr.msk.f32.mxu0 %vm1031_vm2, %v1030_v0  ;;  %v405_v42 = vld [vmem:[%s1373_s1 + $0x20] sm:$0xff] }
   0x9   :  { %908 = vmatpush3.bf16.msra.mxu1 %v1005_v8  ;;  %928 = vmatpush3.bf16.msra.mxu0 %v1009_v12  ;;  %v1011_v44 = vld [vmem:[%s1370_s6] sm:$0xff]  }
   0xa   :  { %909 = vmatprep.subr.bf16.mxu1 %v1030_v0  ;;  %929 = vmatprep.subr.bf16.mxu0 %v1030_v0  ;;  %v809_v45 = vld [vmem:[%s1375_s5] ss:$0 sm:$0xff] }
   0xb   :  { %897 = vmatmul.mubr.msk.f32.gmra.mxu0 %vm61_vm1, %v50_v5 }
   0xc   :  { %899 = vmatprep.mubr.msk.f32.mxu0 %vm1031_vm2, %v1030_v0 }
   0xd   :  { %910 = vmatpush3.bf16.msra.mxu1 %v1006_v9  ;;  %930 = vmatpush3.bf16.msra.mxu0 %v1010_v43  ;;  %v1014_v9 = vld [vmem:[%s1374_s10 + $0x8] sm:$0xff]  }
   0xe   :  { %911 = vmatprep.subr.bf16.mxu1 %v1030_v0  ;;  %931 = vmatprep.subr.bf16.mxu0 %v1030_v0  ;;  %v1018_v43 = vld [vmem:[%s1377_s12 + $0x8] sm:$0xff]  }
   0xf   :  { %900 = vmatmul.mubr.msk.f32.gmra.mxu0 %vm61_vm1, %v51_v6 }
  0x10   :  { %902 = vmatprep.mubr.msk.f32.mxu0 %vm1031_vm2, %v1030_v0 }
  0x11   :  { %912 = vmatpush3.bf16.msra.mxu1 %v1007_v10  ;;  %932 = vmatpush3.bf16.msra.mxu0 %v1011_v44  ;;  %v1019_v44 = vld [vmem:[%s1377_s12] sm:$0xff]  }
  0x12   :  { %945 = vmatprep.subr.mxu1 %v1030_v0  ;;  %962 = vmatprep.subr.bf16.mxu0 %v1030_v0 }
  0x13   :  { %903 = vmatmul.mubr.msk.f32.gmra.mxu0 %vm61_vm1, %v52_v7 }
  0x14   :  { %933 = vmatprep.mubr.msk.bf16.mxu0 %vm1031_vm2, %v1030_v0 }
  0xc3   :  { %v147_v14 = vpop.f32.mrf.mxu0 }
  0xc4   :  { %v1174_v16 = vadd.f32 %v802_v13, %v147_v14  ;;  %v1015_v14 = vld [vmem:[%s1374_s10] sm:$0xff]  }
  0xc5   :  { %v892_v15 = vpop.f32.mrf.mxu0 }
  0xc6   :  { %v171_v20 = vmax.f32 %v1174_v16, 0.0 }
  0xc7   :  { %v152_v17 = vpop.f32.mrf.mxu0 }
  0xc8   :  { %v1176_v18 = vadd.f32 %v802_v13, %v152_v17  ;;  %v825_v17 = vld [vmem:[%s1376_s9] ss:$0 sm:$0xff] }
  0xc9   :  { %v895_v19 = vpop.f32.mrf.mxu0 }
  0xca   :  { %v172_v21 = vmax.f32 %v1176_v18, 0.0 }
  0xcb   :  { %v157_v22 = vpop.f32.mrf.mxu0 }
  0xcc   :  { %v176_v23 = vpack.c.bf16 %v172_v21, %v171_v20  ;;  %v1187_v26 = vadd.f32 %v802_v13, %v157_v22 }
  0xcd   :  { %v898_v25 = vpop.f32.mrf.mxu0 }
  0xce   :  { %914 = vmatmul.mubr.msk.bf16.vlgmr.msra.gmra.mxu1 %vm218_vm3, %v176_v23  ;;  %v173_v30 = vmax.f32 %v1187_v26, 0.0 }
  0xcf   :  { %v162_v27 = vpop.f32.mrf.mxu0  ;;  %946 = vmatpush3.msk.msra.mxu1 %vm430_vm4, %v406_v24  ;;  %917 = vmatprep.mubr.msk.bf16.mxu1 %vm1031_vm2, %v1030_v0 }
  0xd0   :  { %v1192_v28 = vadd.f32 %v802_v13, %v162_v27  ;;  %982 = vmatprep.subr.bf16.mxu1 %v1030_v0 }
  0xd1   :  { %v901_v29 = vpop.f32.mrf.mxu0 }
  0xd2   :  { %v174_v31 = vmax.f32 %v1192_v28, 0.0 }
  0xd3   :  { %v167_v32 = vpop.f32.mrf.mxu0 }
  0xd4   :  { %v177_v33 = vpack.c.bf16 %v174_v31, %v173_v30  ;;  %v168_v34 = vadd.f32 %v802_v13, %v167_v32 }
  0xd5   :  { %v904_v35 = vpop.f32.mrf.mxu0 }
  0xd6   :  { %918 = vmatmul.mubr.msk.bf16.gmra.mxu1 %vm218_vm3, %v177_v33  ;;  %v1202_v36 = vmax.f32 %v168_v34, 0.0 }
  0xd7   :  { %921 = vmatprep.mubr.msk.bf16.mxu1 %vm1031_vm2, %v1030_v0 }
  0xd8   :  { %v178_v37 = vpack.c.bf16 %v1202_v36, %v1202_v36 }
  0xde   :  { %922 = vmatmul.mubr.msk.bf16.gmra.mxu1 %vm218_vm3, %v178_v37 }
  0xdf   :  { %947 = vmatprep.mubr.msk.f32.mxu1 %vm1031_vm2, %v1030_v0 }
  0xe6   :  { %948 = vmatmul.mubr.msk.f32.vlgmr.msra.gmra.mxu1 %vm414_vm5, %v401_v38 }
  0xe7   :  { %950 = vmatprep.mubr.msk.f32.mxu1 %vm1031_vm2, %v1030_v0 }
  0xea   :  { %951 = vmatmul.mubr.msk.f32.gmra.mxu1 %vm414_vm5, %v402_v39 }
  0xeb   :  { %953 = vmatprep.mubr.msk.f32.mxu1 %vm1031_vm2, %v1030_v0 }
  0xee   :  { %954 = vmatmul.mubr.msk.f32.gmra.mxu1 %vm414_vm5, %v403_v40 }
  0xef   :  { %956 = vmatprep.mubr.msk.f32.mxu1 %vm1031_vm2, %v1030_v0 }
  0xf2   :  { %957 = vmatmul.mubr.msk.f32.gmra.mxu1 %vm414_vm5, %v404_v41  ;;  %v1016_v41 = vld [vmem:[%s1377_s12 + $0x18] sm:$0xff]  }
  0xf3   :  { %959 = vmatprep.mubr.msk.f32.mxu1 %vm1031_vm2, %v1030_v0  ;;  %983 = vmatpush3.bf16.msra.mxu1 %v1016_v41 }
  0xf4   :  { %984 = vmatprep.subr.bf16.mxu1 %v1030_v0 }
  0xf6   :  { %960 = vmatmul.mubr.msk.f32.gmra.mxu1 %vm414_vm5, %v405_v42  ;;  %v1017_v42 = vld [vmem:[%s1377_s12 + $0x10] sm:$0xff]  }
  0xf7   :  { %990 = vmatprep.mubr.msk.bf16.mxu1 %vm1031_vm2, %v1030_v0  ;;  %985 = vmatpush3.bf16.msra.mxu1 %v1017_v42 }
  0xf8   :  { %986 = vmatprep.subr.bf16.mxu1 %v1030_v0 }
  0xfb   :  { %987 = vmatpush3.bf16.msra.mxu1 %v1018_v43 }
  0xfc   :  { %988 = vmatprep.subr.bf16.mxu1 %v1030_v0 }
  0xff   :  { %989 = vmatpush3.bf16.msra.mxu1 %v1019_v44 }
 0x18e   :  { %v262_v46 = vpop.f32.mrf.mxu1 }
 0x18f   :  { %v263_v47 = vadd.f32 %v809_v45, %v262_v46 }
 0x190   :  { %v915_v48 = vpop.f32.mrf.mxu1 }
 0x191   :  { %v284_v50 = vmax.f32 %v263_v47, 0.0 }
 0x192   :  { %v265_v49 = vpop.f32.mrf.mxu1 }
 0x193   :  { %v266_v51 = vadd.f32 %v809_v45, %v265_v49  ;;  %v289_v55 = vadd.f32 %v284_v50, %v171_v20 }
 0x194   :  { %v916_v52 = vpop.f32.mrf.mxu1 }
 0x195   :  { %v285_v53 = vmax.f32 %v266_v51, 0.0 }
 0x196   :  { %v270_v54 = vpop.f32.mrf.mxu1 }
 0x197   :  { %v290_v56 = vadd.f32 %v285_v53, %v172_v21  ;;  %v271_v57 = vadd.f32 %v809_v45, %v270_v54 }
 0x198   :  { %v919_v58 = vpop.f32.mrf.mxu1 }
 0x199   :  { %v294_v60 = vpack.c.bf16 %v290_v56, %v289_v55  ;;  %v286_v62 = vmax.f32 %v271_v57, 0.0  ;;  %v832_v57 = vld [vmem:[%s1378_s11] ss:$0 sm:$0xff] }
 0x19a   :  { %v273_v61 = vpop.f32.mrf.mxu1 }
 0x19b   :  { %v274_v63 = vadd.f32 %v809_v45, %v273_v61  ;;  %934 = vmatmul.mubr.msk.bf16.vlgmr.msra.gmra.mxu0 %vm218_vm3, %v294_v60  ;;  %v291_v5 = vadd.f32 %v286_v62, %v173_v30 }
 0x19c   :  { %963 = vmatpush3.bf16.msra.mxu0 %v1012_v59  ;;  %v920_v1 = vpop.f32.mrf.mxu1  ;;  %937 = vmatprep.mubr.msk.bf16.mxu0 %vm1031_vm2, %v1030_v0 }
 0x19d   :  { %v287_v3 = vmax.f32 %v274_v63, 0.0  ;;  %964 = vmatprep.subr.bf16.mxu0 %v1030_v0 }
 0x19e   :  { %v278_v4 = vpop.f32.mrf.mxu1 }
 0x19f   :  { %v292_v6 = vadd.f32 %v287_v3, %v174_v31  ;;  %v279_v7 = vadd.f32 %v809_v45, %v278_v4 }
 0x1a0   :  { %v923_v8 = vpop.f32.mrf.mxu1  ;;  %965 = vmatpush3.bf16.msra.mxu0 %v1013_v2 }
 0x1a1   :  { %v295_v10 = vpack.c.bf16 %v292_v6, %v291_v5  ;;  %v288_v11 = vmax.f32 %v279_v7, 0.0  ;;  %966 = vmatprep.subr.bf16.mxu0 %v1030_v0 }
 0x1a2   :  { %v281_v12 = vpop.f32.mrf.mxu1 }
 0x1a3   :  { %938 = vmatmul.mubr.msk.bf16.gmra.mxu0 %vm218_vm3, %v295_v10  ;;  %v293_v15 = vadd.f32 %v288_v11, %v1202_v36 }
 0x1a4   :  { %v924_v13 = vpop.f32.mrf.mxu1  ;;  %967 = vmatpush3.bf16.msra.mxu0 %v1014_v9  ;;  %941 = vmatprep.mubr.msk.bf16.mxu0 %vm1031_vm2, %v1030_v0 }
 0x1a5   :  { %968 = vmatprep.subr.bf16.mxu0 %v1030_v0  ;;  %v296_v19 = vpack.c.bf16 %v293_v15, %v293_v15 }
 0x1a6   :  { %v500_v16 = vpop.f32.mrf.mxu1 }
 0x1a7   :  { %v1280_v21 = vadd.f32 %v825_v17, %v500_v16 }
 0x1a8   :  { %v949_v18 = vpop.f32.mrf.mxu1  ;;  %969 = vmatpush3.bf16.msra.mxu0 %v1015_v14 }
 0x1a9   :  { %v524_v26 = vmax.f32 %v1280_v21, 0.0 }
 0x1aa   :  { %v505_v20 = vpop.f32.mrf.mxu1 }
 0x1ab   :  { %v1282_v22 = vadd.f32 %v825_v17, %v505_v20  ;;  %942 = vmatmul.mubr.msk.bf16.gmra.mxu0 %vm218_vm3, %v296_v19 }
 0x1ac   :  { %v952_v23 = vpop.f32.mrf.mxu1  ;;  %970 = vmatprep.mubr.msk.bf16.mxu0 %vm1031_vm2, %v1030_v0 }
 0x1ad   :  { %v525_v24 = vmax.f32 %v1282_v22, 0.0 }
 0x1ae   :  { %v510_v25 = vpop.f32.mrf.mxu1 }
 0x1af   :  { %v529_v28 = vpack.c.bf16 %v525_v24, %v524_v26  ;;  %v1289_v30 = vadd.f32 %v825_v17, %v510_v25  ;;  %v817_v25 = vld [vmem:[%s1379_s7] ss:$0 sm:$0xff] }
 0x1b0   :  { %v955_v27 = vpop.f32.mrf.mxu1 }
 0x1b1   :  { %v526_v35 = vmax.f32 %v1289_v30, 0.0 }
 0x1b2   :  { %v515_v29 = vpop.f32.mrf.mxu1 }
 0x1b3   :  { %v1291_v31 = vadd.f32 %v825_v17, %v515_v29  ;;  %971 = vmatmul.mubr.msk.bf16.vlgmr.msra.gmra.mxu0 %vm218_vm3, %v529_v28 }
 0x1b4   :  { %v958_v32 = vpop.f32.mrf.mxu1  ;;  %974 = vmatprep.mubr.msk.bf16.mxu0 %vm1031_vm2, %v1030_v0 }
 0x1b5   :  { %v527_v33 = vmax.f32 %v1291_v31, 0.0 }
 0x1b6   :  { %v520_v34 = vpop.f32.mrf.mxu1 }
 0x1b7   :  { %v521_v36 = vadd.f32 %v825_v17, %v520_v34  ;;  %v530_v38 = vpack.c.bf16 %v527_v33, %v526_v35 }
 0x1b8   :  { %v961_v37 = vpop.f32.mrf.mxu1 }
 0x1b9   :  { %v528_v39 = vmax.f32 %v521_v36, 0.0 }
 0x1bb   :  { %975 = vmatmul.mubr.msk.bf16.gmra.mxu0 %vm218_vm3, %v530_v38  ;;  %v531_v40 = vpack.c.bf16 %v528_v39, %v528_v39 }
 0x1bc   :  { %978 = vmatprep.mubr.msk.bf16.mxu0 %vm1031_vm2, %v1030_v0 }
 0x1c3   :  { %979 = vmatmul.mubr.msk.bf16.gmra.mxu0 %vm218_vm3, %v531_v40 }
 0x25b   :  { %v379_v45 = vpop.f32.mrf.mxu0 }
 0x25c   :  { %v380_v28 = vadd.f32 %v817_v25, %v379_v45 }
 0x25d   :  { %v935_v46 = vpop.f32.mrf.mxu0 }
 0x25f   :  { %v382_v47 = vpop.f32.mrf.mxu0 }
 0x261   :  { %v936_v48 = vpop.f32.mrf.mxu0 }
 0x263   :  { %v1317_v49 = vpop.f32.mrf.mxu0 }
 0x265   :  { %v939_v50 = vpop.f32.mrf.mxu0 }
 0x267   :  { %v1319_v51 = vpop.f32.mrf.mxu0 }
 0x268   :  { %v391_v46 = vadd.f32 %v817_v25, %v1319_v51 }
 0x269   :  { %v940_v52 = vpop.f32.mrf.mxu0 }
 0x26b   :  { %v1321_v53 = vpop.f32.mrf.mxu0 }
 0x26d   :  { %v943_v54 = vpop.f32.mrf.mxu0 }
 0x26f   :  { %v398_v55 = vpop.f32.mrf.mxu0 }
 0x271   :  { %v944_v56 = vpop.f32.mrf.mxu0 }
 0x273   :  { %v614_v58 = vpop.f32.mrf.mxu0 }
 0x274   :  { %v615_v59 = vadd.f32 %v832_v57, %v614_v58 }
 0x275   :  { %v972_v60 = vpop.f32.mrf.mxu0 }
 0x276   :  { %v636_v62 = vmax.f32 %v615_v59, 0.0 }
 0x277   :  { %v617_v61 = vpop.f32.mrf.mxu0 }
 0x278   :  { %v618_v63 = vadd.f32 %v832_v57, %v617_v61  ;;  %v641_v4 = vadd.f32 %v636_v62, %v524_v26  ;;  %v840_v26 = vld [vmem:[%s1380_s13] ss:$0 sm:$0xff] }
 0x279   :  { %v973_v1 = vpop.f32.mrf.mxu0 }
 0x27a   :  { %v637_v2 = vmax.f32 %v618_v63, 0.0 }
 0x27b   :  { %v622_v3 = vpop.f32.mrf.mxu0 }
 0x27c   :  { %v642_v5 = vadd.f32 %v637_v2, %v525_v24  ;;  %v623_v6 = vadd.f32 %v832_v57, %v622_v3 }
 0x27d   :  { %v976_v7 = vpop.f32.mrf.mxu0 }
 0x27e   :  { %v646_v8 = vpack.c.bf16 %v642_v5, %v641_v4  ;;  %v638_v10 = vmax.f32 %v623_v6, 0.0 }
 0x27f   :  { %v625_v9 = vpop.f32.mrf.mxu0 }
 0x280   :  { %v626_v11 = vadd.f32 %v832_v57, %v625_v9  ;;  %991 = vmatmul.mubr.msk.bf16.vlgmr.msra.gmra.mxu1 %vm218_vm3, %v646_v8  ;;  %v643_v15 = vadd.f32 %v638_v10, %v526_v35 }
 0x281   :  { %v977_v12 = vpop.f32.mrf.mxu0  ;;  %994 = vmatprep.mubr.msk.bf16.mxu1 %vm1031_vm2, %v1030_v0 }
 0x282   :  { %v639_v13 = vmax.f32 %v626_v11, 0.0 }
 0x283   :  { %v630_v14 = vpop.f32.mrf.mxu0 }
 0x284   :  { %v644_v16 = vadd.f32 %v639_v13, %v527_v33  ;;  %v631_v17 = vadd.f32 %v832_v57, %v630_v14  ;;  %v383_v33 = vadd.f32 %v817_v25, %v382_v47 }
 0x285   :  { %v980_v18 = vpop.f32.mrf.mxu0 }
 0x286   :  { %v647_v19 = vpack.c.bf16 %v644_v16, %v643_v15  ;;  %v640_v20 = vmax.f32 %v631_v17, 0.0 }
 0x287   :  { %v633_v21 = vpop.f32.mrf.mxu0 }
 0x288   :  { %995 = vmatmul.mubr.msk.bf16.gmra.mxu1 %vm218_vm3, %v647_v19  ;;  %v645_v23 = vadd.f32 %v640_v20, %v528_v39  ;;  %v388_v39 = vadd.f32 %v817_v25, %v1317_v49  ;;  %v396_v49 = vadd.f32 %v817_v25, %v1321_v53 }
 0x289   :  { %v981_v22 = vpop.f32.mrf.mxu0  ;;  %998 = vmatprep.mubr.msk.bf16.mxu1 %vm1031_vm2, %v1030_v0 }
 0x28a   :  { %v648_v24 = vpack.c.bf16 %v645_v23, %v645_v23 }
 0x290   :  { %999 = vmatmul.mubr.msk.bf16.gmra.mxu1 %vm218_vm3, %v648_v24 }
 0x340   :  { %v731_v27 = vpop.f32.mrf.mxu1 }
 0x341   :  { %v732_v29 = vadd.f32 %v840_v26, %v731_v27 }
 0x342   :  { %v992_v30 = vpop.f32.mrf.mxu1 }
 0x343   :  { %v753_v31 = vadd.f32 %v732_v29, %v380_v28 }
 0x344   :  { %v734_v32 = vpop.f32.mrf.mxu1 }
 0x345   :  { %v735_v0 = vadd.f32 %v840_v26, %v734_v32  ;;  %v758_v34 = vmul.f32 %v753_v31, %v753_v31 }
 0x346   :  { %v993_v35 = vpop.f32.mrf.mxu1 }
 0x347   :  { %v754_v36 = vadd.f32 %v735_v0, %v383_v33  ;;  %v763_v37 = vsel %vm218_vm3, %v758_v34, 0.0 }
 0x348   :  { %764 = vadd.xlane.f32.xlu0 %v763_v37  ;;  %v739_v38 = vpop.f32.mrf.mxu1 }
 0x349   :  { %v740_v40 = vadd.f32 %v840_v26, %v739_v38  ;;  %v759_v41 = vmul.f32 %v754_v36, %v754_v36 }
 0x34a   :  { %v996_v42 = vpop.f32.mrf.mxu1 }
 0x34b   :  { %v755_v43 = vadd.f32 %v740_v40, %v388_v39  ;;  %v766_v44 = vsel %vm218_vm3, %v759_v41, 0.0 }
 0x34c   :  { %767 = vadd.xlane.f32.xlu0 %v766_v44  ;;  %v742_v45 = vpop.f32.mrf.mxu1 }
 0x34d   :  { %v743_v47 = vadd.f32 %v840_v26, %v742_v45  ;;  %v760_v48 = vmul.f32 %v755_v43, %v755_v43 }
 0x34e   :  { %v997_v50 = vpop.f32.mrf.mxu1 }
 0x34f   :  { %v756_v52 = vadd.f32 %v743_v47, %v391_v46  ;;  %v769_v54 = vsel %vm218_vm3, %v760_v48, 0.0 }
 0x350   :  { %770 = vadd.xlane.f32.xlu1 %v769_v54  ;;  %v747_v55 = vpop.f32.mrf.mxu1 }
 0x351   :  { %v748_v56 = vadd.f32 %v840_v26, %v747_v55  ;;  %v761_v57 = vmul.f32 %v756_v52, %v756_v52 }
 0x352   :  { %v1000_v58 = vpop.f32.mrf.mxu1 }
 0x353   :  { %v757_v59 = vadd.f32 %v748_v56, %v396_v49  ;;  %v772_v60 = vsel %vm218_vm3, %v761_v57, 0.0 }
 0x354   :  { %773 = vadd.xlane.f32.xlu1 %v772_v60  ;;  %v750_v61 = vpop.f32.mrf.mxu1 }
 0x355   :  { %v762_v62 = vmul.f32 %v757_v59, %v757_v59 }
 0x356   :  { %v1001_v51 = vpop.f32.mrf.mxu1 }
 0x357   :  { %v775_v63 = vsel %vm218_vm3, %v762_v62, 0.0 }
 0x358   :  { %776 = vadd.xlane.f32.xlu0 %v775_v63 }
 0x3d1   :  { %v765_v1 = vpop.xlane.xlu0 %764 }
 0x3d2   :  { %v778_v2 = vmax.f32 %v765_v1, 1e-12 }
 0x3d4   :  { %1020 = vrsqrt.f32 %v778_v2 }
 0x3d5   :  { %v768_v3 = vpop.xlane.xlu0 %767 }
 0x3d6   :  { %v779_v4 = vmax.f32 %v768_v3, 1e-12 }
 0x3d8   :  { %1022 = vrsqrt.f32 %v779_v4 }
 0x3d9   :  { %v771_v53 = vpop.xlane.xlu1 %770 }
 0x3da   :  { %v780_v5 = vmax.f32 %v771_v53, 1e-12 }
 0x3dc   :  { %1024 = vrsqrt.f32 %v780_v5 }
 0x3dd   :  { %v774_v6 = vpop.xlane.xlu1 %773 }
 0x3de   :  { %v781_v7 = vmax.f32 %v774_v6, 1e-12 }
 0x3e0   :  { %1026 = vrsqrt.f32 %v781_v7 }
 0x3e1   :  { %v1021_v8 = vpop.eup %1020  ;;  %v777_v9 = vpop.xlane.xlu0 %776 }
 0x3e2   :  { %v788_v10 = vmul.f32 %v1021_v8, %v753_v31  ;;  %v782_v11 = vmax.f32 %v777_v9, 1e-12 }
 0x3e4   :  { %793 = vst.msk [vmem:[%s1381_s14] sm:$0xff] %vm218_vm3, %v788_v10  ;;  %1028 = vrsqrt.f32 %v782_v11 }
 0x3e5   :  { %v1023_v12 = vpop.eup %1022 }
 0x3e6   :  { %v789_v13 = vmul.f32 %v1023_v12, %v754_v36 }
 0x3e8   :  { %794 = vst.msk [vmem:[%s1381_s14 + $0x8] sm:$0xff] %vm218_vm3, %v789_v13 }
 0x3e9   :  { %v1025_v14 = vpop.eup %1024 }
 0x3ea   :  { %v790_v15 = vmul.f32 %v1025_v14, %v755_v43 }
 0x3ec   :  { %795 = vst.msk [vmem:[%s1381_s14 + $0x10] sm:$0xff] %vm218_vm3, %v790_v15 }
 0x3ed   :  { %v1027_v16 = vpop.eup %1026 }
 0x3ee   :  { %v791_v17 = vmul.f32 %v1027_v16, %v756_v52 }
 0x3f0   :  { %796 = vst.msk [vmem:[%s1381_s14 + $0x18] sm:$0xff] %vm218_vm3, %v791_v17 }
 0x3f1   :  { %v1029_v18 = vpop.eup %1028 }
 0x3f2   :  { %v792_v19 = vmul.f32 %v1029_v18, %v757_v59 }
 0x3f4   :  { %797 = vst.msk [vmem:[%s1381_s14 + $0x20] sm:$0xff] %vm218_vm3, %v792_v19 }

// kernel: squeeze.5
= control target key start
LH: loop header
LB: loop body
LE: loop exit
PB: predicated region body
PF: predicated region fallthrough
CT: control target
= control target key end

     0   :  { %vm8_vm0 = vcmask 195584   ;;  %s42_s0 = inlined_call_operand.vmem [shape: f32[48], index: 0, kind: input, shape index: {}]   ;;  %s43_s1 = inlined_call_operand.vmem [shape: f32[2,24], index: 1, kind: output, shape index: {}]  }
   0x1   :  { %v5_v0 = vld [vmem:[%s42_s0] sm:$0x1]  ;;  %s25_s0 = smov 104  }
   0x2   :  { %6 = vst [vmem:[#allocation1] sm:$0x1] %v5_v0 }
   0x9   :  { %v10_v1 = vld [vmem:[#allocation1] sm:$0x1]  }
   0xa   :  { %v7_v2 = vld [vmem:[#allocation1] sm:$0x1]   ;;  %11 = vrot.lane.b32.xlu0 %v10_v1, %s25_s0 }
   0xb   :  { %9 = vst.msk [vmem:[#allocation0] sm:$0x1] %vm8_vm0, %v7_v2  }
  0x7c   :  { %v12_v3 = vpop.permute.xlu0 %11  }
  0x7d   :  { %15 = vst.msk [vmem:[#allocation0 + $0x1] sm:$0x1] %vm8_vm0, %v12_v3  }
  0x84   :  { %v20_v4 = vld [vmem:[#allocation0] sm:$0x3] }
  0x85   :  { %23 = vst [vmem:[%s43_s1] sm:$0x3] %v20_v4 }

// kernel: forward_padded.7
= control target key start
LH: loop header
LB: loop body
LE: loop exit
PB: predicated region body
PF: predicated region fallthrough
CT: control target
= control target key end

     0   :  { %vm393_vm0 = vcmask 7168   ;;  %s757_s1 = inlined_call_operand.vmem [shape: bf16[256,128], index: 1, kind: input, shape index: {}]   ;;  %s758_s0 = inlined_call_operand.vmem [shape: f32[48,256], index: 0, kind: input, shape index: {}]   ;;  %s759_s3 = inlined_call_operand.vmem [shape: f32[128,1], index: 3, kind: input, shape index: {}]   ;;  %s760_s4 = inlined_call_operand.<no memory space> [shape: f32[1,1], index: 4, kind: input, shape index: {}]   ;;  %s761_s2 = inlined_call_operand.vmem [shape: f32[1,128], index: 2, kind: input, shape index: {}]   ;;  %s762_s5 = inlined_call_operand.vmem [shape: f32[48,1], index: 5, kind: output, shape index: {}]  }
   0x1   :  { %v525_v0 = vld [vmem:[%s757_s1 + $0x78] sm:$0xff]   ;;  %v527_v2 = vld [vmem:[%s757_s1 + $0x70] sm:$0xff]   ;;  %v529_v4 = vld [vmem:[%s757_s1 + $0x68] sm:$0xff]   ;;  %v10_v50 = vstv %s760_s4 }
   0x2   :  { %v526_v1 = vld [vmem:[%s757_s1 + $0x38] sm:$0xff]   ;;  %428 = vmatprep.subr.bf16.mxu0 %v525_v0  ;;  %v528_v3 = vld [vmem:[%s757_s1 + $0x30] sm:$0xff]   ;;  %v530_v5 = vld [vmem:[%s757_s1 + $0x28] sm:$0xff]   ;;  %11 = vst [vmem:[#allocation2] sm:$0x1] %v10_v50 }
   0x3   :  { %429 = vmatpush3.bf16.msra.mxu0 %v526_v1  ;;  %v531_v6 = vld [vmem:[%s757_s1 + $0x60] sm:$0xff]   ;;  %v533_v8 = vld [vmem:[%s757_s1 + $0x58] sm:$0xff]   ;;  %v535_v10 = vld [vmem:[%s757_s1 + $0x50] sm:$0xff]  }
   0x4   :  { %430 = vmatprep.subr.bf16.mxu0 %v527_v2  ;;  %v532_v7 = vld [vmem:[%s757_s1 + $0x20] sm:$0xff]   ;;  %v534_v9 = vld [vmem:[%s757_s1 + $0x18] sm:$0xff]   ;;  %v24_v11 = vld [vmem:[%s758_s0 + $0x8] sm:$0xff] }
   0x5   :  { %v26_v12 = vld [vmem:[%s758_s0 + $0x18] sm:$0xff]  ;;  %v536_v14 = vld [vmem:[%s757_s1 + $0x10] sm:$0xff]   ;;  %v537_v15 = vld [vmem:[%s757_s1 + $0x48] sm:$0xff]  }
   0x6   :  { %v36_v13 = vpack.c.bf16 %v26_v12, %v24_v11  ;;  %v254_v16 = vld [vmem:[%s759_s3 + $0x78] sm:$0xff]  ;;  %v253_v17 = vld [vmem:[%s759_s3 + $0x70] sm:$0xff]  ;;  %v252_v18 = vld [vmem:[%s759_s3 + $0x68] sm:$0xff] }
   0x7   :  { %431 = vmatpush3.bf16.msra.mxu0 %v528_v3  ;;  %484 = vmatprep.subr.mxu1 %v254_v16  ;;  %v538_v19 = vld [vmem:[%s757_s1 + $0x8] sm:$0xff]   ;;  %v539_v20 = vld [vmem:[%s757_s1 + $0x40] sm:$0xff]   ;;  %v250_v22 = vld [vmem:[%s759_s3 + $0x58] sm:$0xff] }
   0x8   :  { %432 = vmatprep.subr.bf16.mxu0 %v529_v4  ;;  %208 = vmatprep.mubr.bf16.mxu0 %v36_v13  ;;  %v251_v21 = vld [vmem:[%s759_s3 + $0x60] sm:$0xff]  ;;  %v25_v25 = vld [vmem:[%s758_s0 + $0x10] sm:$0xff]  ;;  %v28_v26 = vld [vmem:[%s758_s0 + $0x28] sm:$0xff] }
   0x9   :  { %485 = vmatpush3.msra.mxu1 %v254_v16  ;;  %v540_v23 = vld [vmem:[%s757_s1] sm:$0xff]   ;;  %v30_v27 = vld [vmem:[%s758_s0 + $0x38] sm:$0xff]  ;;  %v249_v28 = vld [vmem:[%s759_s3 + $0x50] sm:$0xff] }
   0xa   :  { %486 = vmatprep.subr.mxu1 %v253_v17  ;;  %v23_v24 = vld [vmem:[%s758_s0] sm:$0xff]  ;;  %v248_v30 = vld [vmem:[%s759_s3 + $0x48] sm:$0xff]  ;;  %v38_v31 = vpack.c.bf16 %v30_v27, %v28_v26  ;;  %v246_v33 = vld [vmem:[%s759_s3 + $0x38] sm:$0xff] }
   0xb   :  { %433 = vmatpush3.bf16.msra.mxu0 %v530_v5  ;;  %487 = vmatpush3.msra.mxu1 %v253_v17  ;;  %v35_v29 = vpack.c.bf16 %v25_v25, %v23_v24  ;;  %v247_v32 = vld [vmem:[%s759_s3 + $0x40] sm:$0xff]  ;;  %v29_v35 = vld [vmem:[%s758_s0 + $0x30] sm:$0xff]  ;;  %v32_v36 = vld [vmem:[%s758_s0 + $0x48] sm:$0xff] }
   0xc   :  { %434 = vmatprep.subr.bf16.mxu0 %v531_v6  ;;  %488 = vmatprep.subr.mxu1 %v252_v18  ;;  %v27_v34 = vld [vmem:[%s758_s0 + $0x20] sm:$0xff]  ;;  %v34_v37 = vld [vmem:[%s758_s0 + $0x58] sm:$0xff]  ;;  %v245_v38 = vld [vmem:[%s759_s3 + $0x30] sm:$0xff] }
   0xd   :  { %489 = vmatpush3.msra.mxu1 %v252_v18  ;;  %v37_v39 = vpack.c.bf16 %v29_v35, %v27_v34  ;;  %v40_v40 = vpack.c.bf16 %v34_v37, %v32_v36  ;;  %v31_v41 = vld [vmem:[%s758_s0 + $0x40] sm:$0xff]  ;;  %v33_v42 = vld [vmem:[%s758_s0 + $0x50] sm:$0xff]  ;;  %v244_v44 = vld [vmem:[%s759_s3 + $0x28] sm:$0xff] }
   0xe   :  { %490 = vmatprep.subr.mxu1 %v251_v21  ;;  %v39_v43 = vpack.c.bf16 %v33_v42, %v31_v41  ;;  %v243_v45 = vld [vmem:[%s759_s3 + $0x20] sm:$0xff]  ;;  %v242_v46 = vld [vmem:[%s759_s3 + $0x18] sm:$0xff]  ;;  %v241_v47 = vld [vmem:[%s759_s3 + $0x10] sm:$0xff] }
   0xf   :  { %435 = vmatpush3.bf16.msra.mxu0 %v532_v7  ;;  %491 = vmatpush3.msra.mxu1 %v251_v21  ;;  %v240_v48 = vld [vmem:[%s759_s3 + $0x8] sm:$0xff]  ;;  %v239_v49 = vld [vmem:[%s759_s3] sm:$0xff] }
  0x10   :  { %436 = vmatprep.subr.bf16.mxu0 %v533_v8  ;;  %492 = vmatprep.subr.mxu1 %v250_v22  ;;  %v404_v53 = vld [vmem:[%s761_s2] ss:$0 sm:$0xff] }
  0x11   :  { %493 = vmatpush3.msra.mxu1 %v250_v22  ;;  %v421_v18 = vld [vmem:[#allocation2] ss:$0 sm:$0xff] }
  0x12   :  { %494 = vmatprep.subr.mxu1 %v249_v28 }
  0x13   :  { %437 = vmatpush3.bf16.msra.mxu0 %v534_v9  ;;  %495 = vmatpush3.msra.mxu1 %v249_v28 }
  0x14   :  { %438 = vmatprep.subr.bf16.mxu0 %v535_v10  ;;  %496 = vmatprep.subr.mxu1 %v248_v30 }
  0x15   :  { %497 = vmatpush3.msra.mxu1 %v248_v30 }
  0x16   :  { %498 = vmatprep.subr.mxu1 %v247_v32 }
  0x17   :  { %439 = vmatpush3.bf16.msra.mxu0 %v536_v14  ;;  %499 = vmatpush3.msra.mxu1 %v247_v32 }
  0x18   :  { %440 = vmatprep.subr.bf16.mxu0 %v537_v15  ;;  %500 = vmatprep.subr.mxu1 %v246_v33 }
  0x19   :  { %501 = vmatpush3.msra.mxu1 %v246_v33 }
  0x1a   :  { %502 = vmatprep.subr.mxu1 %v245_v38 }
  0x1b   :  { %441 = vmatpush3.bf16.msra.mxu0 %v538_v19  ;;  %503 = vmatpush3.msra.mxu1 %v245_v38 }
  0x1c   :  { %442 = vmatprep.subr.bf16.mxu0 %v539_v20  ;;  %504 = vmatprep.subr.mxu1 %v244_v44 }
  0x1d   :  { %505 = vmatpush3.msra.mxu1 %v244_v44 }
  0x1e   :  { %506 = vmatprep.subr.mxu1 %v243_v45 }
  0x1f   :  { %443 = vmatpush3.bf16.msra.mxu0 %v540_v23  ;;  %507 = vmatpush3.msra.mxu1 %v243_v45 }
  0x20   :  { %508 = vmatprep.subr.mxu1 %v242_v46 }
  0x21   :  { %509 = vmatpush3.msra.mxu1 %v242_v46 }
  0x22   :  { %209 = vmatmul.mubr.bf16.vlgmr.msra.gmra.mxu0 %v35_v29  ;;  %510 = vmatprep.subr.mxu1 %v241_v47 }
  0x23   :  { %216 = vmatprep.mubr.bf16.mxu0 %v38_v31  ;;  %511 = vmatpush3.msra.mxu1 %v241_v47 }
  0x24   :  { %512 = vmatprep.subr.mxu1 %v240_v48 }
  0x25   :  { %513 = vmatpush3.msra.mxu1 %v240_v48 }
  0x26   :  { %514 = vmatprep.subr.mxu1 %v239_v49 }
  0x27   :  { %515 = vmatpush3.msra.mxu1 %v239_v49 }
  0x2a   :  { %217 = vmatmul.mubr.bf16.gmra.mxu0 %v37_v39 }
  0x2b   :  { %224 = vmatprep.mubr.bf16.mxu0 %v40_v40 }
  0x32   :  { %225 = vmatmul.mubr.bf16.gmra.mxu0 %v39_v43 }
  0xe2   :  { %v444_v51 = vpop.f32.mrf.mxu0 }
  0xe4   :  { %v445_v52 = vpop.f32.mrf.mxu0 }
  0xe5   :  { %v446_v54 = vadd.f32 %v445_v52, %v444_v51 }
  0xe6   :  { %v447_v55 = vpop.f32.mrf.mxu0 }
  0xe7   :  { %v211_v56 = vadd.f32 %v446_v54, %v404_v53 }
  0xe8   :  { %v448_v57 = vpop.f32.mrf.mxu0 }
  0xe9   :  { %v449_v58 = vadd.f32 %v448_v57, %v447_v55  ;;  %v233_v59 = vmax.f32 %v211_v56, 0.0 }
  0xea   :  { %v450_v60 = vpop.f32.mrf.mxu0 }
  0xeb   :  { %v214_v61 = vadd.f32 %v449_v58, %v404_v53  ;;  %516 = vmatprep.mubr.f32.mxu1 %v233_v59 }
  0xec   :  { %v451_v62 = vpop.f32.mrf.mxu0 }
  0xed   :  { %v234_v63 = vmax.f32 %v214_v61, 0.0  ;;  %v452_v0 = vadd.f32 %v451_v62, %v450_v60 }
  0xee   :  { %v453_v1 = vpop.f32.mrf.mxu0 }
  0xef   :  { %v219_v2 = vadd.f32 %v452_v0, %v404_v53  ;;  %517 = vmatmul.mubr.f32.vlgmr.msra.gmra.mxu1 %v234_v63 }
  0xf0   :  { %v454_v3 = vpop.f32.mrf.mxu0 }
  0xf1   :  { %v235_v4 = vmax.f32 %v219_v2, 0.0  ;;  %v455_v5 = vadd.f32 %v454_v3, %v453_v1 }
  0xf2   :  { %v456_v6 = vpop.f32.mrf.mxu0 }
  0xf3   :  { %v222_v7 = vadd.f32 %v455_v5, %v404_v53  ;;  %519 = vmatprep.mubr.f32.mxu1 %v235_v4 }
  0xf4   :  { %v457_v8 = vpop.f32.mrf.mxu0 }
  0xf5   :  { %v236_v9 = vmax.f32 %v222_v7, 0.0  ;;  %v458_v10 = vadd.f32 %v457_v8, %v456_v6 }
  0xf6   :  { %v459_v11 = vpop.f32.mrf.mxu0 }
  0xf7   :  { %v227_v12 = vadd.f32 %v458_v10, %v404_v53  ;;  %520 = vmatmul.mubr.f32.gmra.mxu1 %v236_v9 }
  0xf8   :  { %v460_v13 = vpop.f32.mrf.mxu0 }
  0xf9   :  { %v237_v14 = vmax.f32 %v227_v12, 0.0  ;;  %v461_v15 = vadd.f32 %v460_v13, %v459_v11 }
  0xfb   :  { %v230_v16 = vadd.f32 %v461_v15, %v404_v53  ;;  %522 = vmatprep.mubr.f32.mxu1 %v237_v14 }
  0xfd   :  { %v238_v17 = vmax.f32 %v230_v16, 0.0 }
  0xff   :  { %523 = vmatmul.mubr.f32.gmra.mxu1 %v238_v17 }
 0x1af   :  { %v518_v19 = vpop.f32.mrf.mxu1 }
 0x1b0   :  { %v334_v20 = vadd.f32 %v518_v19, %v421_v18 }
 0x1b1   :  { %v328_v21 = vpop.f32.mrf.mxu1 }
 0x1b2   :  { %v423_v22 = vmul.f32 -1.442695, %v334_v20  ;;  %v329_v23 = vadd.f32 %v421_v18, %v328_v21 }
 0x1b4   :  { %541 = vpow2.f32 %v423_v22  ;;  %v422_v24 = vmul.f32 -1.442695, %v329_v23 }
 0x1b6   :  { %543 = vpow2.f32 %v422_v24 }
 0x1b7   :  { %v521_v25 = vpop.f32.mrf.mxu1 }
 0x1b8   :  { %v344_v26 = vadd.f32 %v521_v25, %v421_v18 }
 0x1b9   :  { %v338_v27 = vpop.f32.mrf.mxu1 }
 0x1ba   :  { %v425_v28 = vmul.f32 -1.442695, %v344_v26  ;;  %v339_v29 = vadd.f32 %v421_v18, %v338_v27 }
 0x1bc   :  { %545 = vpow2.f32 %v425_v28  ;;  %v424_v30 = vmul.f32 -1.442695, %v339_v29 }
 0x1be   :  { %547 = vpow2.f32 %v424_v30 }
 0x1bf   :  { %v524_v31 = vpop.f32.mrf.mxu1 }
 0x1c0   :  { %v354_v32 = vadd.f32 %v524_v31, %v421_v18 }
 0x1c1   :  { %v542_v33 = vpop.eup %541  ;;  %v348_v34 = vpop.f32.mrf.mxu1 }
 0x1c2   :  { %v376_v35 = vadd.f32 1.0, %v542_v33  ;;  %v427_v36 = vmul.f32 -1.442695, %v354_v32  ;;  %v349_v37 = vadd.f32 %v421_v18, %v348_v34 }
 0x1c3   :  { %v544_v38 = vpop.eup %543 }
 0x1c4   :  { %549 = vrcp.f32 %v376_v35  ;;  %v375_v39 = vadd.f32 1.0, %v544_v38  ;;  %v426_v40 = vmul.f32 -1.442695, %v349_v37 }
 0x1c5   :  { %551 = vpow2.f32 %v427_v36 }
 0x1c6   :  { %553 = vrcp.f32 %v375_v39 }
 0x1c7   :  { %555 = vpow2.f32 %v426_v40 }
 0x1c9   :  { %v546_v41 = vpop.eup %545 }
 0x1ca   :  { %v378_v42 = vadd.f32 1.0, %v546_v41 }
 0x1cb   :  { %v548_v43 = vpop.eup %547 }
 0x1cc   :  { %557 = vrcp.f32 %v378_v42  ;;  %v377_v44 = vadd.f32 1.0, %v548_v43 }
 0x1ce   :  { %559 = vrcp.f32 %v377_v44 }
 0x1d1   :  { %v550_v45 = vpop.eup %549 }
 0x1d2   :  { %v552_v46 = vpop.eup %551  ;;  %395 = vst.msk [vmem:[%s762_s5 + $0x8] sm:$0xff] %vm393_vm0, %v550_v45 }
 0x1d3   :  { %v554_v47 = vpop.eup %553  ;;  %v380_v48 = vadd.f32 1.0, %v552_v46 }
 0x1d4   :  { %v556_v49 = vpop.eup %555  ;;  %394 = vst.msk [vmem:[%s762_s5] sm:$0xff] %vm393_vm0, %v554_v47 }
 0x1d5   :  { %561 = vrcp.f32 %v380_v48  ;;  %v379_v50 = vadd.f32 1.0, %v556_v49 }
 0x1d7   :  { %563 = vrcp.f32 %v379_v50 }
 0x1d9   :  { %v558_v51 = vpop.eup %557 }
 0x1da   :  { %397 = vst.msk [vmem:[%s762_s5 + $0x18] sm:$0xff] %vm393_vm0, %v558_v51 }
 0x1db   :  { %v560_v52 = vpop.eup %559 }
 0x1dc   :  { %396 = vst.msk [vmem:[%s762_s5 + $0x10] sm:$0xff] %vm393_vm0, %v560_v52 }
 0x1e2   :  { %v562_v53 = vpop.eup %561 }
 0x1e3   :  { %399 = vst.msk [vmem:[%s762_s5 + $0x28] sm:$0xff] %vm393_vm0, %v562_v53 }
 0x1e4   :  { %v564_v54 = vpop.eup %563 }
 0x1e5   :  { %398 = vst.msk [vmem:[%s762_s5 + $0x20] sm:$0xff] %vm393_vm0, %v564_v54 }

// kernel: forward_padded.6
= control target key start
LH: loop header
LB: loop body
LE: loop exit
PB: predicated region body
PF: predicated region fallthrough
CT: control target
= control target key end

     0   :  { %s5860_s0 = inlined_call_operand.vmem [shape: s32[2], index: 0, kind: input, shape index: {}]   ;;  %s5861_s2 = inlined_call_operand.vmem [shape: f32[2,32,128], index: 2, kind: input, shape index: {}]   ;;  %s5862_s3 = inlined_call_operand.vmem [shape: f32[2,24,128], index: 3, kind: input, shape index: {}]   ;;  %s5863_s4 = inlined_call_operand.vmem [shape: bf16[3,128,384], index: 4, kind: input, shape index: {}]   ;;  %s5864_s5 = inlined_call_operand.vmem [shape: bf16[3,128,128], index: 5, kind: input, shape index: {}]   ;;  %s5865_s7 = inlined_call_operand.vmem [shape: f32[2,24,32], index: 7, kind: output, shape index: {0}]   ;;  %s5866_s8 = inlined_call_operand.vmem [shape: f32[2,32,128], index: 8, kind: output, shape index: {1}]   ;;  %s5867_s9 = inlined_call_operand.vmem [shape: f32[2,24,128], index: 9, kind: output, shape index: {2}]   ;;  %s5868_s1 = inlined_call_operand.vmem [shape: s32[2], index: 1, kind: input, shape index: {}]   ;;  %s5869_s6 = inlined_call_operand.<no memory space> [shape: f32[1,1], index: 6, kind: input, shape index: {}]  }
   0x1   :  { %s15_s11 = sshll.u32 %s5860_s0, 4  ;;  %s19_s14 = sshll.u32 %s5868_s1, 4  ;;  %s16_s11 = int_to_ptr.vmem [resolvable:$true] %s15_s11  ;;  %s20_s14 = int_to_ptr.vmem [resolvable:$true] %s19_s14 }
   0x2   :  { %s4553_s15 = scalar_lea.vmem %s16_s11, 16  ;;  %p4558_p1 = scmp.lt.s32.totalorder %s16_s11, %s16_s11 }
   0x3   :  { %p4554_p0 = scmp.ne.s32.totalorder %s16_s11, %s4553_s15  ;;  %p4559_p2 = scmp.lt.s32.totalorder %s4553_s15, %s4553_s15 }
   0x5   :  { %p4560_p3 = por %p4559_p2, %p4558_p1 }
   0x7   :  { %p4561_p4 = pnand %p4560_p3, %p4554_p0 }
   0x9   :  { %4564 = shalt.err (!%p4561_p4)  }
   0xa   :  { %s4603_s16 = smov [#allocation3]   ;;  %s4565_s17 = scalar_lea.vmem %s20_s14, 16 }
   0xb   :  { %18 = dma.vmem_to_smem %s16_s11, 16, %s4603_s16, [#allocation2] }
   0xc   :  { %p4566_p5 = scmp.ne.s32.totalorder %s20_s14, %s4565_s17  ;;  %p4570_p6 = scmp.lt.s32.totalorder %s20_s14, %s20_s14 }
   0xd   :  { %p4571_p7 = scmp.lt.s32.totalorder %s4565_s17, %s4565_s17 }
   0xf   :  { %p4572_p8 = por %p4571_p7, %p4570_p6 }
  0x11   :  { %p4573_p9 = pnand %p4572_p8, %p4566_p5 }
  0x13   :  { %4576 = shalt.err (!%p4573_p9)  }
  0x14   :  { %s4604_s0 = smov [#allocation4]   ;;  %23 = sst [smem:[#allocation5]] %s5869_s6 }
  0x15   :  { %22 = dma.vmem_to_smem %s20_s14, 16, %s4604_s0, [#allocation2] }
  0x16   :  { %4589 = dma.done.wait [#allocation2], 32 }
  0x17   :  { %4590 = vsyncadd [#allocation2], 4294967264 }
  0x18   :  { %25 = sfence }
  0x19   :  { %s4666_s19 = smov 0  }
  0x1a LB: > { %s4672_s20 = sadd.s32 4294967295, %s4593_s19   ;;  %p3506_p10 = scmp.ge.s32.totalorder %s4593_s19, 1  ;;  %s4593_s19 = sphi %s4666_s19, %s31_s19  }
  0x1b   : > { %p265_p11 = scmp.lt.s32.totalorder %s4593_s19, 3 }
  0x1d   : > { %p266_p12 = pnand %p3506_p10, %p265_p11 }
  0x1e   : > { %p312_p13 = scmp.lt.s32.totalorder (!%p266_p12), %s4672_s20, 1  ;;  %s3118_s23 = sld [smem:[#allocation5]] (!%p266_p12) }
  0x1f   : > { %269 = sbr.rel (%p266_p12) target bundleno = 7457 (0x1d21), region = 40  ;;  %s5796_s24 = smov (!%p266_p12), 0  }
  0x24   : > { %v4679_v0 = vld [vmem:[%s5863_s4 + $0xb0] ss:$12 sps:$4 sm:$0xff]   ;;  %v4684_v1 = vld [vmem:[%s5863_s4 + $0xa8] ss:$12 sps:$4 sm:$0xff]   ;;  %v4691_v2 = vld [vmem:[%s5863_s4 + $0xac] ss:$12 sps:$4 sm:$0xff]   ;;  %v347_v49 = vlaneseq }
  0x25   : > { %580 = vmatprep.subr.bf16.mxu1 %v4679_v0  ;;  %v4605_v3 = vmov 0   ;;  %v4697_v4 = vld [vmem:[%s5863_s4 + $0x98] ss:$12 sps:$4 sm:$0xff]   ;;  %3894 = vmatprep.subr.bf16.mxu0 %v4684_v1  ;;  %s4701_s28 = scalar_select %p312_p13, %s4672_s20, 1  ;;  %v4707_v5 = vld [vmem:[%s5863_s4 + $0x90] ss:$12 sps:$4 sm:$0xff]  }
  0x26   : > { %612 = vmatprep.mubr.bf16.mxu1 %v4605_v3  ;;  %581 = vmatpush1.bf16.msra.mxu1 %v4691_v2  ;;  %v4712_v6 = vld [vmem:[%s5863_s4 + $0x94] ss:$12 sps:$4 sm:$0xff]   ;;  %v4724_v8 = vld [vmem:[%s5863_s4 + $0x78] ss:$12 sps:$4 sm:$0xff]   ;;  %v4733_v9 = vld [vmem:[%s5863_s4 + $0x7c] ss:$12 sps:$4 sm:$0xff]  }
  0x27   : > { %3895 = vmatpush3.bf16.msra.mxu0 %v4684_v1  ;;  %582 = vmatprep.subr.bf16.mxu1 %v4697_v4  ;;  %v4719_v7 = vld [vmem:[%s5863_s4 + $0x80] ss:$12 sps:$4 sm:$0xff]   ;;  %s4728_s16 = smul.u32 24, %s4701_s28  ;;  %v4739_v10 = vld [vmem:[%s5863_s4 + $0x68] ss:$12 sps:$4 sm:$0xff]   ;;  %s3720_s27 = sshll.u32 %s4701_s28, 5 }
  0x28   : > { %3896 = vmatprep.subr.bf16.mxu0 %v4707_v5  ;;  %v4752_v11 = vld [vmem:[%s5863_s4 + $0x60] ss:$12 sps:$4 sm:$0xff]   ;;  %v4759_v12 = vld [vmem:[%s5863_s4 + $0x64] ss:$12 sps:$4 sm:$0xff]   ;;  %v4772_v14 = vld [vmem:[%s5863_s4 + $0x48] ss:$12 sps:$4 sm:$0xff]   ;;  %s316_s17 = scalar_lea.vmem %s5861_s2, %s3720_s27  ;;  %s331_s13 = scalar_lea.vmem %s5866_s8, %s3720_s27 }
  0x29   : > { %s4746_s22 = scalar_lea.vmem %s5865_s7, %s4728_s16  ;;  %v4767_v13 = vld [vmem:[%s5863_s4 + $0x50] ss:$12 sps:$4 sm:$0xff]   ;;  %v4778_v15 = vld [vmem:[%s5863_s4 + $0x4c] ss:$12 sps:$4 sm:$0xff]   ;;  %v4802_v18 = vld [vmem:[%s5863_s4 + $0x34] ss:$12 sps:$4 sm:$0xff]   ;;  %s321_s18 = scalar_lea.vmem %s5862_s3, %s4728_s16 }
  0x2a   : > { %583 = vmatpush1.bf16.msra.mxu1 %v4712_v6  ;;  %v4789_v16 = vld [vmem:[%s5863_s4 + $0x38] ss:$12 sps:$4 sm:$0xff]   ;;  %v4796_v17 = vld [vmem:[%s5863_s4 + $0x30] ss:$12 sps:$4 sm:$0xff]   ;;  %v4809_v20 = vld [vmem:[%s5863_s4 + $0x20] ss:$12 sps:$4 sm:$0xff]   ;;  %s336_s14 = scalar_lea.vmem %s5867_s9, %s4728_s16 }
  0x2b   : > { %3897 = vmatpush3.bf16.msra.mxu0 %v4707_v5  ;;  %584 = vmatprep.subr.bf16.mxu1 %v4719_v7  ;;  %v4804_v19 = vld [vmem:[%s316_s17] sm:$0xff]  ;;  %v4816_v22 = vld [vmem:[%s316_s17 + $0x8] sm:$0xff]  ;;  %v4850_v28 = vld [vmem:[%s316_s17 + $0x10] sm:$0xff]  ;;  %v4866_v50 = vand.u32 127, %v347_v49  ;;  %vm696_vm1 = vcmask 261120   ;;  %vm1108_vm2 = vcmask 1043456  }
  0x2c   : > { %3898 = vmatprep.subr.bf16.mxu0 %v4724_v8  ;;  %v4814_v21 = vld [vmem:[%s5863_s4 + $0x18] ss:$12 sps:$4 sm:$0xff]   ;;  %v401_v23 = vpack.c.bf16 %v4816_v22, %v4804_v19  ;;  %v4827_v24 = vld [vmem:[%s5863_s4 + $0x1c] ss:$12 sps:$4 sm:$0xff]   ;;  %v4837_v26 = vld [vmem:[%s5863_s4] ss:$12 sps:$4 sm:$0xff]  }
  0x2d   : > { %v4832_v25 = vld [vmem:[%s5863_s4 + $0x8] ss:$12 sps:$4 sm:$0xff]   ;;  %v4846_v27 = vld [vmem:[%s5863_s4 + $0x4] ss:$12 sps:$4 sm:$0xff]   ;;  %v4852_v29 = vld [vmem:[%s316_s17 + $0x18] sm:$0xff]  ;;  %s4863_s17 = sld [smem:[#allocation3 + %s4672_s20]] }
  0x2e   : > { %585 = vmatpush1.bf16.msra.mxu1 %v4733_v9  ;;  %3910 = vmatprep.mubr.bf16.mxu0 %v401_v23  ;;  %v402_v30 = vpack.c.bf16 %v4852_v29, %v4850_v28  ;;  %vm1064_vm4 = vcmask 195584   ;;  %vm3122_vm9 = vcmp.eq.s32.totalorder %v4866_v50, 31 }
  0x2f   : > { %3899 = vmatpush3.bf16.msra.mxu0 %v4724_v8  ;;  %586 = vmatprep.subr.bf16.mxu1 %v4739_v10 }
  0x30   : > { %3900 = vmatprep.subr.bf16.mxu0 %v4752_v11 }
  0x32   : > { %587 = vmatpush1.bf16.msra.mxu1 %v4759_v12 }
  0x33   : > { %3901 = vmatpush3.bf16.msra.mxu0 %v4752_v11  ;;  %588 = vmatprep.subr.bf16.mxu1 %v4767_v13  ;;  %v349_v51 = vstv %s4863_s17  ;;  %s3133_s16 = scvt.s32.f32 %s4863_s17 }
  0x34   : > { %3902 = vmatprep.subr.bf16.mxu0 %v4772_v14  ;;  %vm4870_vm0 = vcmp.lt.s32.totalorder %v4866_v50, %v349_v51 }
  0x35   : > { %vm3165_vm10 = vmor %vm4870_vm0, %vm3122_vm9 }
  0x36   : > { %589 = vmatpush1.bf16.msra.mxu1 %v4778_v15 }
  0x37   : > { %3903 = vmatpush3.bf16.msra.mxu0 %v4772_v14  ;;  %590 = vmatprep.subr.bf16.mxu1 %v4789_v16 }
  0x38   : > { %3904 = vmatprep.subr.bf16.mxu0 %v4796_v17 }
  0x3a   : > { %591 = vmatpush1.bf16.msra.mxu1 %v4802_v18 }
  0x3b   : > { %3905 = vmatpush3.bf16.msra.mxu0 %v4796_v17  ;;  %592 = vmatprep.subr.bf16.mxu1 %v4809_v20 }
  0x3c   : > { %3906 = vmatprep.subr.bf16.mxu0 %v4814_v21 }
  0x3e   : > { %593 = vmatpush1.bf16.msra.mxu1 %v4827_v24 }
  0x3f   : > { %3907 = vmatpush3.bf16.msra.mxu0 %v4814_v21  ;;  %594 = vmatprep.subr.bf16.mxu1 %v4832_v25 }
  0x40   : > { %3908 = vmatprep.subr.bf16.mxu0 %v4837_v26 }
  0x42   : > { %595 = vmatpush1.bf16.msra.mxu1 %v4846_v27 }
  0x43   : > { %3909 = vmatpush3.bf16.msra.mxu0 %v4837_v26 }
  0x45   : > { %613 = vmatmul.mubr.bf16.vlgmr.msra.gmra.mxu1 %v401_v23 }
  0x46   : > { %3911 = vmatmul.mubr.bf16.vlgmr.msra.gmra.mxu0 %v402_v30  ;;  %622 = vmatprep.mubr.bf16.mxu1 %v4605_v3 }
  0x4d   : > { %623 = vmatmul.mubr.bf16.gmra.mxu1 %v402_v30 }
 0x105   : > { %v614_v31 = vpop.f32.mrf.mxu1 }
 0x106   : > { %v3912_v32 = vpop.f32.mrf.mxu0 }
 0x107   : > { %v616_v33 = vpop.f32.mrf.mxu1 }
 0x108   : > { %v485_v34 = vpop.f32.mrf.mxu0 }
 0x109   : > { %v618_v35 = vpop.f32.mrf.mxu1 }
 0x10a   : > { %v3913_v36 = vpop.f32.mrf.mxu0  ;;  %v635_v45 = vpack.c.bf16 %v618_v35, %v614_v31 }
 0x10b   : > { %v620_v37 = vpop.f32.mrf.mxu1  ;;  %v634_v48 = vpack.c.bf16 %v3913_v36, %v3912_v32 }
 0x10c   : > { %v488_v38 = vpop.f32.mrf.mxu0  ;;  %v743_v47 = vpack.c.bf16 %v620_v37, %v616_v33 }
 0x10d   : > { %v633_v39 = vpack.c.bf16 %v488_v38, %v485_v34  ;;  %v624_v40 = vpop.f32.mrf.mxu1 }
 0x10f   : > { %3918 = vmatprep.mubr.bf16.mxu0 %v633_v39  ;;  %v626_v41 = vpop.f32.mrf.mxu1 }
 0x111   : > { %v628_v42 = vpop.f32.mrf.mxu1 }
 0x112   : > { %v636_v43 = vpack.c.bf16 %v628_v42, %v624_v40 }
 0x113   : > { %v630_v44 = vpop.f32.mrf.mxu1 }
 0x114   : > { %v744_v46 = vpack.c.bf16 %v630_v44, %v626_v41  ;;  %3914 = vmatprep.subr.bf16.mxu0 %v636_v43 }
 0x115   : > { %3915 = vmatpush3.bf16.xpose.msra.mxu0 %v636_v43 }
 0x116   : > { %3916 = vmatprep.subr.bf16.mxu0 %v635_v45  ;;  %3922 = vmatprep.subr.bf16.mxu1 %v744_v46 }
 0x117   : > { %3923 = vmatpush3.bf16.msra.mxu1 %v744_v46 }
 0x118   : > { %3924 = vmatprep.subr.bf16.mxu1 %v743_v47 }
 0x11b   : > { %3925 = vmatpush3.bf16.msra.mxu1 %v743_v47 }
 0x11c   : > { %3950 = vmatprep.subr.bf16.mxu1 %v4684_v1 }
 0x11d   : > { %3917 = vmatpush3.bf16.xpose.msra.mxu0 %v635_v45 }
 0x124   : > { %3919 = vmatmul.mubr.bf16.vlgmr.msra.gmra.mxu0 %v634_v48 }
 0x1e4   : > { %v3920_v52 = vpop.f32.mrf.mxu0 }
 0x1e5   : > { %v688_v54 = vmul.f32 0.088388346, %v3920_v52 }
 0x1e6   : > { %v671_v55 = vpop.f32.mrf.mxu0 }
 0x1e7   : > { %v686_v56 = vmul.f32 0.088388346, %v671_v55  ;;  %v694_v57 = vsel %vm4870_vm0, %v688_v54, -1e+09 }
 0x1e8   : > { %v3921_v58 = vpop.f32.mrf.mxu0  ;;  %v703_v59 = vsel %vm696_vm1, %v694_v57, -inf }
 0x1e9   : > { %v689_v60 = vmul.f32 0.088388346, %v3921_v58  ;;  %704 = vmax.xlane.f32.xlu1 %v703_v59  ;;  %v692_v61 = vsel %vm4870_vm0, %v686_v56, -1e+09  ;;  %v4898_v58 = vld [vmem:[%s5864_s5 + $0x30] sm:$0xff]   ;;  %v4906_v59 = vld [vmem:[%s5864_s5 + $0x28] sm:$0xff]  }
 0x1ea   : > { %v674_v62 = vpop.f32.mrf.mxu0  ;;  %v697_v63 = vsel %vm696_vm1, %v692_v61, -inf }
 0x1eb   : > { %v687_v23 = vmul.f32 0.088388346, %v674_v62  ;;  %698 = vmax.xlane.f32.xlu0 %v697_v63  ;;  %v695_v30 = vsel %vm4870_vm0, %v689_v60, -1e+09  ;;  %v4913_v60 = vld [vmem:[%s5864_s5 + $0x20] sm:$0xff]   ;;  %v4927_v62 = vld [vmem:[%s5864_s5 + $0x10] sm:$0xff]  }
 0x1ec   : > { %v706_v31 = vsel %vm696_vm1, %v695_v30, -inf }
 0x1ed   : > { %707 = vmax.xlane.f32.xlu1 %v706_v31  ;;  %v693_v32 = vsel %vm4870_vm0, %v687_v23, -1e+09 }
 0x1ee   : > { %v700_v33 = vsel %vm696_vm1, %v693_v32, -inf }
 0x1ef   : > { %701 = vmax.xlane.f32.xlu0 %v700_v33 }
 0x272   : > { %v705_v34 = vpop.xlane.xlu1 %704 }
 0x273   : > { %v711_v35 = vsub.f32 %v694_v57, %v705_v34  ;;  %v4893_v57 = vld [vmem:[%s5864_s5 + $0x38] sm:$0xff]  }
 0x274   : > { %v699_v36 = vpop.xlane.xlu0 %698  ;;  %3930 = vmatprep.subr.bf16.mxu0 %v4893_v57 }
 0x275   : > { %v709_v37 = vsub.f32 %v692_v61, %v699_v36  ;;  %v717_v39 = vmul.f32 1.442695, %v711_v35  ;;  %3931 = vmatpush3.bf16.msra.mxu0 %v4893_v57  ;;  %v4920_v61 = vld [vmem:[%s5864_s5 + $0x18] sm:$0xff]  }
 0x276   : > { %v708_v38 = vpop.xlane.xlu1 %707  ;;  %3932 = vmatprep.subr.bf16.mxu0 %v4898_v58 }
 0x277   : > { %v713_v40 = vmul.f32 1.442695, %v709_v37  ;;  %v712_v41 = vsub.f32 %v695_v30, %v708_v38 }
 0x278   : > { %v702_v42 = vpop.xlane.xlu0 %701 }
 0x279   : > { %4397 = vpow2.f32 %v713_v40  ;;  %v710_v43 = vsub.f32 %v693_v32, %v702_v42  ;;  %v719_v44 = vmul.f32 1.442695, %v712_v41  ;;  %3933 = vmatpush3.bf16.msra.mxu0 %v4898_v58 }
 0x27a   : > { %4399 = vpow2.f32 %v717_v39  ;;  %3934 = vmatprep.subr.bf16.mxu0 %v4906_v59 }
 0x27b   : > { %v715_v45 = vmul.f32 1.442695, %v710_v43 }
 0x27d   : > { %4401 = vpow2.f32 %v715_v45  ;;  %3935 = vmatpush3.bf16.msra.mxu0 %v4906_v59 }
 0x27e   : > { %4403 = vpow2.f32 %v719_v44  ;;  %3936 = vmatprep.subr.bf16.mxu0 %v4913_v60 }
 0x281   : > { %3937 = vmatpush3.bf16.msra.mxu0 %v4913_v60 }
 0x282   : > { %3938 = vmatprep.subr.bf16.mxu0 %v4920_v61 }
 0x285   : > { %3939 = vmatpush3.bf16.msra.mxu0 %v4920_v61 }
 0x286   : > { %v4398_v46 = vpop.eup %4397  ;;  %3940 = vmatprep.subr.bf16.mxu0 %v4927_v62 }
 0x287   : > { %v721_v47 = vsel %vm696_vm1, %v4398_v46, 0.0  ;;  %v4400_v48 = vpop.eup %4399 }
 0x288   : > { %722 = vadd.xlane.f32.xlu0 %v721_v47  ;;  %v727_v52 = vsel %vm696_vm1, %v4400_v48, 0.0 }
 0x289   : > { %3941 = vmatpush3.bf16.msra.mxu0 %v4927_v62 }
 0x28a   : > { %v4402_v51 = vpop.eup %4401 }
 0x28b   : > { %v724_v54 = vsel %vm696_vm1, %v4402_v51, 0.0  ;;  %v4404_v55 = vpop.eup %4403 }
 0x28c   : > { %728 = vadd.xlane.f32.xlu0 %v727_v52  ;;  %725 = vadd.xlane.f32.xlu1 %v724_v54  ;;  %v730_v56 = vsel %vm696_vm1, %v4404_v55, 0.0 }
 0x290   : > { %731 = vadd.xlane.f32.xlu1 %v730_v56 }
 0x311   : > { %v723_v63 = vpop.xlane.xlu0 %722 }
 0x312   : > { %4405 = vrcp.f32 %v723_v63 }
 0x315   : > { %v726_v23 = vpop.xlane.xlu1 %725  ;;  %v729_v30 = vpop.xlane.xlu0 %728 }
 0x316   : > { %4407 = vrcp.f32 %v726_v23 }
 0x317   : > { %4409 = vrcp.f32 %v729_v30 }
 0x319   : > { %v732_v31 = vpop.xlane.xlu1 %731 }
 0x31a   : > { %4411 = vrcp.f32 %v732_v31 }
 0x31f   : > { %v4406_v32 = vpop.eup %4405 }
 0x320   : > { %v737_v34 = vmul.f32 %v4406_v32, %v4398_v46 }
 0x323   : > { %v4408_v33 = vpop.eup %4407 }
 0x324   : > { %v738_v35 = vmul.f32 %v4408_v33, %v4402_v51  ;;  %v4410_v36 = vpop.eup %4409 }
 0x325   : > { %v739_v39 = vmul.f32 %v4410_v36, %v4400_v48 }
 0x326   : > { %v741_v37 = vpack.c.bf16 %v738_v35, %v737_v34 }
 0x327   : > { %v4412_v38 = vpop.eup %4411 }
 0x328   : > { %v740_v40 = vmul.f32 %v4412_v38, %v4404_v55  ;;  %3926 = vmatprep.mubr.msk.bf16.mxu1 %vm696_vm1, %v741_v37 }
 0x32a   : > { %v742_v41 = vpack.c.bf16 %v740_v40, %v739_v39 }
 0x32c   : > { %3927 = vmatmul.mubr.msk.bf16.vlgmr.msra.gmra.mxu1 %vm696_vm1, %v742_v41 }
 0x32d   : > { %3951 = vmatpush3.bf16.msra.mxu1 %v4684_v1  ;;  %v4952_v1 = vld [vmem:[%s5864_s5 + $0x8] sm:$0xff]  }
 0x32e   : > { %3952 = vmatprep.subr.bf16.mxu1 %v4707_v5  ;;  %3942 = vmatprep.subr.bf16.mxu0 %v4952_v1 }
 0x32f   : > { %3943 = vmatpush3.bf16.msra.mxu0 %v4952_v1 }
 0x331   : > { %3953 = vmatpush3.bf16.msra.mxu1 %v4707_v5  ;;  %v4959_v5 = vld [vmem:[%s5864_s5] sm:$0xff]  }
 0x332   : > { %3954 = vmatprep.subr.bf16.mxu1 %v4724_v8  ;;  %3944 = vmatprep.subr.bf16.mxu0 %v4959_v5 }
 0x333   : > { %3945 = vmatpush3.bf16.msra.mxu0 %v4959_v5 }
 0x334   : > { %953 = vmatprep.subr.bf16.mxu0 %v4679_v0 }
 0x335   : > { %3955 = vmatpush3.bf16.msra.mxu1 %v4724_v8  ;;  %v4968_v8 = vld [vmem:[%s321_s18] sm:$0xff] }
 0x336   : > { %3956 = vmatprep.subr.bf16.mxu1 %v4752_v11 }
 0x339   : > { %3957 = vmatpush3.bf16.msra.mxu1 %v4752_v11  ;;  %v4970_v11 = vld [vmem:[%s321_s18 + $0x8] sm:$0xff] }
 0x33a   : > { %3958 = vmatprep.subr.bf16.mxu1 %v4772_v14 }
 0x33d   : > { %3959 = vmatpush3.bf16.msra.mxu1 %v4772_v14  ;;  %v903_v14 = vpack.c.bf16 %v4970_v11, %v4968_v8 }
 0x33e   : > { %3960 = vmatprep.subr.bf16.mxu1 %v4796_v17 }
 0x33f   : > { %3966 = vmatprep.mubr.bf16.mxu1 %v903_v14 }
 0x341   : > { %3961 = vmatpush3.bf16.msra.mxu1 %v4796_v17  ;;  %v4974_v17 = vld [vmem:[%s321_s18 + $0x10] sm:$0xff]  ;;  %s5083_s18 = sld [smem:[#allocation4 + %s4672_s20]] }
 0x342   : > { %3962 = vmatprep.subr.bf16.mxu1 %v4814_v21 }
 0x345   : > { %3963 = vmatpush3.bf16.msra.mxu1 %v4814_v21  ;;  %v904_v21 = vpack.c.bf16 %v4974_v17, %v4974_v17 }
 0x346   : > { %3964 = vmatprep.subr.bf16.mxu1 %v4837_v26 }
 0x347   : > { %s3134_s15 = scvt.s32.f32 %s5083_s18 }
 0x349   : > { %3965 = vmatpush3.bf16.msra.mxu1 %v4837_v26  ;;  %s3135_s0 = sadd.f32 %s3134_s15, %s3133_s16 }
 0x34c   : > { %3967 = vmatmul.mubr.bf16.vlgmr.msra.gmra.mxu1 %v904_v21 }
 0x3ec   : > { %v3928_v26 = vpop.f32.mrf.mxu1 }
 0x3ee   : > { %v785_v0 = vpop.f32.mrf.mxu1 }
 0x3f0   : > { %v3929_v42 = vpop.f32.mrf.mxu1 }
 0x3f1   : > { %v801_v45 = vpack.c.bf16 %v3929_v42, %v3928_v26 }
 0x3f2   : > { %v788_v43 = vpop.f32.mrf.mxu1 }
 0x3f3   : > { %v800_v44 = vpack.c.bf16 %v788_v43, %v785_v0  ;;  %v5086_v0 = vstv %s5083_s18 }
 0x3f4   : > { %vm5090_vm3 = vcmp.lt.s32.totalorder %v4866_v50, %v5086_v0 }
 0x3f5   : > { %3946 = vmatprep.mubr.bf16.mxu0 %v800_v44 }
 0x3f6   : > { %3947 = vmatmul.mubr.bf16.vlgmr.msra.gmra.mxu0 %v801_v45 }
 0x3f7   : > { %954 = vmatpush1.bf16.msra.mxu0 %v4691_v2  ;;  %985 = vmatprep.mubr.bf16.mxu0 %v4605_v3  ;;  %v4996_v2 = vld [vmem:[%s5863_s4 + $0x168] ss:$12 sps:$4 sm:$0xff]  }
 0x3f8   : > { %955 = vmatprep.subr.bf16.mxu0 %v4697_v4  ;;  %v5003_v4 = vld [vmem:[%s5863_s4 + $0x150] ss:$12 sps:$4 sm:$0xff]  }
 0x3fb   : > { %956 = vmatpush1.bf16.msra.mxu0 %v4712_v6  ;;  %v5011_v6 = vld [vmem:[%s5863_s4 + $0x138] ss:$12 sps:$4 sm:$0xff]  }
 0x3fc   : > { %957 = vmatprep.subr.bf16.mxu0 %v4719_v7  ;;  %v5018_v7 = vld [vmem:[%s5863_s4 + $0x120] ss:$12 sps:$4 sm:$0xff]  }
 0x3ff   : > { %958 = vmatpush1.bf16.msra.mxu0 %v4733_v9  ;;  %v5025_v9 = vld [vmem:[%s5863_s4 + $0x108] ss:$12 sps:$4 sm:$0xff]  }
 0x400   : > { %959 = vmatprep.subr.bf16.mxu0 %v4739_v10  ;;  %v5033_v10 = vld [vmem:[%s5863_s4 + $0xf0] ss:$12 sps:$4 sm:$0xff]  }
 0x403   : > { %960 = vmatpush1.bf16.msra.mxu0 %v4759_v12  ;;  %v5040_v12 = vld [vmem:[%s5863_s4 + $0xd8] ss:$12 sps:$4 sm:$0xff]  }
 0x404   : > { %961 = vmatprep.subr.bf16.mxu0 %v4767_v13  ;;  %v5047_v13 = vld [vmem:[%s5863_s4 + $0xc0] ss:$12 sps:$4 sm:$0xff]  }
 0x407   : > { %962 = vmatpush1.bf16.msra.mxu0 %v4778_v15 }
 0x408   : > { %963 = vmatprep.subr.bf16.mxu0 %v4789_v16 }
 0x40b   : > { %964 = vmatpush1.bf16.msra.mxu0 %v4802_v18 }
 0x40c   : > { %965 = vmatprep.subr.bf16.mxu0 %v4809_v20  ;;  %v3968_v15 = vpop.f32.mrf.mxu1 }
 0x40d   : > { %v1005_v35 = vpack.c.bf16 %v3968_v15, %v3968_v15 }
 0x40e   : > { %v939_v16 = vpop.f32.mrf.mxu1 }
 0x40f   : > { %966 = vmatpush1.bf16.msra.mxu0 %v4827_v24 }
 0x410   : > { %967 = vmatprep.subr.bf16.mxu0 %v4832_v25  ;;  %v3969_v18 = vpop.f32.mrf.mxu1 }
 0x412   : > { %v942_v20 = vpop.f32.mrf.mxu1 }
 0x413   : > { %968 = vmatpush1.bf16.msra.mxu0 %v4846_v27  ;;  %v1004_v24 = vpack.c.bf16 %v942_v20, %v939_v16 }
 0x414   : > { %4006 = vmatprep.subr.bf16.mxu0 %v4996_v2 }
 0x415   : > { %3974 = vmatprep.mubr.bf16.mxu1 %v1004_v24 }
 0x416   : > { %986 = vmatmul.mubr.bf16.vlgmr.msra.gmra.mxu0 %v903_v14 }
 0x417   : > { %995 = vmatprep.mubr.bf16.mxu0 %v4605_v3  ;;  %4007 = vmatpush3.bf16.msra.mxu0 %v4996_v2 }
 0x418   : > { %4008 = vmatprep.subr.bf16.mxu0 %v5003_v4 }
 0x41b   : > { %4009 = vmatpush3.bf16.msra.mxu0 %v5003_v4 }
 0x41c   : > { %4010 = vmatprep.subr.bf16.mxu0 %v5011_v6 }
 0x41e   : > { %996 = vmatmul.mubr.bf16.gmra.mxu0 %v904_v21 }
 0x41f   : > { %4011 = vmatpush3.bf16.msra.mxu0 %v5011_v6 }
 0x420   : > { %4012 = vmatprep.subr.bf16.mxu0 %v5018_v7 }
 0x423   : > { %4013 = vmatpush3.bf16.msra.mxu0 %v5018_v7 }
 0x424   : > { %4014 = vmatprep.subr.bf16.mxu0 %v5025_v9 }
 0x427   : > { %4015 = vmatpush3.bf16.msra.mxu0 %v5025_v9 }
 0x428   : > { %4016 = vmatprep.subr.bf16.mxu0 %v5033_v10 }
 0x42b   : > { %4017 = vmatpush3.bf16.msra.mxu0 %v5033_v10 }
 0x42c   : > { %4018 = vmatprep.subr.bf16.mxu0 %v5040_v12 }
 0x42f   : > { %4019 = vmatpush3.bf16.msra.mxu0 %v5040_v12 }
 0x430   : > { %4020 = vmatprep.subr.bf16.mxu0 %v5047_v13 }
 0x433   : > { %4021 = vmatpush3.bf16.msra.mxu0 %v5047_v13 }
 0x4b6   : > { %v3948_v25 = vpop.f32.mrf.mxu0 }
 0x4b7   : > { %v5061_v54 = vadd.f32 %v3948_v25, %v4850_v28 }
 0x4b8   : > { %v884_v27 = vpop.f32.mrf.mxu0 }
 0x4b9   : > { %v5055_v51 = vadd.f32 %v884_v27, %v4804_v19 }
 0x4ba   : > { %v3949_v46 = vpop.f32.mrf.mxu0 }
 0x4bb   : > { %v5052_v47 = vadd.f32 %v3949_v46, %v4852_v29 }
 0x4bc   : > { %v887_v48 = vpop.f32.mrf.mxu0 }
 0x4bd   : > { %v5058_v52 = vadd.f32 %v887_v48, %v4816_v22  ;;  %v5069_v56 = vpack.c.bf16 %v5052_v47, %v5061_v54 }
 0x4bf   : > { %v5065_v55 = vpack.c.bf16 %v5058_v52, %v5055_v51 }
 0x4c1   : > { %4022 = vmatprep.mubr.bf16.mxu0 %v5065_v55 }
 0x4c2   : > { %4023 = vmatmul.mubr.bf16.vlgmr.msra.gmra.mxu0 %v5069_v56 }
 0x4d6   : > { %v987_v19 = vpop.f32.mrf.mxu0 }
 0x4d8   : > { %v989_v29 = vpop.f32.mrf.mxu0 }
 0x4da   : > { %v991_v63 = vpop.f32.mrf.mxu0 }
 0x4db   : > { %v1006_v31 = vpack.c.bf16 %v991_v63, %v987_v19 }
 0x4dc   : > { %v993_v22 = vpop.f32.mrf.mxu0 }
 0x4dd   : > { %v1100_v36 = vpack.c.bf16 %v993_v22, %v989_v29 }
 0x4de   : > { %v997_v23 = vpop.f32.mrf.mxu0 }
 0x4df   : > { %v1007_v30 = vpack.c.bf16 %v997_v23, %v997_v23 }
 0x4e0   : > { %v999_v28 = vpop.f32.mrf.mxu0 }
 0x4e1   : > { %3970 = vmatprep.subr.bf16.mxu1 %v1007_v30  ;;  %v1101_v34 = vpack.c.bf16 %v999_v28, %v999_v28 }
 0x4e2   : > { %v1001_v32 = vpop.f32.mrf.mxu0  ;;  %3971 = vmatpush3.bf16.xpose.msra.mxu1 %v1007_v30 }
 0x4e3   : > { %3972 = vmatprep.subr.bf16.mxu1 %v1006_v31  ;;  %v1110_v37 = vsel %vm1108_vm2, %v1101_v34, 0 }
 0x4e4   : > { %v1002_v33 = vpop.f32.mrf.mxu0 }
 0x4ea   : > { %3973 = vmatpush3.bf16.xpose.msra.mxu1 %v1006_v31 }
 0x4eb   : > { %4238 = vmatprep.subr.msk.bf16.mxu1 %vm1108_vm2, %v1101_v34 }
 0x4f1   : > { %3975 = vmatmul.mubr.bf16.vlgmr.msra.gmra.mxu1 %v1005_v35 }
 0x4f2   : > { %3979 = vmatpush3.bf16.msra.mxu1 %v1110_v37 }
 0x4f3   : > { %3980 = vmatprep.subr.bf16.mxu1 %v1100_v36 }
 0x4f6   : > { %3981 = vmatpush3.bf16.msra.mxu1 %v1100_v36 }
 0x4f7   : > { %3986 = vmatprep.subr.bf16.mxu1 %v4893_v57 }
 0x582   : > { %v5076_v38 = vpop.f32.mrf.mxu0 }
 0x584   : > { %v1347_v39 = vpop.f32.mrf.mxu0 }
 0x586   : > { %v5078_v40 = vpop.f32.mrf.mxu0 }
 0x587   : > { %v1496_v41 = vpack.c.bf16 %v5078_v40, %v5076_v38 }
 0x588   : > { %v1350_v14 = vpop.f32.mrf.mxu0 }
 0x589   : > { %v1495_v21 = vpack.c.bf16 %v1350_v14, %v1347_v39 }
 0x58b   : > { %4030 = vmatprep.mubr.bf16.mxu0 %v1495_v21 }
 0x5b1   : > { %v3976_v26 = vpop.f32.mrf.mxu1 }
 0x5b2   : > { %v1058_v43 = vmul.f32 0.088388346, %v3976_v26 }
 0x5b3   : > { %v1042_v42 = vpop.f32.mrf.mxu1 }
 0x5b4   : > { %v1056_v44 = vmul.f32 0.088388346, %v1042_v42  ;;  %v1063_v25 = vsel %vm5090_vm3, %v1058_v43, -1e+09 }
 0x5b5   : > { %v3977_v45 = vpop.f32.mrf.mxu1  ;;  %v1071_v46 = vsel %vm1064_vm4, %v1063_v25, -inf }
 0x5b6   : > { %v1061_v16 = vsel %vm5090_vm3, %v1056_v44, -1e+09 }
 0x5b7   : > { %v1045_v18 = vpop.f32.mrf.mxu1  ;;  %v1065_v20 = vsel %vm1064_vm4, %v1061_v16, -inf }
 0x5b8   : > { %v1057_v24 = vmul.f32 0.088388346, %v1045_v18  ;;  %1066 = vmax.xlane.f32.xlu0 %v1065_v20 }
 0x5ba   : > { %v1062_v27 = vsel %vm5090_vm3, %v1057_v24, -1e+09 }
 0x5bb   : > { %v1068_v48 = vsel %vm1064_vm4, %v1062_v27, -inf }
 0x5bc   : > { %1072 = vmax.xlane.f32.xlu0 %v1071_v46  ;;  %1069 = vmax.xlane.f32.xlu1 %v1068_v48  ;;  %v5150_v46 = vld [vmem:[%s5863_s4 + $0x140] ss:$12 sps:$4 sm:$0xff]   ;;  %v5156_v48 = vld [vmem:[%s5863_s4 + $0x13c] ss:$12 sps:$4 sm:$0xff]  }
 0x641   : > { %v1067_v19 = vpop.xlane.xlu0 %1066 }
 0x642   : > { %v1074_v29 = vsub.f32 %v1061_v16, %v1067_v19  ;;  %v5162_v19 = vld [vmem:[%s5863_s4 + $0x128] ss:$12 sps:$4 sm:$0xff]  }
 0x644   : > { %v1077_v63 = vmul.f32 1.442695, %v1074_v29  ;;  %v5168_v29 = vld [vmem:[%s5863_s4 + $0x124] ss:$12 sps:$4 sm:$0xff]  }
 0x645   : > { %v1073_v22 = vpop.xlane.xlu0 %1072  ;;  %v1070_v23 = vpop.xlane.xlu1 %1069 }
 0x646   : > { %4413 = vpow2.f32 %v1077_v63  ;;  %v1076_v30 = vsub.f32 %v1063_v25, %v1073_v22  ;;  %v1075_v28 = vsub.f32 %v1062_v27, %v1070_v23  ;;  %v5143_v27 = vld [vmem:[%s5863_s4 + $0x154] ss:$12 sps:$4 sm:$0xff]   ;;  %v5174_v63 = vld [vmem:[%s5863_s4 + $0x110] ss:$12 sps:$4 sm:$0xff]   ;;  %v5180_v22 = vld [vmem:[%s5863_s4 + $0x10c] ss:$12 sps:$4 sm:$0xff]  }
 0x647   : > { %v5186_v23 = vld [vmem:[%s5863_s4 + $0xf8] ss:$12 sps:$4 sm:$0xff]  }
 0x648   : > { %v1081_v31 = vmul.f32 1.442695, %v1076_v30  ;;  %v1079_v32 = vmul.f32 1.442695, %v1075_v28  ;;  %v5192_v30 = vld [vmem:[%s5863_s4 + $0xf4] ss:$12 sps:$4 sm:$0xff]  }
 0x649   : > { %v5199_v28 = vld [vmem:[%s5863_s4 + $0xe0] ss:$12 sps:$4 sm:$0xff]  }
 0x64a   : > { %4415 = vpow2.f32 %v1081_v31  ;;  %v5204_v31 = vld [vmem:[%s5863_s4 + $0xdc] ss:$12 sps:$4 sm:$0xff]  }
 0x64b   : > { %4417 = vpow2.f32 %v1079_v32  ;;  %v5211_v32 = vld [vmem:[%s5863_s4 + $0xc8] ss:$12 sps:$4 sm:$0xff]  }
 0x653   : > { %v4414_v33 = vpop.eup %4413 }
 0x654   : > { %v1083_v34 = vsel %vm1064_vm4, %v4414_v33, 0.0 }
 0x655   : > { %1084 = vadd.xlane.f32.xlu1 %v1083_v34 }
 0x657   : > { %v4416_v35 = vpop.eup %4415 }
 0x658   : > { %v4418_v36 = vpop.eup %4417  ;;  %v1089_v37 = vsel %vm1064_vm4, %v4416_v35, 0.0 }
 0x659   : > { %1090 = vadd.xlane.f32.xlu1 %v1089_v37  ;;  %v1086_v39 = vsel %vm1064_vm4, %v4418_v36, 0.0 }
 0x65a   : > { %1087 = vadd.xlane.f32.xlu0 %v1086_v39 }
 0x6de   : > { %v1085_v14 = vpop.xlane.xlu1 %1084 }
 0x6df   : > { %4419 = vrcp.f32 %v1085_v14 }
 0x6e2   : > { %v1091_v21 = vpop.xlane.xlu1 %1090 }
 0x6e3   : > { %v1088_v26 = vpop.xlane.xlu0 %1087  ;;  %4421 = vrcp.f32 %v1091_v21 }
 0x6e4   : > { %4423 = vrcp.f32 %v1088_v26 }
 0x6ec   : > { %v4420_v42 = vpop.eup %4419 }
 0x6ed   : > { %v1095_v16 = vmul.f32 %v4420_v42, %v4414_v33  ;;  %v5216_v33 = vld [vmem:[%s5863_s4 + $0xc4] ss:$12 sps:$4 sm:$0xff]  }
 0x6f0   : > { %v4422_v43 = vpop.eup %4421 }
 0x6f1   : > { %v4424_v44 = vpop.eup %4423  ;;  %v1097_v45 = vmul.f32 %v4422_v43, %v4416_v35 }
 0x6f2   : > { %v1096_v18 = vmul.f32 %v4424_v44, %v4418_v36 }
 0x6f3   : > { %v1099_v20 = vpack.c.bf16 %v1097_v45, %v1097_v45 }
 0x6f4   : > { %v1098_v24 = vpack.c.bf16 %v1096_v18, %v1095_v16 }
 0x6f6   : > { %3982 = vmatprep.mubr.msk.bf16.mxu1 %vm1064_vm4, %v1098_v24 }
 0x6f7   : > { %3983 = vmatmul.mubr.msk.bf16.vlgmr.msra.gmra.mxu1 %vm1064_vm4, %v1099_v20 }
 0x6f8   : > { %3987 = vmatpush3.bf16.msra.mxu1 %v4893_v57  ;;  %v5126_v57 = vld [vmem:[%s5863_s4 + $0x170] ss:$12 sps:$4 sm:$0xff]  }
 0x6f9   : > { %3988 = vmatprep.subr.bf16.mxu1 %v4898_v58 }
 0x6fc   : > { %3989 = vmatpush3.bf16.msra.mxu1 %v4898_v58 }
 0x6fd   : > { %3990 = vmatprep.subr.bf16.mxu1 %v4906_v59 }
 0x700   : > { %3991 = vmatpush3.bf16.msra.mxu1 %v4906_v59 }
 0x701   : > { %3992 = vmatprep.subr.bf16.mxu1 %v4913_v60 }
 0x704   : > { %3993 = vmatpush3.bf16.msra.mxu1 %v4913_v60 }
 0x705   : > { %3994 = vmatprep.subr.bf16.mxu1 %v4920_v61 }
 0x708   : > { %3995 = vmatpush3.bf16.msra.mxu1 %v4920_v61 }
 0x709   : > { %3996 = vmatprep.subr.bf16.mxu1 %v4927_v62 }
 0x70c   : > { %3997 = vmatpush3.bf16.msra.mxu1 %v4927_v62 }
 0x70d   : > { %3998 = vmatprep.subr.bf16.mxu1 %v4952_v1 }
 0x710   : > { %3999 = vmatpush3.bf16.msra.mxu1 %v4952_v1  ;;  %v5132_v1 = vld [vmem:[%s5863_s4 + $0x16c] ss:$12 sps:$4 sm:$0xff]  }
 0x711   : > { %4000 = vmatprep.subr.bf16.mxu1 %v4959_v5 }
 0x714   : > { %4001 = vmatpush3.bf16.msra.mxu1 %v4959_v5  ;;  %v5137_v5 = vld [vmem:[%s5863_s4 + $0x158] ss:$12 sps:$4 sm:$0xff]  }
 0x715   : > { %1444 = vmatprep.subr.bf16.mxu1 %v5126_v57 }
 0x7b7   : > { %v3984_v58 = vpop.f32.mrf.mxu1 }
 0x7b8   : > { %v1161_v25 = vpack.c.bf16 %v3984_v58, %v3984_v58 }
 0x7b9   : > { %v1146_v59 = vpop.f32.mrf.mxu1 }
 0x7bb   : > { %v3985_v60 = vpop.f32.mrf.mxu1 }
 0x7bd   : > { %v1149_v61 = vpop.f32.mrf.mxu1 }
 0x7be   : > { %v1160_v62 = vpack.c.bf16 %v1149_v61, %v1146_v59 }
 0x7c0   : > { %4002 = vmatprep.mubr.bf16.mxu1 %v1160_v62 }
 0x7c1   : > { %4003 = vmatmul.mubr.bf16.vlgmr.msra.gmra.mxu1 %v1161_v25 }
 0x7c2   : > { %1445 = vmatpush1.bf16.msra.mxu1 %v5132_v1  ;;  %1476 = vmatprep.mubr.bf16.mxu1 %v4605_v3 }
 0x7c3   : > { %1446 = vmatprep.subr.bf16.mxu1 %v5137_v5 }
 0x7c6   : > { %1447 = vmatpush1.bf16.msra.mxu1 %v5143_v27 }
 0x7c7   : > { %1448 = vmatprep.subr.bf16.mxu1 %v5150_v46 }
 0x7ca   : > { %1449 = vmatpush1.bf16.msra.mxu1 %v5156_v48 }
 0x7cb   : > { %1450 = vmatprep.subr.bf16.mxu1 %v5162_v19 }
 0x7ce   : > { %1451 = vmatpush1.bf16.msra.mxu1 %v5168_v29 }
 0x7cf   : > { %1452 = vmatprep.subr.bf16.mxu1 %v5174_v63 }
 0x7d2   : > { %1453 = vmatpush1.bf16.msra.mxu1 %v5180_v22 }
 0x7d3   : > { %1454 = vmatprep.subr.bf16.mxu1 %v5186_v23 }
 0x7d6   : > { %1455 = vmatpush1.bf16.msra.mxu1 %v5192_v30 }
 0x7d7   : > { %1456 = vmatprep.subr.bf16.mxu1 %v5199_v28 }
 0x7da   : > { %1457 = vmatpush1.bf16.msra.mxu1 %v5204_v31 }
 0x7db   : > { %1458 = vmatprep.subr.bf16.mxu1 %v5211_v32 }
 0x7de   : > { %1459 = vmatpush1.bf16.msra.mxu1 %v5216_v33 }
 0x7df   : > { %4062 = vmatprep.subr.bf16.mxu1 %v4996_v2 }
 0x881   : > { %v4004_v34 = vpop.f32.mrf.mxu1 }
 0x882   : > { %v5232_v26 = vadd.f32 %v4004_v34, %v4974_v17 }
 0x883   : > { %v1196_v35 = vpop.f32.mrf.mxu1 }
 0x884   : > { %v5222_v39 = vadd.f32 %v1196_v35, %v4968_v8  ;;  %v1363_v8 = vpack.c.bf16 %v5232_v26, %v5232_v26 }
 0x885   : > { %v4005_v36 = vpop.f32.mrf.mxu1 }
 0x887   : > { %v1199_v37 = vpop.f32.mrf.mxu1 }
 0x888   : > { %v5225_v14 = vadd.f32 %v1199_v37, %v4970_v11 }
 0x88a   : > { %v1362_v21 = vpack.c.bf16 %v5225_v14, %v5222_v39 }
 0x88c   : > { %1477 = vmatmul.mubr.bf16.vlgmr.msra.gmra.mxu1 %v1362_v21 }
 0x88d   : > { %4063 = vmatpush3.bf16.msra.mxu1 %v4996_v2  ;;  %1486 = vmatprep.mubr.bf16.mxu1 %v4605_v3 }
 0x88e   : > { %4064 = vmatprep.subr.bf16.mxu1 %v5003_v4 }
 0x891   : > { %4065 = vmatpush3.bf16.msra.mxu1 %v5003_v4 }
 0x892   : > { %4066 = vmatprep.subr.bf16.mxu1 %v5011_v6 }
 0x894   : > { %1487 = vmatmul.mubr.bf16.gmra.mxu1 %v1363_v8 }
 0x895   : > { %4067 = vmatpush3.bf16.msra.mxu1 %v5011_v6  ;;  %4078 = vmatprep.mubr.bf16.mxu1 %v1362_v21 }
 0x896   : > { %4068 = vmatprep.subr.bf16.mxu1 %v5018_v7 }
 0x899   : > { %4069 = vmatpush3.bf16.msra.mxu1 %v5018_v7 }
 0x89a   : > { %4070 = vmatprep.subr.bf16.mxu1 %v5025_v9 }
 0x89d   : > { %4071 = vmatpush3.bf16.msra.mxu1 %v5025_v9 }
 0x89e   : > { %4072 = vmatprep.subr.bf16.mxu1 %v5033_v10 }
 0x8a1   : > { %4073 = vmatpush3.bf16.msra.mxu1 %v5033_v10 }
 0x8a2   : > { %4074 = vmatprep.subr.bf16.mxu1 %v5040_v12 }
 0x8a5   : > { %4075 = vmatpush3.bf16.msra.mxu1 %v5040_v12 }
 0x8a6   : > { %4076 = vmatprep.subr.bf16.mxu1 %v5047_v13 }
 0x8a9   : > { %4077 = vmatpush3.bf16.msra.mxu1 %v5047_v13 }
 0x8ac   : > { %4079 = vmatmul.mubr.bf16.vlgmr.msra.gmra.mxu1 %v1363_v8 }
 0x94c   : > { %v1478_v11 = vpop.f32.mrf.mxu1 }
 0x94e   : > { %v1480_v17 = vpop.f32.mrf.mxu1 }
 0x950   : > { %v1482_v2 = vpop.f32.mrf.mxu1 }
 0x951   : > { %v1497_v42 = vpack.c.bf16 %v1482_v2, %v1478_v11 }
 0x952   : > { %v1484_v4 = vpop.f32.mrf.mxu1 }
 0x953   : > { %v1602_v12 = vpack.c.bf16 %v1484_v4, %v1480_v17 }
 0x954   : > { %v1488_v6 = vpop.f32.mrf.mxu1 }
 0x955   : > { %v1498_v7 = vpack.c.bf16 %v1488_v6, %v1488_v6 }
 0x956   : > { %v1490_v9 = vpop.f32.mrf.mxu1 }
 0x957   : > { %4026 = vmatprep.subr.bf16.mxu0 %v1498_v7  ;;  %v1603_v44 = vpack.c.bf16 %v1490_v9, %v1490_v9 }
 0x958   : > { %v1492_v43 = vpop.f32.mrf.mxu1  ;;  %4027 = vmatpush3.bf16.xpose.msra.mxu0 %v1498_v7 }
 0x959   : > { %4028 = vmatprep.subr.bf16.mxu0 %v1497_v42  ;;  %v1611_v13 = vsel %vm1108_vm2, %v1603_v44, 0 }
 0x95a   : > { %v1493_v10 = vpop.f32.mrf.mxu1 }
 0x960   : > { %4029 = vmatpush3.bf16.xpose.msra.mxu0 %v1497_v42 }
 0x961   : > { %4239 = vmatprep.subr.msk.bf16.mxu0 %vm1108_vm2, %v1603_v44 }
 0x967   : > { %4031 = vmatmul.mubr.bf16.vlgmr.msra.gmra.mxu0 %v1496_v41 }
 0x968   : > { %4035 = vmatpush3.bf16.msra.mxu0 %v1611_v13 }
 0x969   : > { %4036 = vmatprep.subr.bf16.mxu0 %v1602_v12 }
 0x96c   : > { %v5255_v45 = vpop.f32.mrf.mxu1  ;;  %4037 = vmatpush3.bf16.msra.mxu0 %v1602_v12 }
 0x96e   : > { %v1799_v16 = vpop.f32.mrf.mxu1 }
 0x970   : > { %v4081_v18 = vpop.f32.mrf.mxu1 }
 0x972   : > { %v1802_v20 = vpop.f32.mrf.mxu1 }
 0x973   : > { %v1866_v24 = vpack.c.bf16 %v1802_v20, %v1799_v16 }
 0x975   : > { %4086 = vmatprep.mubr.bf16.mxu1 %v1866_v24 }
 0xa27   : > { %v4032_v58 = vpop.f32.mrf.mxu0 }
 0xa28   : > { %v1550_v60 = vmul.f32 0.088388346, %v4032_v58 }
 0xa29   : > { %v1533_v59 = vpop.f32.mrf.mxu0 }
 0xa2a   : > { %v1548_v61 = vmul.f32 0.088388346, %v1533_v59  ;;  %v1554_v35 = vsel %vm5090_vm3, %v1550_v60, -1e+09 }
 0xa2b   : > { %v4033_v62 = vpop.f32.mrf.mxu0  ;;  %v1562_v37 = vsel %vm1064_vm4, %v1554_v35, -inf }
 0xa2c   : > { %v1552_v25 = vsel %vm5090_vm3, %v1548_v61, -1e+09  ;;  %v1551_v41 = vmul.f32 0.088388346, %v4033_v62  ;;  %v5276_v62 = vld [vmem:[%s5864_s5 + $0x78] sm:$0xff]  }
 0xa2d   : > { %v1536_v38 = vpop.f32.mrf.mxu0  ;;  %v1556_v40 = vsel %vm1064_vm4, %v1552_v25, -inf  ;;  %4042 = vmatprep.subr.bf16.mxu0 %v5276_v62 }
 0xa2e   : > { %v1549_v34 = vmul.f32 0.088388346, %v1536_v38  ;;  %1557 = vmax.xlane.f32.xlu0 %v1556_v40  ;;  %v1555_v8 = vsel %vm5090_vm3, %v1551_v41, -1e+09 }
 0xa2f   : > { %v1565_v11 = vsel %vm1064_vm4, %v1555_v8, -inf }
 0xa30   : > { %v1553_v36 = vsel %vm5090_vm3, %v1549_v34, -1e+09 }
 0xa31   : > { %v1559_v21 = vsel %vm1064_vm4, %v1553_v36, -inf }
 0xa32   : > { %1563 = vmax.xlane.f32.xlu0 %v1562_v37  ;;  %1560 = vmax.xlane.f32.xlu1 %v1559_v21 }
 0xa36   : > { %1566 = vmax.xlane.f32.xlu1 %v1565_v11 }
 0xab7   : > { %v1558_v17 = vpop.xlane.xlu0 %1557 }
 0xab8   : > { %v1568_v2 = vsub.f32 %v1552_v25, %v1558_v17 }
 0xaba   : > { %v1572_v4 = vmul.f32 1.442695, %v1568_v2 }
 0xabb   : > { %v1564_v6 = vpop.xlane.xlu0 %1563  ;;  %v1561_v7 = vpop.xlane.xlu1 %1560 }
 0xabc   : > { %4425 = vpow2.f32 %v1572_v4  ;;  %v1570_v9 = vsub.f32 %v1554_v35, %v1564_v6  ;;  %v1569_v42 = vsub.f32 %v1553_v36, %v1561_v7  ;;  %v5283_v6 = vld [vmem:[%s5864_s5 + $0x70] sm:$0xff]   ;;  %v5291_v7 = vld [vmem:[%s5864_s5 + $0x68] sm:$0xff]  }
 0xabe   : > { %v1576_v43 = vmul.f32 1.442695, %v1570_v9  ;;  %v1574_v10 = vmul.f32 1.442695, %v1569_v42  ;;  %v5298_v9 = vld [vmem:[%s5864_s5 + $0x60] sm:$0xff]   ;;  %v5305_v42 = vld [vmem:[%s5864_s5 + $0x58] sm:$0xff]  }
 0xabf   : > { %v1567_v44 = vpop.xlane.xlu1 %1566 }
 0xac0   : > { %4427 = vpow2.f32 %v1576_v43  ;;  %v1571_v12 = vsub.f32 %v1555_v8, %v1567_v44  ;;  %v5312_v43 = vld [vmem:[%s5864_s5 + $0x50] sm:$0xff]   ;;  %v5327_v44 = vld [vmem:[%s5864_s5 + $0x40] sm:$0xff]  }
 0xac1   : > { %4429 = vpow2.f32 %v1574_v10  ;;  %v5320_v10 = vld [vmem:[%s5864_s5 + $0x48] sm:$0xff]  }
 0xac2   : > { %v1578_v13 = vmul.f32 1.442695, %v1571_v12 }
 0xac4   : > { %4431 = vpow2.f32 %v1578_v13 }
 0xac9   : > { %v4426_v16 = vpop.eup %4425 }
 0xaca   : > { %v1580_v18 = vsel %vm1064_vm4, %v4426_v16, 0.0 }
 0xacb   : > { %1581 = vadd.xlane.f32.xlu0 %v1580_v18 }
 0xacd   : > { %v4428_v20 = vpop.eup %4427 }
 0xace   : > { %v4430_v24 = vpop.eup %4429  ;;  %v1586_v58 = vsel %vm1064_vm4, %v4428_v20, 0.0 }
 0xacf   : > { %1587 = vadd.xlane.f32.xlu0 %v1586_v58  ;;  %v1583_v59 = vsel %vm1064_vm4, %v4430_v24, 0.0 }
 0xad0   : > { %1584 = vadd.xlane.f32.xlu1 %v1583_v59 }
 0xad1   : > { %v4432_v60 = vpop.eup %4431 }
 0xad2   : > { %v1589_v61 = vsel %vm1064_vm4, %v4432_v60, 0.0 }
 0xad4   : > { %1590 = vadd.xlane.f32.xlu1 %v1589_v61 }
 0xb54   : > { %v1582_v25 = vpop.xlane.xlu0 %1581 }
 0xb55   : > { %4433 = vrcp.f32 %v1582_v25 }
 0xb58   : > { %v1588_v38 = vpop.xlane.xlu0 %1587 }
 0xb59   : > { %v1585_v40 = vpop.xlane.xlu1 %1584 }
 0xb5a   : > { %4435 = vrcp.f32 %v1585_v40 }
 0xb5b   : > { %4437 = vrcp.f32 %v1588_v38 }
 0xb5d   : > { %v1591_v41 = vpop.xlane.xlu1 %1590 }
 0xb5e   : > { %4439 = vrcp.f32 %v1591_v41  ;;  %v1867_v41 = vpack.c.bf16 %v5255_v45, %v5255_v45 }
 0xb62   : > { %v4434_v34 = vpop.eup %4433 }
 0xb63   : > { %v1596_v36 = vmul.f32 %v4434_v34, %v4426_v16 }
 0xb67   : > { %v4436_v35 = vpop.eup %4435 }
 0xb68   : > { %v1597_v37 = vmul.f32 %v4436_v35, %v4430_v24  ;;  %v4438_v21 = vpop.eup %4437 }
 0xb69   : > { %v1598_v17 = vmul.f32 %v4438_v21, %v4428_v20 }
 0xb6a   : > { %v1600_v8 = vpack.c.bf16 %v1597_v37, %v1596_v36 }
 0xb6b   : > { %v4440_v11 = vpop.eup %4439 }
 0xb6c   : > { %4038 = vmatprep.mubr.msk.bf16.mxu0 %vm1064_vm4, %v1600_v8  ;;  %v1599_v2 = vmul.f32 %v4440_v11, %v4432_v60 }
 0xb6e   : > { %v1601_v4 = vpack.c.bf16 %v1599_v2, %v1598_v17 }
 0xb70   : > { %4039 = vmatmul.mubr.msk.bf16.vlgmr.msra.gmra.mxu0 %vm1064_vm4, %v1601_v4 }
 0xb71   : > { %4043 = vmatpush3.bf16.msra.mxu0 %v5276_v62 }
 0xb72   : > { %4044 = vmatprep.subr.bf16.mxu0 %v5283_v6 }
 0xb75   : > { %4045 = vmatpush3.bf16.msra.mxu0 %v5283_v6 }
 0xb76   : > { %4046 = vmatprep.subr.bf16.mxu0 %v5291_v7 }
 0xb79   : > { %4047 = vmatpush3.bf16.msra.mxu0 %v5291_v7 }
 0xb7a   : > { %4048 = vmatprep.subr.bf16.mxu0 %v5298_v9 }
 0xb7d   : > { %4049 = vmatpush3.bf16.msra.mxu0 %v5298_v9 }
 0xb7e   : > { %4050 = vmatprep.subr.bf16.mxu0 %v5305_v42 }
 0xb81   : > { %4051 = vmatpush3.bf16.msra.mxu0 %v5305_v42 }
 0xb82   : > { %4052 = vmatprep.subr.bf16.mxu0 %v5312_v43 }
 0xb85   : > { %4053 = vmatpush3.bf16.msra.mxu0 %v5312_v43 }
 0xb86   : > { %4054 = vmatprep.subr.bf16.mxu0 %v5320_v10 }
 0xb89   : > { %4055 = vmatpush3.bf16.msra.mxu0 %v5320_v10 }
 0xb8a   : > { %4056 = vmatprep.subr.bf16.mxu0 %v5327_v44 }
 0xb8d   : > { %4057 = vmatpush3.bf16.msra.mxu0 %v5327_v44 }
 0xb8e   : > { %1813 = vmatprep.subr.bf16.mxu0 %v5126_v57  ;;  %v5350_v57 = vld [vmem:[%s5863_s4 + $0x228] ss:$12 sps:$4 sm:$0xff]  }
 0xc30   : > { %v4040_v12 = vpop.f32.mrf.mxu0 }
 0xc32   : > { %v1647_v13 = vpop.f32.mrf.mxu0 }
 0xc34   : > { %v4041_v16 = vpop.f32.mrf.mxu0 }
 0xc35   : > { %v1663_v24 = vpack.c.bf16 %v4041_v16, %v4040_v12 }
 0xc36   : > { %v1650_v18 = vpop.f32.mrf.mxu0 }
 0xc37   : > { %v1662_v20 = vpack.c.bf16 %v1650_v18, %v1647_v13 }
 0xc39   : > { %4058 = vmatprep.mubr.bf16.mxu0 %v1662_v20 }
 0xc3a   : > { %4059 = vmatmul.mubr.bf16.vlgmr.msra.gmra.mxu0 %v1663_v24 }
 0xc3b   : > { %1814 = vmatpush1.bf16.msra.mxu0 %v5132_v1  ;;  %1845 = vmatprep.mubr.bf16.mxu0 %v4605_v3  ;;  %v5357_v1 = vld [vmem:[%s5863_s4 + $0x210] ss:$12 sps:$4 sm:$0xff]  }
 0xc3c   : > { %1815 = vmatprep.subr.bf16.mxu0 %v5137_v5  ;;  %v5366_v5 = vld [vmem:[%s5863_s4 + $0x1f8] ss:$12 sps:$4 sm:$0xff]  }
 0xc3f   : > { %1816 = vmatpush1.bf16.msra.mxu0 %v5143_v27  ;;  %v5373_v27 = vld [vmem:[%s5863_s4 + $0x1e0] ss:$12 sps:$4 sm:$0xff]  }
 0xc40   : > { %1817 = vmatprep.subr.bf16.mxu0 %v5150_v46  ;;  %v5389_v46 = vld [vmem:[%s5863_s4 + $0x1b0] ss:$12 sps:$4 sm:$0xff]  }
 0xc43   : > { %1818 = vmatpush1.bf16.msra.mxu0 %v5156_v48  ;;  %v5403_v48 = vld [vmem:[%s5863_s4 + $0x180] ss:$12 sps:$4 sm:$0xff]  }
 0xc44   : > { %1819 = vmatprep.subr.bf16.mxu0 %v5162_v19 }
 0xc47   : > { %1820 = vmatpush1.bf16.msra.mxu0 %v5168_v29 }
 0xc48   : > { %1821 = vmatprep.subr.bf16.mxu0 %v5174_v63 }
 0xc4b   : > { %1822 = vmatpush1.bf16.msra.mxu0 %v5180_v22 }
 0xc4c   : > { %1823 = vmatprep.subr.bf16.mxu0 %v5186_v23 }
 0xc4f   : > { %1824 = vmatpush1.bf16.msra.mxu0 %v5192_v30 }
 0xc50   : > { %1825 = vmatprep.subr.bf16.mxu0 %v5199_v28 }
 0xc53   : > { %1826 = vmatpush1.bf16.msra.mxu0 %v5204_v31 }
 0xc54   : > { %1827 = vmatprep.subr.bf16.mxu0 %v5211_v32 }
 0xc57   : > { %1828 = vmatpush1.bf16.msra.mxu0 %v5216_v33 }
 0xc58   : > { %4118 = vmatprep.subr.bf16.mxu0 %v5350_v57 }
 0xc5a   : > { %1846 = vmatmul.mubr.bf16.vlgmr.msra.gmra.mxu0 %v5065_v55  ;;  %v5381_v55 = vld [vmem:[%s5863_s4 + $0x1c8] ss:$12 sps:$4 sm:$0xff]  }
 0xc5b   : > { %1855 = vmatprep.mubr.bf16.mxu0 %v4605_v3  ;;  %4119 = vmatpush3.bf16.msra.mxu0 %v5350_v57 }
 0xc5c   : > { %4120 = vmatprep.subr.bf16.mxu0 %v5357_v1 }
 0xc5f   : > { %4121 = vmatpush3.bf16.msra.mxu0 %v5357_v1 }
 0xc60   : > { %4122 = vmatprep.subr.bf16.mxu0 %v5366_v5 }
 0xc62   : > { %1856 = vmatmul.mubr.bf16.gmra.mxu0 %v5069_v56  ;;  %v5396_v56 = vld [vmem:[%s5863_s4 + $0x198] ss:$12 sps:$4 sm:$0xff]  }
 0xc63   : > { %4123 = vmatpush3.bf16.msra.mxu0 %v5366_v5 }
 0xc64   : > { %4124 = vmatprep.subr.bf16.mxu0 %v5373_v27 }
 0xc67   : > { %4125 = vmatpush3.bf16.msra.mxu0 %v5373_v27 }
 0xc68   : > { %4126 = vmatprep.subr.bf16.mxu0 %v5381_v55 }
 0xc6b   : > { %4127 = vmatpush3.bf16.msra.mxu0 %v5381_v55 }
 0xc6c   : > { %4128 = vmatprep.subr.bf16.mxu0 %v5389_v46 }
 0xc6f   : > { %4129 = vmatpush3.bf16.msra.mxu0 %v5389_v46 }
 0xc70   : > { %4130 = vmatprep.subr.bf16.mxu0 %v5396_v56 }
 0xc73   : > { %4131 = vmatpush3.bf16.msra.mxu0 %v5396_v56 }
 0xc74   : > { %4132 = vmatprep.subr.bf16.mxu0 %v5403_v48 }
 0xc77   : > { %4133 = vmatpush3.bf16.msra.mxu0 %v5403_v48 }
 0xcfa   : > { %v4060_v19 = vpop.f32.mrf.mxu0 }
 0xcfb   : > { %v5417_v31 = vadd.f32 %v4060_v19, %v5061_v54 }
 0xcfc   : > { %v1746_v29 = vpop.f32.mrf.mxu0 }
 0xcfd   : > { %v5411_v30 = vadd.f32 %v1746_v29, %v5055_v51 }
 0xcfe   : > { %v4061_v63 = vpop.f32.mrf.mxu0 }
 0xcff   : > { %v5408_v22 = vadd.f32 %v4061_v63, %v5052_v47 }
 0xd00   : > { %v1749_v23 = vpop.f32.mrf.mxu0 }
 0xd01   : > { %v5414_v28 = vadd.f32 %v1749_v23, %v5058_v52  ;;  %v5425_v33 = vpack.c.bf16 %v5408_v22, %v5417_v31 }
 0xd03   : > { %v5421_v32 = vpack.c.bf16 %v5414_v28, %v5411_v30 }
 0xd05   : > { %4134 = vmatprep.mubr.bf16.mxu0 %v5421_v32 }
 0xd06   : > { %4135 = vmatmul.mubr.bf16.vlgmr.msra.gmra.mxu0 %v5425_v33 }
 0xd1a   : > { %v1847_v47 = vpop.f32.mrf.mxu0 }
 0xd1c   : > { %v1849_v51 = vpop.f32.mrf.mxu0 }
 0xd1e   : > { %v1851_v58 = vpop.f32.mrf.mxu0 }
 0xd1f   : > { %v1868_v25 = vpack.c.bf16 %v1851_v58, %v1847_v47 }
 0xd20   : > { %v1853_v52 = vpop.f32.mrf.mxu0 }
 0xd21   : > { %v1959_v34 = vpack.c.bf16 %v1853_v52, %v1849_v51 }
 0xd22   : > { %v1857_v59 = vpop.f32.mrf.mxu0 }
 0xd24   : > { %v1859_v60 = vpop.f32.mrf.mxu0 }
 0xd26   : > { %v1861_v54 = vpop.f32.mrf.mxu0 }
 0xd27   : > { %v1869_v61 = vpack.c.bf16 %v1861_v54, %v1857_v59 }
 0xd28   : > { %v1863_v38 = vpop.f32.mrf.mxu0 }
 0xd29   : > { %4082 = vmatprep.subr.bf16.mxu1 %v1869_v61  ;;  %v1960_v40 = vpack.c.bf16 %v1863_v38, %v1859_v60 }
 0xd2a   : > { %4083 = vmatpush3.bf16.xpose.msra.mxu1 %v1869_v61 }
 0xd2b   : > { %4084 = vmatprep.subr.bf16.mxu1 %v1868_v25 }
 0xd32   : > { %4085 = vmatpush3.bf16.xpose.msra.mxu1 %v1868_v25 }
 0xd33   : > { %4090 = vmatprep.subr.bf16.mxu1 %v1960_v40 }
 0xd39   : > { %4087 = vmatmul.mubr.bf16.vlgmr.msra.gmra.mxu1 %v1867_v41 }
 0xd3a   : > { %4091 = vmatpush3.bf16.msra.mxu1 %v1960_v40 }
 0xd3b   : > { %4092 = vmatprep.subr.bf16.mxu1 %v1959_v34 }
 0xd3e   : > { %4093 = vmatpush3.bf16.msra.mxu1 %v1959_v34 }
 0xd3f   : > { %4098 = vmatprep.subr.bf16.mxu1 %v5276_v62 }
 0xdc6   : > { %v5432_v35 = vpop.f32.mrf.mxu0 }
 0xdc8   : > { %v2202_v36 = vpop.f32.mrf.mxu0 }
 0xdca   : > { %v5434_v37 = vpop.f32.mrf.mxu0 }
 0xdcb   : > { %v2351_v21 = vpack.c.bf16 %v5434_v37, %v5432_v35 }
 0xdcc   : > { %v2205_v8 = vpop.f32.mrf.mxu0 }
 0xdcd   : > { %v2350_v11 = vpack.c.bf16 %v2205_v8, %v2202_v36 }
 0xdcf   : > { %4142 = vmatprep.mubr.bf16.mxu0 %v2350_v11 }
 0xdf9   : > { %v4088_v17 = vpop.f32.mrf.mxu1 }
 0xdfa   : > { %v1920_v2 = vmul.f32 0.088388346, %v4088_v17 }
 0xdfb   : > { %v1904_v45 = vpop.f32.mrf.mxu1 }
 0xdfc   : > { %v1918_v4 = vmul.f32 0.088388346, %v1904_v45  ;;  %v1923_v24 = vsel %vm4870_vm0, %v1920_v2, -1e+09 }
 0xdfd   : > { %v4089_v12 = vpop.f32.mrf.mxu1  ;;  %v1930_v29 = vsel %vm696_vm1, %v1923_v24, -inf }
 0xdfe   : > { %v1921_v13 = vsel %vm4870_vm0, %v1918_v4, -1e+09 }
 0xdff   : > { %v1907_v16 = vpop.f32.mrf.mxu1  ;;  %v1924_v18 = vsel %vm696_vm1, %v1921_v13, -inf }
 0xe00   : > { %v1919_v20 = vmul.f32 0.088388346, %v1907_v16  ;;  %1925 = vmax.xlane.f32.xlu0 %v1924_v18 }
 0xe02   : > { %v1922_v19 = vsel %vm4870_vm0, %v1919_v20, -1e+09 }
 0xe03   : > { %v1927_v63 = vsel %vm696_vm1, %v1922_v19, -inf }
 0xe04   : > { %1931 = vmax.xlane.f32.xlu0 %v1930_v29  ;;  %1928 = vmax.xlane.f32.xlu1 %v1927_v63  ;;  %v5494_v29 = vld [vmem:[%s5863_s4 + $0x200] ss:$12 sps:$4 sm:$0xff]   ;;  %v5500_v63 = vld [vmem:[%s5863_s4 + $0x1fc] ss:$12 sps:$4 sm:$0xff]  }
 0xe89   : > { %v1926_v23 = vpop.xlane.xlu0 %1925 }
 0xe8a   : > { %v1933_v47 = vsub.f32 %v1921_v13, %v1926_v23  ;;  %v5506_v23 = vld [vmem:[%s5863_s4 + $0x1e8] ss:$12 sps:$4 sm:$0xff]  }
 0xe8c   : > { %v1936_v51 = vmul.f32 1.442695, %v1933_v47  ;;  %v5512_v47 = vld [vmem:[%s5863_s4 + $0x1e4] ss:$12 sps:$4 sm:$0xff]  }
 0xe8d   : > { %v1932_v58 = vpop.xlane.xlu0 %1931  ;;  %v1929_v52 = vpop.xlane.xlu1 %1928 }
 0xe8e   : > { %4441 = vpow2.f32 %v1936_v51  ;;  %v1935_v59 = vsub.f32 %v1923_v24, %v1932_v58  ;;  %v1934_v60 = vsub.f32 %v1922_v19, %v1929_v52  ;;  %v5487_v19 = vld [vmem:[%s5863_s4 + $0x214] ss:$12 sps:$4 sm:$0xff]   ;;  %v5518_v51 = vld [vmem:[%s5863_s4 + $0x1d0] ss:$12 sps:$4 sm:$0xff]   ;;  %v5524_v58 = vld [vmem:[%s5863_s4 + $0x1cc] ss:$12 sps:$4 sm:$0xff]  }
 0xe8f   : > { %v5530_v52 = vld [vmem:[%s5863_s4 + $0x1b8] ss:$12 sps:$4 sm:$0xff]  }
 0xe90   : > { %v1940_v54 = vmul.f32 1.442695, %v1935_v59  ;;  %v1938_v61 = vmul.f32 1.442695, %v1934_v60  ;;  %v5536_v59 = vld [vmem:[%s5863_s4 + $0x1b4] ss:$12 sps:$4 sm:$0xff]  }
 0xe91   : > { %v5542_v60 = vld [vmem:[%s5863_s4 + $0x1a0] ss:$12 sps:$4 sm:$0xff]  }
 0xe92   : > { %4443 = vpow2.f32 %v1940_v54  ;;  %v5548_v54 = vld [vmem:[%s5863_s4 + $0x19c] ss:$12 sps:$4 sm:$0xff]  }
 0xe93   : > { %4445 = vpow2.f32 %v1938_v61  ;;  %v5554_v61 = vld [vmem:[%s5863_s4 + $0x188] ss:$12 sps:$4 sm:$0xff]  }
 0xe9b   : > { %v4442_v25 = vpop.eup %4441 }
 0xe9c   : > { %v1942_v38 = vsel %vm696_vm1, %v4442_v25, 0.0 }
 0xe9d   : > { %1943 = vadd.xlane.f32.xlu1 %v1942_v38 }
 0xe9f   : > { %v4444_v40 = vpop.eup %4443 }
 0xea0   : > { %v4446_v41 = vpop.eup %4445  ;;  %v1948_v34 = vsel %vm696_vm1, %v4444_v40, 0.0 }
 0xea1   : > { %1949 = vadd.xlane.f32.xlu1 %v1948_v34  ;;  %v1945_v36 = vsel %vm696_vm1, %v4446_v41, 0.0 }
 0xea2   : > { %1946 = vadd.xlane.f32.xlu0 %v1945_v36 }
 0xf26   : > { %v1944_v8 = vpop.xlane.xlu1 %1943 }
 0xf27   : > { %4447 = vrcp.f32 %v1944_v8 }
 0xf2a   : > { %v1950_v11 = vpop.xlane.xlu1 %1949 }
 0xf2b   : > { %v1947_v17 = vpop.xlane.xlu0 %1946  ;;  %4449 = vrcp.f32 %v1950_v11 }
 0xf2c   : > { %4451 = vrcp.f32 %v1947_v17 }
 0xf34   : > { %v4448_v45 = vpop.eup %4447 }
 0xf35   : > { %v1954_v13 = vmul.f32 %v4448_v45, %v4442_v25  ;;  %v5560_v25 = vld [vmem:[%s5863_s4 + $0x184] ss:$12 sps:$4 sm:$0xff]  }
 0xf38   : > { %v4450_v2 = vpop.eup %4449 }
 0xf39   : > { %v4452_v4 = vpop.eup %4451  ;;  %v1956_v12 = vmul.f32 %v4450_v2, %v4444_v40 }
 0xf3a   : > { %v1955_v16 = vmul.f32 %v4452_v4, %v4446_v41 }
 0xf3b   : > { %v1958_v18 = vpack.c.bf16 %v1956_v12, %v1956_v12 }
 0xf3c   : > { %v1957_v20 = vpack.c.bf16 %v1955_v16, %v1954_v13 }
 0xf3e   : > { %4094 = vmatprep.mubr.msk.bf16.mxu1 %vm696_vm1, %v1957_v20 }
 0xf3f   : > { %4095 = vmatmul.mubr.msk.bf16.vlgmr.msra.gmra.mxu1 %vm696_vm1, %v1958_v18 }
 0xf40   : > { %4099 = vmatpush3.bf16.msra.mxu1 %v5276_v62  ;;  %v5470_v62 = vld [vmem:[%s5863_s4 + $0x230] ss:$12 sps:$4 sm:$0xff]  }
 0xf41   : > { %4100 = vmatprep.subr.bf16.mxu1 %v5283_v6 }
 0xf44   : > { %4101 = vmatpush3.bf16.msra.mxu1 %v5283_v6 }
 0xf45   : > { %4102 = vmatprep.subr.bf16.mxu1 %v5291_v7 }
 0xf48   : > { %4103 = vmatpush3.bf16.msra.mxu1 %v5291_v7 }
 0xf49   : > { %4104 = vmatprep.subr.bf16.mxu1 %v5298_v9 }
 0xf4c   : > { %4105 = vmatpush3.bf16.msra.mxu1 %v5298_v9 }
 0xf4d   : > { %4106 = vmatprep.subr.bf16.mxu1 %v5305_v42 }
 0xf50   : > { %4107 = vmatpush3.bf16.msra.mxu1 %v5305_v42 }
 0xf51   : > { %4108 = vmatprep.subr.bf16.mxu1 %v5312_v43 }
 0xf54   : > { %4109 = vmatpush3.bf16.msra.mxu1 %v5312_v43 }
 0xf55   : > { %4110 = vmatprep.subr.bf16.mxu1 %v5320_v10 }
 0xf58   : > { %4111 = vmatpush3.bf16.msra.mxu1 %v5320_v10  ;;  %v5476_v10 = vld [vmem:[%s5863_s4 + $0x22c] ss:$12 sps:$4 sm:$0xff]  }
 0xf59   : > { %4112 = vmatprep.subr.bf16.mxu1 %v5327_v44 }
 0xf5c   : > { %4113 = vmatpush3.bf16.msra.mxu1 %v5327_v44  ;;  %v5481_v44 = vld [vmem:[%s5863_s4 + $0x218] ss:$12 sps:$4 sm:$0xff]  }
 0xf5d   : > { %2297 = vmatprep.subr.bf16.mxu1 %v5470_v62 }
 0xfff   : > { %v4096_v6 = vpop.f32.mrf.mxu1 }
0x1000   : > { %v2016_v24 = vpack.c.bf16 %v4096_v6, %v4096_v6 }
0x1001   : > { %v2001_v7 = vpop.f32.mrf.mxu1 }
0x1003   : > { %v4097_v9 = vpop.f32.mrf.mxu1 }
0x1005   : > { %v2004_v42 = vpop.f32.mrf.mxu1 }
0x1006   : > { %v2015_v43 = vpack.c.bf16 %v2004_v42, %v2001_v7 }
0x1008   : > { %4114 = vmatprep.mubr.bf16.mxu1 %v2015_v43 }
0x1009   : > { %4115 = vmatmul.mubr.bf16.vlgmr.msra.gmra.mxu1 %v2016_v24 }
0x100a   : > { %2298 = vmatpush1.bf16.msra.mxu1 %v5476_v10  ;;  %2329 = vmatprep.mubr.bf16.mxu1 %v4605_v3 }
0x100b   : > { %2299 = vmatprep.subr.bf16.mxu1 %v5481_v44 }
0x100e   : > { %2300 = vmatpush1.bf16.msra.mxu1 %v5487_v19 }
0x100f   : > { %2301 = vmatprep.subr.bf16.mxu1 %v5494_v29 }
0x1012   : > { %2302 = vmatpush1.bf16.msra.mxu1 %v5500_v63 }
0x1013   : > { %2303 = vmatprep.subr.bf16.mxu1 %v5506_v23 }
0x1016   : > { %2304 = vmatpush1.bf16.msra.mxu1 %v5512_v47 }
0x1017   : > { %2305 = vmatprep.subr.bf16.mxu1 %v5518_v51 }
0x101a   : > { %2306 = vmatpush1.bf16.msra.mxu1 %v5524_v58 }
0x101b   : > { %2307 = vmatprep.subr.bf16.mxu1 %v5530_v52 }
0x101e   : > { %2308 = vmatpush1.bf16.msra.mxu1 %v5536_v59 }
0x101f   : > { %2309 = vmatprep.subr.bf16.mxu1 %v5542_v60 }
0x1022   : > { %2310 = vmatpush1.bf16.msra.mxu1 %v5548_v54 }
0x1023   : > { %2311 = vmatprep.subr.bf16.mxu1 %v5554_v61 }
0x1026   : > { %2312 = vmatpush1.bf16.msra.mxu1 %v5560_v25 }
0x1027   : > { %4174 = vmatprep.subr.bf16.mxu1 %v5350_v57 }
0x1029   : > { %2330 = vmatmul.mubr.bf16.vlgmr.msra.gmra.mxu1 %v5421_v32 }
0x102a   : > { %2339 = vmatprep.mubr.bf16.mxu1 %v4605_v3  ;;  %4175 = vmatpush3.bf16.msra.mxu1 %v5350_v57 }
0x102b   : > { %4176 = vmatprep.subr.bf16.mxu1 %v5357_v1 }
0x102e   : > { %4177 = vmatpush3.bf16.msra.mxu1 %v5357_v1 }
0x102f   : > { %4178 = vmatprep.subr.bf16.mxu1 %v5366_v5 }
0x1031   : > { %2340 = vmatmul.mubr.bf16.gmra.mxu1 %v5425_v33 }
0x1032   : > { %4179 = vmatpush3.bf16.msra.mxu1 %v5366_v5 }
0x1033   : > { %4180 = vmatprep.subr.bf16.mxu1 %v5373_v27 }
0x1036   : > { %4181 = vmatpush3.bf16.msra.mxu1 %v5373_v27 }
0x1037   : > { %4182 = vmatprep.subr.bf16.mxu1 %v5381_v55 }
0x103a   : > { %4183 = vmatpush3.bf16.msra.mxu1 %v5381_v55 }
0x103b   : > { %4184 = vmatprep.subr.bf16.mxu1 %v5389_v46 }
0x103e   : > { %4185 = vmatpush3.bf16.msra.mxu1 %v5389_v46 }
0x103f   : > { %4186 = vmatprep.subr.bf16.mxu1 %v5396_v56 }
0x1042   : > { %4187 = vmatpush3.bf16.msra.mxu1 %v5396_v56 }
0x1043   : > { %4188 = vmatprep.subr.bf16.mxu1 %v5403_v48 }
0x1046   : > { %4189 = vmatpush3.bf16.msra.mxu1 %v5403_v48 }
0x10c9   : > { %v4116_v57 = vpop.f32.mrf.mxu1 }
0x10ca   : > { %v5584_v27 = vadd.f32 %v4116_v57, %v5232_v26 }
0x10cb   : > { %v2051_v1 = vpop.f32.mrf.mxu1 }
0x10cc   : > { %v5587_v55 = vadd.f32 %v2051_v1, %v5222_v39  ;;  %v5598_v48 = vpack.c.bf16 %v5584_v27, %v5584_v27 }
0x10cd   : > { %v4117_v5 = vpop.f32.mrf.mxu1 }
0x10cf   : > { %v2054_v32 = vpop.f32.mrf.mxu1 }
0x10d0   : > { %v5590_v46 = vadd.f32 %v2054_v32, %v5225_v14 }
0x10d2   : > { %v5594_v56 = vpack.c.bf16 %v5590_v46, %v5587_v55 }
0x10d4   : > { %4190 = vmatprep.mubr.bf16.mxu1 %v5594_v56 }
0x10d5   : > { %4191 = vmatmul.mubr.bf16.vlgmr.msra.gmra.mxu1 %v5598_v48 }
0x10e9   : > { %v2331_v26 = vpop.f32.mrf.mxu1 }
0x10eb   : > { %v2333_v33 = vpop.f32.mrf.mxu1 }
0x10ed   : > { %v2335_v38 = vpop.f32.mrf.mxu1 }
0x10ee   : > { %v2352_v36 = vpack.c.bf16 %v2335_v38, %v2331_v26 }
0x10ef   : > { %v2337_v39 = vpop.f32.mrf.mxu1 }
0x10f0   : > { %v2457_v17 = vpack.c.bf16 %v2337_v39, %v2333_v33 }
0x10f1   : > { %v2341_v40 = vpop.f32.mrf.mxu1 }
0x10f3   : > { %v2343_v41 = vpop.f32.mrf.mxu1 }
0x10f5   : > { %v2345_v14 = vpop.f32.mrf.mxu1 }
0x10f6   : > { %v2353_v34 = vpack.c.bf16 %v2345_v14, %v2341_v40 }
0x10f7   : > { %v2347_v8 = vpop.f32.mrf.mxu1 }
0x10f8   : > { %4138 = vmatprep.subr.bf16.mxu0 %v2353_v34  ;;  %v2458_v11 = vpack.c.bf16 %v2347_v8, %v2343_v41 }
0x10f9   : > { %4139 = vmatpush3.bf16.xpose.msra.mxu0 %v2353_v34 }
0x10fa   : > { %4140 = vmatprep.subr.bf16.mxu0 %v2352_v36 }
0x1101   : > { %4141 = vmatpush3.bf16.xpose.msra.mxu0 %v2352_v36 }
0x1102   : > { %4146 = vmatprep.subr.bf16.mxu0 %v2458_v11 }
0x1108   : > { %4143 = vmatmul.mubr.bf16.vlgmr.msra.gmra.mxu0 %v2351_v21 }
0x1109   : > { %4147 = vmatpush3.bf16.msra.mxu0 %v2458_v11 }
0x110a   : > { %4148 = vmatprep.subr.bf16.mxu0 %v2457_v17 }
0x110d   : > { %4149 = vmatpush3.bf16.msra.mxu0 %v2457_v17 }
0x1195   : > { %v5605_v45 = vpop.f32.mrf.mxu1 }
0x1197   : > { %v2653_v2 = vpop.f32.mrf.mxu1 }
0x1199   : > { %v4193_v4 = vpop.f32.mrf.mxu1 }
0x119b   : > { %v2656_v12 = vpop.f32.mrf.mxu1 }
0x119c   : > { %v2718_v13 = vpack.c.bf16 %v2656_v12, %v2653_v2 }
0x119e   : > { %4198 = vmatprep.mubr.bf16.mxu1 %v2718_v13 }
0x11c8   : > { %v4144_v16 = vpop.f32.mrf.mxu0 }
0x11c9   : > { %v2405_v20 = vmul.f32 0.088388346, %v4144_v16 }
0x11ca   : > { %v2388_v18 = vpop.f32.mrf.mxu0 }
0x11cb   : > { %v2403_v6 = vmul.f32 0.088388346, %v2388_v18  ;;  %v2409_v43 = vsel %vm4870_vm0, %v2405_v20, -1e+09 }
0x11cc   : > { %v4145_v7 = vpop.f32.mrf.mxu0  ;;  %v2417_v57 = vsel %vm696_vm1, %v2409_v43, -inf }
0x11cd   : > { %v2407_v9 = vsel %vm4870_vm0, %v2403_v6, -1e+09  ;;  %v2406_v21 = vmul.f32 0.088388346, %v4145_v7  ;;  %v5626_v7 = vld [vmem:[%s5864_s5 + $0xb8] sm:$0xff]  }
0x11ce   : > { %v2391_v35 = vpop.f32.mrf.mxu0  ;;  %v2411_v37 = vsel %vm696_vm1, %v2407_v9, -inf  ;;  %4154 = vmatprep.subr.bf16.mxu0 %v5626_v7 }
0x11cf   : > { %v2404_v42 = vmul.f32 0.088388346, %v2391_v35  ;;  %2412 = vmax.xlane.f32.xlu0 %v2411_v37  ;;  %v2410_v5 = vsel %vm4870_vm0, %v2406_v21, -1e+09 }
0x11d0   : > { %v2420_v32 = vsel %vm696_vm1, %v2410_v5, -inf }
0x11d1   : > { %v2408_v24 = vsel %vm4870_vm0, %v2404_v42, -1e+09 }
0x11d2   : > { %v2414_v1 = vsel %vm696_vm1, %v2408_v24, -inf }
0x11d3   : > { %2418 = vmax.xlane.f32.xlu0 %v2417_v57  ;;  %2415 = vmax.xlane.f32.xlu1 %v2414_v1 }
0x11d7   : > { %2421 = vmax.xlane.f32.xlu1 %v2420_v32 }
0x1258   : > { %v2413_v26 = vpop.xlane.xlu0 %2412 }
0x1259   : > { %v2423_v33 = vsub.f32 %v2407_v9, %v2413_v26 }
0x125b   : > { %v2427_v38 = vmul.f32 1.442695, %v2423_v33 }
0x125c   : > { %v2419_v39 = vpop.xlane.xlu0 %2418  ;;  %v2416_v40 = vpop.xlane.xlu1 %2415 }
0x125d   : > { %4453 = vpow2.f32 %v2427_v38  ;;  %v2425_v41 = vsub.f32 %v2409_v43, %v2419_v39  ;;  %v2424_v14 = vsub.f32 %v2408_v24, %v2416_v40  ;;  %v5633_v39 = vld [vmem:[%s5864_s5 + $0xb0] sm:$0xff]   ;;  %v5641_v40 = vld [vmem:[%s5864_s5 + $0xa8] sm:$0xff]  }
0x125f   : > { %v2431_v34 = vmul.f32 1.442695, %v2425_v41  ;;  %v2429_v36 = vmul.f32 1.442695, %v2424_v14  ;;  %v5648_v41 = vld [vmem:[%s5864_s5 + $0xa0] sm:$0xff]   ;;  %v5655_v14 = vld [vmem:[%s5864_s5 + $0x98] sm:$0xff]  }
0x1260   : > { %v2422_v8 = vpop.xlane.xlu1 %2421 }
0x1261   : > { %4455 = vpow2.f32 %v2431_v34  ;;  %v2426_v11 = vsub.f32 %v2410_v5, %v2422_v8  ;;  %v5662_v34 = vld [vmem:[%s5864_s5 + $0x90] sm:$0xff]   ;;  %v5677_v8 = vld [vmem:[%s5864_s5 + $0x80] sm:$0xff]  }
0x1262   : > { %4457 = vpow2.f32 %v2429_v36  ;;  %v5670_v36 = vld [vmem:[%s5864_s5 + $0x88] sm:$0xff]  }
0x1263   : > { %v2433_v17 = vmul.f32 1.442695, %v2426_v11 }
0x1265   : > { %4459 = vpow2.f32 %v2433_v17 }
0x126a   : > { %v4454_v2 = vpop.eup %4453 }
0x126b   : > { %v2435_v4 = vsel %vm696_vm1, %v4454_v2, 0.0 }
0x126c   : > { %2436 = vadd.xlane.f32.xlu0 %v2435_v4 }
0x126e   : > { %v4456_v12 = vpop.eup %4455 }
0x126f   : > { %v4458_v13 = vpop.eup %4457  ;;  %v2441_v16 = vsel %vm696_vm1, %v4456_v12, 0.0 }
0x1270   : > { %2442 = vadd.xlane.f32.xlu0 %v2441_v16  ;;  %v2438_v18 = vsel %vm696_vm1, %v4458_v13, 0.0 }
0x1271   : > { %2439 = vadd.xlane.f32.xlu1 %v2438_v18 }
0x1272   : > { %v4460_v20 = vpop.eup %4459 }
0x1273   : > { %v2444_v6 = vsel %vm696_vm1, %v4460_v20, 0.0 }
0x1275   : > { %2445 = vadd.xlane.f32.xlu1 %v2444_v6 }
0x12f5   : > { %v2437_v9 = vpop.xlane.xlu0 %2436 }
0x12f6   : > { %4461 = vrcp.f32 %v2437_v9 }
0x12f9   : > { %v2443_v35 = vpop.xlane.xlu0 %2442 }
0x12fa   : > { %v2440_v37 = vpop.xlane.xlu1 %2439 }
0x12fb   : > { %4463 = vrcp.f32 %v2440_v37 }
0x12fc   : > { %4465 = vrcp.f32 %v2443_v35 }
0x12fe   : > { %v2446_v21 = vpop.xlane.xlu1 %2445 }
0x12ff   : > { %4467 = vrcp.f32 %v2446_v21 }
0x1303   : > { %v4462_v42 = vpop.eup %4461 }
0x1304   : > { %v2451_v24 = vmul.f32 %v4462_v42, %v4454_v2 }
0x1308   : > { %v4464_v43 = vpop.eup %4463 }
0x1309   : > { %v2452_v57 = vmul.f32 %v4464_v43, %v4458_v13  ;;  %v4466_v1 = vpop.eup %4465 }
0x130a   : > { %v2453_v26 = vmul.f32 %v4466_v1, %v4456_v12 }
0x130b   : > { %v2455_v5 = vpack.c.bf16 %v2452_v57, %v2451_v24 }
0x130c   : > { %v4468_v32 = vpop.eup %4467 }
0x130d   : > { %4150 = vmatprep.mubr.msk.bf16.mxu0 %vm696_vm1, %v2455_v5  ;;  %v2454_v33 = vmul.f32 %v4468_v32, %v4460_v20 }
0x130f   : > { %v2456_v38 = vpack.c.bf16 %v2454_v33, %v2453_v26 }
0x1311   : > { %4151 = vmatmul.mubr.msk.bf16.vlgmr.msra.gmra.mxu0 %vm696_vm1, %v2456_v38 }
0x1312   : > { %4155 = vmatpush3.bf16.msra.mxu0 %v5626_v7 }
0x1313   : > { %4156 = vmatprep.subr.bf16.mxu0 %v5633_v39 }
0x1316   : > { %4157 = vmatpush3.bf16.msra.mxu0 %v5633_v39 }
0x1317   : > { %4158 = vmatprep.subr.bf16.mxu0 %v5641_v40 }
0x131a   : > { %4159 = vmatpush3.bf16.msra.mxu0 %v5641_v40 }
0x131b   : > { %4160 = vmatprep.subr.bf16.mxu0 %v5648_v41 }
0x131e   : > { %4161 = vmatpush3.bf16.msra.mxu0 %v5648_v41 }
0x131f   : > { %4162 = vmatprep.subr.bf16.mxu0 %v5655_v14 }
0x1322   : > { %4163 = vmatpush3.bf16.msra.mxu0 %v5655_v14 }
0x1323   : > { %4164 = vmatprep.subr.bf16.mxu0 %v5662_v34 }
0x1326   : > { %4165 = vmatpush3.bf16.msra.mxu0 %v5662_v34 }
0x1327   : > { %4166 = vmatprep.subr.bf16.mxu0 %v5670_v36 }
0x132a   : > { %4167 = vmatpush3.bf16.msra.mxu0 %v5670_v36 }
0x132b   : > { %4168 = vmatprep.subr.bf16.mxu0 %v5677_v8 }
0x132e   : > { %4169 = vmatpush3.bf16.msra.mxu0 %v5677_v8 }
0x132f   : > { %2667 = vmatprep.subr.bf16.mxu0 %v5470_v62 }
0x13d1   : > { %v4152_v11 = vpop.f32.mrf.mxu0 }
0x13d3   : > { %v2499_v17 = vpop.f32.mrf.mxu0 }
0x13d5   : > { %v4153_v2 = vpop.f32.mrf.mxu0 }
0x13d6   : > { %v2515_v13 = vpack.c.bf16 %v4153_v2, %v4152_v11 }
0x13d7   : > { %v2502_v4 = vpop.f32.mrf.mxu0 }
0x13d8   : > { %v2514_v12 = vpack.c.bf16 %v2502_v4, %v2499_v17 }
0x13da   : > { %4170 = vmatprep.mubr.bf16.mxu0 %v2514_v12 }
0x13db   : > { %4171 = vmatmul.mubr.bf16.vlgmr.msra.gmra.mxu0 %v2515_v13 }
0x13dc   : > { %2668 = vmatpush1.bf16.msra.mxu0 %v5476_v10  ;;  %2699 = vmatprep.mubr.bf16.mxu0 %v4605_v3 }
0x13dd   : > { %2669 = vmatprep.subr.bf16.mxu0 %v5481_v44 }
0x13e0   : > { %2670 = vmatpush1.bf16.msra.mxu0 %v5487_v19 }
0x13e1   : > { %2671 = vmatprep.subr.bf16.mxu0 %v5494_v29 }
0x13e4   : > { %2672 = vmatpush1.bf16.msra.mxu0 %v5500_v63 }
0x13e5   : > { %2673 = vmatprep.subr.bf16.mxu0 %v5506_v23 }
0x13e8   : > { %2674 = vmatpush1.bf16.msra.mxu0 %v5512_v47 }
0x13e9   : > { %2675 = vmatprep.subr.bf16.mxu0 %v5518_v51 }
0x13ec   : > { %2676 = vmatpush1.bf16.msra.mxu0 %v5524_v58 }
0x13ed   : > { %2677 = vmatprep.subr.bf16.mxu0 %v5530_v52 }
0x13f0   : > { %2678 = vmatpush1.bf16.msra.mxu0 %v5536_v59 }
0x13f1   : > { %2679 = vmatprep.subr.bf16.mxu0 %v5542_v60 }
0x13f4   : > { %2680 = vmatpush1.bf16.msra.mxu0 %v5548_v54 }
0x13f5   : > { %2681 = vmatprep.subr.bf16.mxu0 %v5554_v61  ;;  %v2719_v61 = vpack.c.bf16 %v5605_v45, %v5605_v45 }
0x13f8   : > { %2682 = vmatpush1.bf16.msra.mxu0 %v5560_v25 }
0x13fb   : > { %2700 = vmatmul.mubr.bf16.vlgmr.msra.gmra.mxu0 %v5594_v56 }
0x13fc   : > { %2709 = vmatprep.mubr.bf16.mxu0 %v4605_v3 }
0x1403   : > { %2710 = vmatmul.mubr.bf16.gmra.mxu0 %v5598_v48 }
0x149b   : > { %v4172_v62 = vpop.f32.mrf.mxu0 }
0x149d   : > { %v5701_v10 = vpop.f32.mrf.mxu0 }
0x149f   : > { %v4173_v44 = vpop.f32.mrf.mxu0 }
0x14a0   : > { %v2616_v12 = vadd.f32 %v4173_v44, %v5408_v22 }
0x14a1   : > { %v5703_v19 = vpop.f32.mrf.mxu0 }
0x14bb   : > { %v2701_v29 = vpop.f32.mrf.mxu0 }
0x14bd   : > { %v2703_v63 = vpop.f32.mrf.mxu0 }
0x14bf   : > { %v2705_v23 = vpop.f32.mrf.mxu0 }
0x14c0   : > { %v2720_v59 = vpack.c.bf16 %v2705_v23, %v2701_v29  ;;  %v2615_v29 = vadd.f32 %v4172_v62, %v5417_v31 }
0x14c1   : > { %v2707_v47 = vpop.f32.mrf.mxu0 }
0x14c2   : > { %v2811_v25 = vpack.c.bf16 %v2707_v47, %v2703_v63  ;;  %v2614_v47 = vadd.f32 %v5703_v19, %v5414_v28 }
0x14c3   : > { %v2711_v51 = vpop.f32.mrf.mxu0 }
0x14c4   : > { %v2721_v58 = vpack.c.bf16 %v2711_v51, %v2711_v51  ;;  %v2926_v51 = vmul.f32 %v2616_v12, %v2616_v12  ;;  %v2924_v22 = vmul.f32 %v2614_v47, %v2614_v47 }
0x14c5   : > { %v2713_v52 = vpop.f32.mrf.mxu0 }
0x14c6   : > { %4194 = vmatprep.subr.bf16.mxu1 %v2721_v58  ;;  %v2812_v54 = vpack.c.bf16 %v2713_v52, %v2713_v52  ;;  %v2925_v52 = vmul.f32 %v2615_v29, %v2615_v29 }
0x14c7   : > { %v2715_v60 = vpop.f32.mrf.mxu0  ;;  %4195 = vmatpush3.bf16.xpose.msra.mxu1 %v2721_v58  ;;  %v2613_v58 = vadd.f32 %v5701_v10, %v5411_v30 }
0x14c8   : > { %4196 = vmatprep.subr.bf16.mxu1 %v2720_v59  ;;  %v2820_v56 = vsel %vm1108_vm2, %v2812_v54, 0 }
0x14c9   : > { %v2716_v3 = vpop.f32.mrf.mxu0  ;;  %v2923_v44 = vmul.f32 %v2613_v58, %v2613_v58 }
0x14cf   : > { %4197 = vmatpush3.bf16.xpose.msra.mxu1 %v2720_v59 }
0x14d0   : > { %4240 = vmatprep.subr.msk.bf16.mxu1 %vm1108_vm2, %v2812_v54 }
0x14d6   : > { %4199 = vmatmul.mubr.bf16.vlgmr.msra.gmra.mxu1 %v2719_v61 }
0x14d7   : > { %4203 = vmatpush3.bf16.msra.mxu1 %v2820_v56 }
0x14d8   : > { %4204 = vmatprep.subr.bf16.mxu1 %v2811_v25 }
0x14db   : > { %4205 = vmatpush3.bf16.msra.mxu1 %v2811_v25 }
0x14dc   : > { %4210 = vmatprep.subr.bf16.mxu1 %v5626_v7 }
0x1596   : > { %v4200_v48 = vpop.f32.mrf.mxu1 }
0x1597   : > { %v2772_v18 = vmul.f32 0.088388346, %v4200_v48 }
0x1598   : > { %v2756_v16 = vpop.f32.mrf.mxu1 }
0x1599   : > { %v2770_v20 = vmul.f32 0.088388346, %v2756_v16  ;;  %v2775_v21 = vsel %vm5090_vm3, %v2772_v18, -1e+09 }
0x159a   : > { %v4201_v6 = vpop.f32.mrf.mxu1  ;;  %v2782_v43 = vsel %vm1064_vm4, %v2775_v21, -inf }
0x159b   : > { %v2773_v9 = vsel %vm5090_vm3, %v2770_v20, -1e+09 }
0x159c   : > { %v2759_v35 = vpop.f32.mrf.mxu1  ;;  %v2776_v45 = vsel %vm1064_vm4, %v2773_v9, -inf }
0x159d   : > { %v2771_v37 = vmul.f32 0.088388346, %v2759_v35  ;;  %2777 = vmax.xlane.f32.xlu0 %v2776_v45 }
0x159f   : > { %v2774_v42 = vsel %vm5090_vm3, %v2771_v37, -1e+09 }
0x15a0   : > { %v2779_v24 = vsel %vm1064_vm4, %v2774_v42, -inf }
0x15a1   : > { %2783 = vmax.xlane.f32.xlu0 %v2782_v43  ;;  %2780 = vmax.xlane.f32.xlu1 %v2779_v24 }
0x1626   : > { %v2778_v57 = vpop.xlane.xlu0 %2777 }
0x1627   : > { %v2785_v1 = vsub.f32 %v2773_v9, %v2778_v57 }
0x1629   : > { %v2788_v5 = vmul.f32 1.442695, %v2785_v1 }
0x162a   : > { %v2784_v32 = vpop.xlane.xlu0 %2783  ;;  %v2781_v26 = vpop.xlane.xlu1 %2780 }
0x162b   : > { %4469 = vpow2.f32 %v2788_v5  ;;  %v2787_v33 = vsub.f32 %v2775_v21, %v2784_v32  ;;  %v2786_v38 = vsub.f32 %v2774_v42, %v2781_v26 }
0x162d   : > { %v2792_v11 = vmul.f32 1.442695, %v2787_v33  ;;  %v2790_v17 = vmul.f32 1.442695, %v2786_v38 }
0x162f   : > { %4471 = vpow2.f32 %v2792_v11 }
0x1630   : > { %4473 = vpow2.f32 %v2790_v17 }
0x1638   : > { %v4470_v15 = vpop.eup %4469 }
0x1639   : > { %v2794_v2 = vsel %vm1064_vm4, %v4470_v15, 0.0 }
0x163a   : > { %2795 = vadd.xlane.f32.xlu1 %v2794_v2 }
0x163c   : > { %v4472_v4 = vpop.eup %4471 }
0x163d   : > { %v4474_v13 = vpop.eup %4473  ;;  %v2800_v63 = vsel %vm1064_vm4, %v4472_v4, 0.0 }
0x163e   : > { %2801 = vadd.xlane.f32.xlu1 %v2800_v63  ;;  %v2797_v23 = vsel %vm1064_vm4, %v4474_v13, 0.0 }
0x163f   : > { %2798 = vadd.xlane.f32.xlu0 %v2797_v23 }
0x1642   : > { %2933 = vadd.xlane.f32.xlu1 %v2926_v51 }
0x1643   : > { %2931 = vadd.xlane.f32.xlu0 %v2925_v52 }
0x1646   : > { %2929 = vadd.xlane.f32.xlu1 %v2924_v22 }
0x1647   : > { %2927 = vadd.xlane.f32.xlu0 %v2923_v44 }
0x16c3   : > { %v2796_v31 = vpop.xlane.xlu1 %2795 }
0x16c4   : > { %4475 = vrcp.f32 %v2796_v31 }
0x16c7   : > { %v2802_v62 = vpop.xlane.xlu1 %2801 }
0x16c8   : > { %v2799_v59 = vpop.xlane.xlu0 %2798  ;;  %4477 = vrcp.f32 %v2802_v62 }
0x16c9   : > { %4479 = vrcp.f32 %v2799_v59 }
0x16cb   : > { %v2934_v60 = vpop.xlane.xlu1 %2933 }
0x16cc   : > { %v2932_v3 = vpop.xlane.xlu0 %2931  ;;  %v2938_v28 = vmax.f32 %v2934_v60, 1e-12 }
0x16cd   : > { %v2937_v19 = vmax.f32 %v2932_v3, 1e-12 }
0x16ce   : > { %4481 = vrsqrt.f32 %v2938_v28 }
0x16cf   : > { %4483 = vrsqrt.f32 %v2937_v19  ;;  %v2930_v30 = vpop.xlane.xlu1 %2929  ;;  %v3136_v19 = vstv %s3135_s0 }
0x16d0   : > { %v2928_v10 = vpop.xlane.xlu0 %2927  ;;  %v2936_v54 = vmax.f32 %v2930_v30, 1e-12  ;;  %v3140_v30 = vstv %s3133_s16 }
0x16d1   : > { %v2935_v61 = vmax.f32 %v2928_v10, 1e-12  ;;  %v4476_v25 = vpop.eup %4475  ;;  %v3157_v10 = vstv %s3134_s15 }
0x16d2   : > { %4485 = vrsqrt.f32 %v2936_v54  ;;  %v2806_v18 = vmul.f32 %v4476_v25, %v4470_v15 }
0x16d3   : > { %4487 = vrsqrt.f32 %v2935_v61 }
0x16d5   : > { %v4478_v56 = vpop.eup %4477 }
0x16d6   : > { %v4480_v48 = vpop.eup %4479  ;;  %v2808_v16 = vmul.f32 %v4478_v56, %v4472_v4 }
0x16d7   : > { %v2807_v20 = vmul.f32 %v4480_v48, %v4474_v13 }
0x16d8   : > { %v2810_v6 = vpack.c.bf16 %v2808_v16, %v2808_v16 }
0x16d9   : > { %v2809_v9 = vpack.c.bf16 %v2807_v20, %v2806_v18 }
0x16db   : > { %v4482_v35 = vpop.eup %4481  ;;  %4206 = vmatprep.mubr.msk.bf16.mxu1 %vm1064_vm4, %v2809_v9 }
0x16dc   : > { %v4484_v45 = vpop.eup %4483  ;;  %4207 = vmatmul.mubr.msk.bf16.vlgmr.msra.gmra.mxu1 %vm1064_vm4, %v2810_v6  ;;  %v2946_v37 = vmul.f32 %v4482_v35, %v2616_v12  ;;  %v3078_v35 = vshrl.u32 %v347_v49, 7 }
0x16dd   : > { %v2945_v21 = vmul.f32 %v4484_v45, %v2615_v29  ;;  %4211 = vmatpush3.bf16.msra.mxu1 %v5626_v7 }
0x16de   : > { %2968 = vst [vmem:[%s331_s13 + $0x18] sm:$0xff] %v2946_v37  ;;  %4212 = vmatprep.subr.bf16.mxu1 %v5633_v39  ;;  %v3036_v29 = vmul.f32 %v2946_v37, %v2946_v37  ;;  %v3117_v45 = vadd.s32 16, %v3078_v35  ;;  %vm3145_vm5 = vcmp.lt.s32.totalorder %v3078_v35, %v5086_v0 }
0x16df   : > { %v4486_v42 = vpop.eup %4485  ;;  %2967 = vst [vmem:[%s331_s13 + $0x10] sm:$0xff] %v2945_v21  ;;  %v2975_v43 = vpack.c.bf16 %v2946_v37, %v2945_v21  ;;  %v3035_v13 = vmul.f32 %v2945_v21, %v2945_v21  ;;  %v3116_v37 = vadd.s32 8, %v3078_v35 }
0x16e0   : > { %v4488_v24 = vpop.eup %4487  ;;  %v2944_v57 = vmul.f32 %v4486_v42, %v2614_v47  ;;  %vm3121_vm7 = vcmp.eq.s32.totalorder %v3117_v45, 23  ;;  %vm3147_vm8 = vcmp.lt.s32.totalorder %v3117_v45, %v5086_v0 }
0x16e1   : > { %4230 = vmatprep.subr.bf16.mxu0 %v2975_v43  ;;  %v2943_v1 = vmul.f32 %v4488_v24, %v2613_v58  ;;  %4213 = vmatpush3.bf16.msra.mxu1 %v5633_v39  ;;  %vm3146_vm6 = vcmp.lt.s32.totalorder %v3116_v37, %v5086_v0  ;;  %vm3125_vm12 = vmor %vm3121_vm7, %vm3122_vm9 }
0x16e2   : > { %4231 = vmatpush3.bf16.xpose.msra.mxu0 %v2975_v43  ;;  %2966 = vst [vmem:[%s331_s13 + $0x8] sm:$0xff] %v2944_v57  ;;  %4214 = vmatprep.subr.bf16.mxu1 %v5641_v40  ;;  %v3034_v12 = vmul.f32 %v2944_v57, %v2944_v57 }
0x16e3   : > { %2965 = vst [vmem:[%s331_s13] sm:$0xff] %v2943_v1  ;;  %v2974_v5 = vpack.c.bf16 %v2944_v57, %v2943_v1  ;;  %v3033_v4 = vmul.f32 %v2943_v1, %v2943_v1 }
0x16e5   : > { %4232 = vmatprep.subr.bf16.mxu0 %v2974_v5  ;;  %4215 = vmatpush3.bf16.msra.mxu1 %v5641_v40 }
0x16e6   : > { %4216 = vmatprep.subr.bf16.mxu1 %v5648_v41 }
0x16e9   : > { %4217 = vmatpush3.bf16.msra.mxu1 %v5648_v41 }
0x16ea   : > { %4233 = vmatpush3.bf16.xpose.msra.mxu0 %v2974_v5  ;;  %4218 = vmatprep.subr.bf16.mxu1 %v5655_v14 }
0x16ed   : > { %4219 = vmatpush3.bf16.msra.mxu1 %v5655_v14 }
0x16ee   : > { %4220 = vmatprep.subr.bf16.mxu1 %v5662_v34 }
0x16f1   : > { %4221 = vmatpush3.bf16.msra.mxu1 %v5662_v34 }
0x16f2   : > { %4222 = vmatprep.subr.bf16.mxu1 %v5670_v36 }
0x16f5   : > { %4223 = vmatpush3.bf16.msra.mxu1 %v5670_v36 }
0x16f6   : > { %4224 = vmatprep.subr.bf16.mxu1 %v5677_v8 }
0x16f9   : > { %4225 = vmatpush3.bf16.msra.mxu1 %v5677_v8 }
0x179c   : > { %v4208_v7 = vpop.f32.mrf.mxu1 }
0x179d   : > { %v2871_v26 = vpack.c.bf16 %v4208_v7, %v4208_v7  ;;  %v4606_v7 = vmov -1e+30  }
0x179e   : > { %v2856_v39 = vpop.f32.mrf.mxu1 }
0x17a0   : > { %v4209_v40 = vpop.f32.mrf.mxu1 }
0x17a2   : > { %v2859_v41 = vpop.f32.mrf.mxu1 }
0x17a3   : > { %v2870_v32 = vpack.c.bf16 %v2859_v41, %v2856_v39  ;;  %v3166_v39 = vsel %vm3165_vm10, 0.0, %v4606_v7   ;;  %v3079_v41 = vsub.s32 0, %v3078_v35 }
0x17a5   : > { %4226 = vmatprep.mubr.bf16.mxu1 %v2870_v32 }
0x17a6   : > { %4227 = vmatmul.mubr.bf16.vlgmr.msra.gmra.mxu1 %v2871_v26 }
0x1866   : > { %v4228_v14 = vpop.f32.mrf.mxu1 }
0x1867   : > { %v2922_v11 = vadd.f32 %v4228_v14, %v5584_v27 }
0x1868   : > { %v2906_v33 = vpop.f32.mrf.mxu1 }
0x1869   : > { %v2920_v34 = vadd.f32 %v2906_v33, %v5587_v55  ;;  %v2949_v8 = vmul.f32 %v2922_v11, %v2922_v11 }
0x186a   : > { %v4229_v38 = vpop.f32.mrf.mxu1 }
0x186b   : > { %v2947_v36 = vmul.f32 %v2920_v34, %v2920_v34 }
0x186c   : > { %v2909_v17 = vpop.f32.mrf.mxu1 }
0x186d   : > { %v2921_v15 = vadd.f32 %v2909_v17, %v5590_v46  ;;  %2950 = vadd.xlane.f32.xlu0 %v2947_v36 }
0x186f   : > { %v2948_v2 = vmul.f32 %v2921_v15, %v2921_v15 }
0x1871   : > { %2954 = vadd.xlane.f32.xlu0 %v2949_v8  ;;  %2952 = vadd.xlane.f32.xlu1 %v2948_v2 }
0x1875   : > { %3037 = vadd.xlane.f32.xlu1 %v3033_v4  ;;  %3039 = vadd.xlane.f32.xlu0 %v3034_v12 }
0x1879   : > { %3041 = vadd.xlane.f32.xlu1 %v3035_v13  ;;  %3043 = vadd.xlane.f32.xlu0 %v3036_v29 }
0x18f6   : > { %v2951_v55 = vpop.xlane.xlu0 %2950 }
0x18f7   : > { %v2956_v27 = vmax.f32 %v2951_v55, 1e-12 }
0x18f9   : > { %4489 = vrsqrt.f32 %v2956_v27 }
0x18fa   : > { %v2955_v63 = vpop.xlane.xlu0 %2954  ;;  %v2953_v23 = vpop.xlane.xlu1 %2952 }
0x18fb   : > { %v2958_v46 = vmax.f32 %v2955_v63, 1e-12  ;;  %v2957_v47 = vmax.f32 %v2953_v23, 1e-12 }
0x18fd   : > { %4491 = vrsqrt.f32 %v2958_v46 }
0x18fe   : > { %4493 = vrsqrt.f32 %v2957_v47  ;;  %v3038_v18 = vpop.xlane.xlu1 %3037  ;;  %v3040_v20 = vpop.xlane.xlu0 %3039 }
0x18ff   : > { %4495 = vlog2.f32 %v3136_v19 }
0x1900   : > { %4497 = vlog2.f32 %v3140_v30 }
0x1901   : > { %4499 = vlog2.f32 %v3157_v10 }
0x1902   : > { %v3042_v6 = vpop.xlane.xlu1 %3041  ;;  %v3044_v9 = vpop.xlane.xlu0 %3043 }
0x1906   : > { %v4490_v51 = vpop.eup %4489 }
0x1907   : > { %v2962_v58 = vmul.f32 %v4490_v51, %v2920_v34 }
0x1909   : > { %2969 = vst [vmem:[%s336_s14] sm:$0xff] %v2962_v58  ;;  %v3024_v52 = vmul.f32 %v2962_v58, %v2962_v58 }
0x190a   : > { %v4492_v22 = vpop.eup %4491 }
0x190b   : > { %v4494_v44 = vpop.eup %4493  ;;  %3027 = vadd.xlane.f32.xlu1 %v3024_v52  ;;  %v2964_v31 = vmul.f32 %v4492_v22, %v2922_v11 }
0x190c   : > { %v2963_v62 = vmul.f32 %v4494_v44, %v2921_v15  ;;  %v4496_v54 = vpop.eup %4495 }
0x190d   : > { %2971 = vst [vmem:[%s336_s14 + $0x10] sm:$0xff] %v2964_v31  ;;  %v2973_v59 = vpack.c.bf16 %v2964_v31, %v2964_v31  ;;  %v3026_v60 = vmul.f32 %v2964_v31, %v2964_v31  ;;  %v4498_v61 = vpop.eup %4497  ;;  %v3138_v25 = vmul.f32 0.6931472, %v4496_v54 }
0x190e   : > { %v3025_v3 = vmul.f32 %v2963_v62, %v2963_v62  ;;  %2970 = vst [vmem:[%s336_s14 + $0x8] sm:$0xff] %v2963_v62  ;;  %v2972_v28 = vpack.c.bf16 %v2963_v62, %v2962_v58  ;;  %v4500_v56 = vpop.eup %4499  ;;  %v3142_v48 = vmul.f32 0.6931472, %v4498_v61  ;;  %v3126_v58 = vstv %s3118_s23 }
0x190f   : > { %3031 = vadd.xlane.f32.xlu1 %v3026_v60  ;;  %4242 = vpush %v3138_v25  ;;  %v3159_v16 = vmul.f32 0.6931472, %v4500_v56 }
0x1910   : > { %3029 = vadd.xlane.f32.xlu0 %v3025_v3  ;;  %4234 = vmatprep.mubr.bf16.mxu0 %v2972_v28  ;;  %4244 = vpush %v3142_v48 }
0x1911   : > { %4235 = vmatmul.mubr.bf16.vlgmr.msra.gmra.mxu0 %v2973_v59  ;;  %4246 = vpush %v3159_v16 }
0x193d   : > { %3045 = vxpose.xlu0.b32.start [1/4] (short) (narrow) %v3038_v18, 8 }
0x1940   : > { %s4243_s17 = spop %4242 }
0x1941   : > { %3046 = vxpose.xlu0.b32.cont [2/4] (short) (narrow) %v3040_v20, 8  ;;  %s3148_s18 = ssub.f32 0.0, %s4243_s17  ;;  %s4245_s1 = spop %4244 }
0x1942   : > { %s3144_s20 = ssub.f32 %s4245_s1, %s4243_s17  ;;  %s4247_s6 = spop %4246 }
0x1943   : > { %v3149_v21 = vstv %s3148_s18  ;;  %s3161_s21 = ssub.f32 %s4247_s6, %s4243_s17 }
0x1944   : > { %v5762_v42 = vsel %vm3145_vm5, %v3149_v21, -1e+30  ;;  %v5764_v43 = vsel %vm3146_vm6, %v3149_v21, -1e+30  ;;  %v3152_v49 = vsel %vm3147_vm8, %v3149_v21, -1e+30  ;;  %v3153_v24 = vstv %s3144_s20 }
0x1945   : > { %3047 = vxpose.xlu0.b32.cont [3/4] (short) (narrow) %v3042_v6, 8  ;;  %v3162_v57 = vsel %vm4870_vm0, %v3149_v21, -1e+30  ;;  %v5771_v1 = vsel %vm3121_vm7, %v3153_v24, %v3152_v49  ;;  %v3163_v5 = vstv %s3161_s21 }
0x1946   : > { %v5779_v0 = vsel %vm3122_vm9, %v3163_v5, %v3162_v57 }
0x1949   : > { %3048 = vxpose.xlu0.b32.end [4/4] (short) (narrow) %v3044_v9, 8 }
0x1994   : > { %v3028_v32 = vpop.xlane.xlu1 %3027 }
0x1998   : > { %v3032_v33 = vpop.xlane.xlu1 %3031 }
0x1999   : > { %v3030_v40 = vpop.xlane.xlu0 %3029 }
0x19b9   : > { %v3061_v26 = vpop.trf.xlu0 }
0x19ba   : > { %v3080_v14 = vrot.slane %v3061_v26, %v3079_v41 }
0x19bc   : > { %v3083_v38 = vadd.f32 %v3080_v14, %v3032_v33  ;;  %v3081_v53 = vadd.f32 %v3080_v14, %v3028_v32  ;;  %v3082_v29 = vadd.f32 %v3080_v14, %v3030_v40 }
0x19d1   : > { %v4236_v34 = vpop.f32.mrf.mxu0 }
0x19d2   : > { %v3086_v11 = vmul.f32 2.0, %v4236_v34 }
0x19d3   : > { %v3010_v36 = vpop.f32.mrf.mxu0 }
0x19d4   : > { %v3089_v17 = vsub.f32 %v3083_v38, %v3086_v11  ;;  %v3084_v15 = vmul.f32 2.0, %v3010_v36 }
0x19d5   : > { %v4237_v8 = vpop.f32.mrf.mxu0 }
0x19d6   : > { %v3092_v2 = vmax.f32 %v3089_v17, 0.0  ;;  %v3087_v4 = vsub.f32 %v3081_v53, %v3084_v15 }
0x19d7   : > { %v3013_v12 = vpop.f32.mrf.mxu0 }
0x19d8   : > { %4501 = vrsqrt.f32 %v3092_v2  ;;  %v3090_v13 = vmax.f32 %v3087_v4, 0.0  ;;  %v3085_v55 = vmul.f32 2.0, %v3013_v12  ;;  %vm3109_vm11 = vcmp.eq.f32.partialorder %v3092_v2, inf }
0x19d9   : > { %v3112_v51 = vand.u32 2147483648, %v3092_v2  ;;  %vm3111_vm13 = vcmp.eq.f32.partialorder %v3092_v2, 0.0 }
0x19da   : > { %4503 = vrsqrt.f32 %v3090_v13  ;;  %v3088_v27 = vsub.f32 %v3082_v29, %v3085_v55  ;;  %vm3095_vm14 = vcmp.eq.f32.partialorder %v3090_v13, inf  ;;  %v3098_v44 = vand.u32 2147483648, %v3090_v13 }
0x19db   : > { %vm3097_vm15 = vcmp.eq.f32.partialorder %v3090_v13, 0.0 }
0x19dc   : > { %v3091_v63 = vmax.f32 %v3088_v27, 0.0 }
0x19de   : > { %4505 = vrsqrt.f32 %v3091_v63  ;;  %vm3102_vm0 = vcmp.eq.f32.partialorder %v3091_v63, inf  ;;  %v3105_v10 = vand.u32 2147483648, %v3091_v63  ;;  %vm3104_vm2 = vcmp.eq.f32.partialorder %v3091_v63, 0.0 }
0x19e5   : > { %v4502_v23 = vpop.eup %4501 }
0x19e6   : > { %v3108_v46 = vmul.f32 %v4502_v23, %v3092_v2 }
0x19e7   : > { %v4504_v47 = vpop.eup %4503 }
0x19e8   : > { %v3094_v52 = vmul.f32 %v4504_v47, %v3090_v13  ;;  %v3110_v22 = vsel %vm3109_vm11, %v3092_v2, %v3108_v46 }
0x19e9   : > { %v3113_v31 = vsel %vm3111_vm13, %v3112_v51, %v3110_v22 }
0x19ea   : > { %v3096_v62 = vsel %vm3095_vm14, %v3090_v13, %v3094_v52  ;;  %v3129_v59 = vsel %vm3125_vm12, %v3126_v58, %v3113_v31 }
0x19eb   : > { %v4506_v60 = vpop.eup %4505  ;;  %v3099_v3 = vsel %vm3097_vm15, %v3098_v44, %v3096_v62  ;;  %v5784_v28 = vmul.f32 -10.0, %v3129_v59 }
0x19ec   : > { %v3101_v19 = vmul.f32 %v4506_v60, %v3091_v63  ;;  %v3127_v30 = vsel %vm3122_vm9, %v3126_v58, %v3099_v3 }
0x19ed   : > { %v5788_v54 = vmul.f32 -10.0, %v3127_v30 }
0x19ee   : > { %v3103_v61 = vsel %vm3102_vm0, %v3091_v63, %v3101_v19 }
0x19ef   : > { %v3106_v25 = vsel %vm3104_vm2, %v3105_v10, %v3103_v61 }
0x19f0   : > { %v3128_v56 = vsel %vm3122_vm9, %v3126_v58, %v3106_v25 }
0x19f1   : > { %v5792_v48 = vmul.f32 -10.0, %v3128_v56 }
0x19f2 LB: >> { %v3177_v16 = vadd.f32 %v4597_v39, %v5788_v54  ;;  %v3179_v18 = vadd.f32 %v4597_v39, %v5784_v28  ;;  %s3172_s24 = sadd.s32 1, %s4601_s24   ;;  %s4601_s24 = sphi %s5796_s24, %s3172_s24   ;;  %v4597_v39 = vphi %v3166_v39, %v5874_v39  }
0x19f3   : >> { %v3178_v50 = vadd.f32 %v4597_v39, %v5792_v48  ;;  %p3169_p0 = scmp.ge.s32.totalorder %s3172_s24, 15  }
0x19f4   : >> { %v3180_v20 = vsel %vm696_vm1, %v3177_v16, -inf  ;;  %v3186_v6 = vsel %vm696_vm1, %v3179_v18, -inf }
0x19f5   : >> { %3181 = vmax.xlane.f32.xlu0 %v3180_v20  ;;  %3187 = vmax.xlane.f32.xlu1 %v3186_v6  ;;  %v3183_v9 = vsel %vm696_vm1, %v3178_v50, -inf }
0x19f9   : >> { %3184 = vmax.xlane.f32.xlu0 %v3183_v9 }
0x1a7e   : >> { %v3182_v35 = vpop.xlane.xlu0 %3181  ;;  %v3188_v45 = vpop.xlane.xlu1 %3187 }
0x1a7f   : >> { %v3189_v37 = vsub.f32 %v3177_v16, %v3182_v35  ;;  %v3191_v21 = vsub.f32 %v3179_v18, %v3188_v45 }
0x1a81   : >> { %v3192_v49 = vmul.f32 1.442695, %v3189_v37  ;;  %v3196_v24 = vmul.f32 1.442695, %v3191_v21 }
0x1a82   : >> { %v3185_v57 = vpop.xlane.xlu0 %3184 }
0x1a83   : >> { %4507 = vpow2.f32 %v3192_v49  ;;  %v3190_v5 = vsub.f32 %v3178_v50, %v3185_v57 }
0x1a84   : >> { %4509 = vpow2.f32 %v3196_v24 }
0x1a85   : >> { %v3194_v7 = vmul.f32 1.442695, %v3190_v5 }
0x1a87   : >> { %4511 = vpow2.f32 %v3194_v7 }
0x1a90   : >> { %v4508_v39 = vpop.eup %4507 }
0x1a91   : >> { %v4510_v40 = vpop.eup %4509  ;;  %v3198_v41 = vsel %vm696_vm1, %v4508_v39, 0.0 }
0x1a92   : >> { %3199 = vadd.xlane.f32.xlu1 %v3198_v41  ;;  %v3204_v32 = vsel %vm696_vm1, %v4510_v40, 0.0 }
0x1a94   : >> { %v4512_v26 = vpop.eup %4511 }
0x1a95   : >> { %v3201_v14 = vsel %vm696_vm1, %v4512_v26, 0.0 }
0x1a96   : >> { %3205 = vadd.xlane.f32.xlu1 %v3204_v32  ;;  %3202 = vadd.xlane.f32.xlu0 %v3201_v14 }
0x1b1b   : >> { %v3200_v33 = vpop.xlane.xlu1 %3199 }
0x1b1c   : >> { %4513 = vlog2.f32 %v3200_v33 }
0x1b1f   : >> { %v3206_v34 = vpop.xlane.xlu1 %3205  ;;  %v3203_v38 = vpop.xlane.xlu0 %3202 }
0x1b20   : >> { %4515 = vlog2.f32 %v3206_v34 }
0x1b21   : >> { %4517 = vlog2.f32 %v3203_v38 }
0x1b29   : >> { %v4514_v11 = vpop.eup %4513 }
0x1b2a   : >> { %v3208_v36 = vmul.f32 0.6931472, %v4514_v11 }
0x1b2c   : >> { %v3213_v17 = vadd.f32 %v3208_v36, %v3182_v35 }
0x1b2d   : >> { %v4516_v53 = vpop.eup %4515 }
0x1b2e   : >> { %v4518_v15 = vpop.eup %4517  ;;  %v3212_v8 = vmul.f32 0.6931472, %v4516_v53  ;;  %v3216_v2 = vsub.f32 %v5762_v42, %v3213_v17 }
0x1b2f   : >> { %v3210_v4 = vmul.f32 0.6931472, %v4518_v15 }
0x1b30   : >> { %v3215_v12 = vadd.f32 %v3212_v8, %v3188_v45  ;;  %v3219_v55 = vadd.f32 %v3216_v2, %v5788_v54 }
0x1b31   : >> { %v3214_v13 = vadd.f32 %v3210_v4, %v3185_v57 }
0x1b32   : >> { %v3218_v29 = vsub.f32 %v5771_v1, %v3215_v12  ;;  %v3222_v46 = vsel %vm696_vm1, %v3219_v55, -inf }
0x1b33   : >> { %v3217_v27 = vsub.f32 %v5764_v43, %v3214_v13 }
0x1b34   : >> { %v3221_v63 = vadd.f32 %v3218_v29, %v5784_v28 }
0x1b35   : >> { %v3220_v23 = vadd.f32 %v3217_v27, %v5792_v48 }
0x1b36   : >> { %v3224_v58 = vsel %vm696_vm1, %v3221_v63, -inf }
0x1b37   : >> { %v3223_v47 = vsel %vm696_vm1, %v3220_v23, -inf }
0x1b38   : >> { %v3225_v51 = vmax.f32 %v3222_v46, %v3223_v47 }
0x1b3a   : >> { %v3226_v52 = vmax.f32 %v3225_v51, %v3224_v58 }
0x1b3c   : >> { %v3227_v22 = vrot.slane %v3226_v52, 4 }
0x1b3e   : >> { %v3228_v44 = vmax.f32 %v3226_v52, %v3227_v22 }
0x1b40   : >> { %v3229_v31 = vrot.slane %v3228_v44, 2 }
0x1b42   : >> { %v3230_v62 = vmax.f32 %v3228_v44, %v3229_v31 }
0x1b44   : >> { %v3231_v59 = vrot.slane %v3230_v62, 1 }
0x1b46   : >> { %v3232_v60 = vmax.f32 %v3230_v62, %v3231_v59 }
0x1b48   : >> { %v3233_v3 = vsub.f32 %v3219_v55, %v3232_v60  ;;  %v3234_v19 = vsub.f32 %v3220_v23, %v3232_v60  ;;  %v3235_v30 = vsub.f32 %v3221_v63, %v3232_v60 }
0x1b4a   : >> { %v3236_v10 = vmul.f32 1.442695, %v3233_v3  ;;  %v3238_v61 = vmul.f32 1.442695, %v3234_v19  ;;  %v3240_v25 = vmul.f32 1.442695, %v3235_v30 }
0x1b4c   : >> { %4519 = vpow2.f32 %v3236_v10 }
0x1b4d   : >> { %4521 = vpow2.f32 %v3238_v61 }
0x1b4e   : >> { %4523 = vpow2.f32 %v3240_v25 }
0x1b59   : >> { %v4520_v56 = vpop.eup %4519 }
0x1b5a   : >> { %v4522_v16 = vpop.eup %4521  ;;  %v3242_v18 = vsel %vm696_vm1, %v4520_v56, 0.0 }
0x1b5b   : >> { %v4524_v50 = vpop.eup %4523  ;;  %v3243_v20 = vsel %vm696_vm1, %v4522_v16, 0.0 }
0x1b5c   : >> { %v3244_v6 = vadd.f32 %v3243_v20, %v3242_v18  ;;  %v3245_v9 = vsel %vm696_vm1, %v4524_v50, 0.0 }
0x1b5e   : >> { %v3246_v35 = vadd.f32 %v3245_v9, %v3244_v6 }
0x1b60   : >> { %v3247_v45 = vrot.slane %v3246_v35, 4 }
0x1b62   : >> { %v3248_v37 = vadd.f32 %v3247_v45, %v3246_v35 }
0x1b64   : >> { %v3249_v21 = vrot.slane %v3248_v37, 2 }
0x1b66   : >> { %v3250_v49 = vadd.f32 %v3249_v21, %v3248_v37 }
0x1b68   : >> { %v3251_v24 = vrot.slane %v3250_v49, 1 }
0x1b6a   : >> { %v3252_v57 = vadd.f32 %v3251_v24, %v3250_v49 }
0x1b6c   : >> { %4525 = vlog2.f32 %v3252_v57 }
0x1b79   : >> { %v4526_v5 = vpop.eup %4525 }
0x1b7a   : >> { %v3254_v7 = vmul.f32 0.6931472, %v4526_v5 }
0x1b7c   : >> { %v3255_v39 = vadd.f32 %v3254_v7, %v3232_v60 }
0x1b7e   : >> { %v3256_v40 = vsub.f32 %v5779_v0, %v3255_v39 }
0x1b80   : >> { %v3258_v41 = vadd.f32 %v3256_v40, %v5792_v48  ;;  %v3257_v32 = vadd.f32 %v3256_v40, %v5788_v54  ;;  %v3259_v33 = vadd.f32 %v3256_v40, %v5784_v28 }
0x1b82   : >> { %v3263_v26 = vsel %vm696_vm1, %v3258_v41, -inf  ;;  %v3260_v14 = vsel %vm696_vm1, %v3257_v32, -inf  ;;  %v3266_v34 = vsel %vm696_vm1, %v3259_v33, -inf }
0x1b83   : >> { %3264 = vmax.xlane.f32.xlu1 %v3263_v26  ;;  %3261 = vmax.xlane.f32.xlu0 %v3260_v14 }
0x1b87   : >> { %3267 = vmax.xlane.f32.xlu0 %v3266_v34 }
0x1c0c   : >> { %v3265_v38 = vpop.xlane.xlu1 %3264  ;;  %v3262_v11 = vpop.xlane.xlu0 %3261 }
0x1c0d   : >> { %v3270_v36 = vsub.f32 %v3258_v41, %v3265_v38  ;;  %v3269_v17 = vsub.f32 %v3257_v32, %v3262_v11 }
0x1c0f   : >> { %v3274_v53 = vmul.f32 1.442695, %v3270_v36  ;;  %v3272_v15 = vmul.f32 1.442695, %v3269_v17 }
0x1c10   : >> { %v3268_v8 = vpop.xlane.xlu0 %3267 }
0x1c11   : >> { %4527 = vpow2.f32 %v3274_v53  ;;  %v3271_v2 = vsub.f32 %v3259_v33, %v3268_v8 }
0x1c12   : >> { %4529 = vpow2.f32 %v3272_v15 }
0x1c13   : >> { %v3276_v4 = vmul.f32 1.442695, %v3271_v2 }
0x1c15   : >> { %4531 = vpow2.f32 %v3276_v4 }
0x1c1e   : >> { %v4528_v12 = vpop.eup %4527 }
0x1c1f   : >> { %v4530_v13 = vpop.eup %4529  ;;  %v3281_v29 = vsel %vm696_vm1, %v4528_v12, 0.0 }
0x1c20   : >> { %3282 = vadd.xlane.f32.xlu0 %v3281_v29  ;;  %v3278_v55 = vsel %vm696_vm1, %v4530_v13, 0.0 }
0x1c21   : >> { %3279 = vadd.xlane.f32.xlu1 %v3278_v55 }
0x1c22   : >> { %v4532_v27 = vpop.eup %4531 }
0x1c23   : >> { %v3284_v63 = vsel %vm696_vm1, %v4532_v27, 0.0 }
0x1c25   : >> { %3285 = vadd.xlane.f32.xlu1 %v3284_v63 }
0x1ca9   : >> { %v3283_v23 = vpop.xlane.xlu0 %3282 }
0x1caa   : >> { %v3280_v46 = vpop.xlane.xlu1 %3279  ;;  %4533 = vlog2.f32 %v3283_v23 }
0x1cab   : >> { %4535 = vlog2.f32 %v3280_v46 }
0x1cae   : >> { %v3286_v47 = vpop.xlane.xlu1 %3285 }
0x1caf   : >> { %4537 = vlog2.f32 %v3286_v47 }
0x1cb7   : >> { %v4534_v51 = vpop.eup %4533 }
0x1cb8   : >> { %v4536_v58 = vpop.eup %4535  ;;  %v3290_v52 = vmul.f32 0.6931472, %v4534_v51 }
0x1cb9   : >> { %v3288_v22 = vmul.f32 0.6931472, %v4536_v58 }
0x1cba   : >> { %v3294_v44 = vadd.f32 %v3290_v52, %v3265_v38 }
0x1cbb   : >> { %v3293_v31 = vadd.f32 %v3288_v22, %v3262_v11 }
0x1cbc   : >> { %v4538_v62 = vpop.eup %4537  ;;  %v3297_v59 = vsub.f32 %v5764_v43, %v3294_v44 }
0x1cbd   : >> { %v3296_v60 = vsub.f32 %v5762_v42, %v3293_v31  ;;  %v3292_v3 = vmul.f32 0.6931472, %v4538_v62 }
0x1cbe   : >> { %v3300_v19 = vadd.f32 %v3297_v59, %v5792_v48 }
0x1cbf   : >> { %v3299_v30 = vadd.f32 %v3296_v60, %v5788_v54  ;;  %v3295_v10 = vadd.f32 %v3292_v3, %v3268_v8 }
0x1cc0   : >> { %v3303_v25 = vsel %vm696_vm1, %v3300_v19, -inf }
0x1cc1   : >> { %v3302_v61 = vsel %vm696_vm1, %v3299_v30, -inf  ;;  %v3298_v56 = vsub.f32 %v5771_v1, %v3295_v10 }
0x1cc2   : >> { %v3305_v18 = vmax.f32 %v3302_v61, %v3303_v25 }
0x1cc3   : >> { %v3301_v16 = vadd.f32 %v3298_v56, %v5784_v28 }
0x1cc5   : >> { %v3304_v50 = vsel %vm696_vm1, %v3301_v16, -inf }
0x1cc6   : >> { %v3306_v20 = vmax.f32 %v3305_v18, %v3304_v50 }
0x1cc8   : >> { %v3307_v6 = vrot.slane %v3306_v20, 4 }
0x1cca   : >> { %v3308_v9 = vmax.f32 %v3306_v20, %v3307_v6 }
0x1ccc   : >> { %v3309_v35 = vrot.slane %v3308_v9, 2 }
0x1cce   : >> { %v3310_v45 = vmax.f32 %v3308_v9, %v3309_v35 }
0x1cd0   : >> { %v3311_v37 = vrot.slane %v3310_v45, 1 }
0x1cd2   : >> { %v3312_v21 = vmax.f32 %v3310_v45, %v3311_v37 }
0x1cd4   : >> { %v3313_v49 = vsub.f32 %v3299_v30, %v3312_v21  ;;  %v3314_v24 = vsub.f32 %v3300_v19, %v3312_v21  ;;  %v3315_v57 = vsub.f32 %v3301_v16, %v3312_v21 }
0x1cd6   : >> { %v3316_v5 = vmul.f32 1.442695, %v3313_v49  ;;  %v3318_v7 = vmul.f32 1.442695, %v3314_v24  ;;  %v3320_v39 = vmul.f32 1.442695, %v3315_v57 }
0x1cd8   : >> { %4539 = vpow2.f32 %v3316_v5 }
0x1cd9   : >> { %4541 = vpow2.f32 %v3318_v7 }
0x1cda   : >> { %4543 = vpow2.f32 %v3320_v39 }
0x1ce5   : >> { %v4540_v40 = vpop.eup %4539 }
0x1ce6   : >> { %v4542_v41 = vpop.eup %4541  ;;  %v3322_v32 = vsel %vm696_vm1, %v4540_v40, 0.0 }
0x1ce7   : >> { %v4544_v26 = vpop.eup %4543  ;;  %v3323_v14 = vsel %vm696_vm1, %v4542_v41, 0.0 }
0x1ce8   : >> { %v3324_v33 = vadd.f32 %v3323_v14, %v3322_v32  ;;  %v3325_v34 = vsel %vm696_vm1, %v4544_v26, 0.0 }
0x1cea   : >> { %v3326_v38 = vadd.f32 %v3325_v34, %v3324_v33 }
0x1cec   : >> { %v3327_v11 = vrot.slane %v3326_v38, 4 }
0x1cee   : >> { %v3328_v36 = vadd.f32 %v3327_v11, %v3326_v38 }
0x1cf0   : >> { %v3329_v17 = vrot.slane %v3328_v36, 2 }
0x1cf2   : >> { %v3330_v53 = vadd.f32 %v3329_v17, %v3328_v36 }
0x1cf4   : >> { %v3331_v15 = vrot.slane %v3330_v53, 1 }
0x1cf6   : >> { %v3332_v8 = vadd.f32 %v3331_v15, %v3330_v53 }
0x1cf8   : >> { %4545 = vlog2.f32 %v3332_v8 }
0x1d05   : >> { %v4546_v2 = vpop.eup %4545 }
0x1d06   : >> { %v3334_v4 = vmul.f32 0.6931472, %v4546_v2 }
0x1d08   : >> { %v3335_v12 = vadd.f32 %v3334_v4, %v3312_v21  ;;  %3171 = sbr.rel (!%p3169_p0) target bundleno = 6642 (0x19f2), region = 108 }
0x1d0a   : >> { %v3336_v13 = vsub.f32 %v5779_v0, %v3335_v12  }
0x1d0c   : >> { %v5874_v39 = vmov %v3336_v13  ;;  %v3340_v29 = vadd.f32 (%p3169_p0), %v3336_v13, %v3299_v30  ;;  %v3341_v55 = vadd.f32 (%p3169_p0), %v3336_v13, %v3300_v19  ;;  %v3342_v27 = vadd.f32 (%p3169_p0), %v3336_v13, %v3301_v16 }
0x1d0e   : > { %v3343_v63 = vmul.f32 1.442695, %v3340_v29  ;;  %v3345_v23 = vmul.f32 1.442695, %v3341_v55  ;;  %v3347_v46 = vmul.f32 1.442695, %v3342_v27 }
0x1d10   : > { %4547 = vpow2.f32 %v3343_v63 }
0x1d11   : > { %4549 = vpow2.f32 %v3345_v23 }
0x1d12   : > { %4551 = vpow2.f32 %v3347_v46 }
0x1d1d   : > { %v4548_v47 = vpop.eup %4547 }
0x1d1e   : > { %v4550_v51 = vpop.eup %4549  ;;  %3349 = vst.msk [vmem:[%s4746_s22] sm:$0xff] %vm696_vm1, %v4548_v47 }
0x1d1f   : > { %v4552_v58 = vpop.eup %4551  ;;  %3350 = vst.msk [vmem:[%s4746_s22 + $0x8] sm:$0xff] %vm696_vm1, %v4550_v51 }
0x1d20   : > { %3351 = vst.msk [vmem:[%s4746_s22 + $0x10] sm:$0xff] %vm696_vm1, %v4552_v58 }
0x1d21 PF: > { %s31_s19 = sadd.s32 1, %s4593_s19  }
0x1d22   : > { %p28_p1 = scmp.ge.s32.totalorder %s31_s19, 4  }
0x1d24   :  { %30 = sbr.rel (!%p28_p1) target bundleno = 26 (0x1a), region = 119 }

</bundles_post_ra>
